<compile_context>
chip_gen: v7x
topology: tpu7x:2x2x1
jax: 0.10.0
libtpu: 0.0.40
codegen_flags: <defaults>
</compile_context>

<pallas_src>
import jax
import jax.numpy as jnp
from jax import lax
from jax.experimental import pallas as pl
from jax.experimental.pallas import tpu as pltpu

EPS = 1e-5   # torch.nn.InstanceNorm2d default eps (affine=False, biased variance)


def _make_kernel(H, W, C, TH, compute_dtype):
    """Kernel processing one image (H, W, C) per grid step (C unpadded)."""
    K3 = 3 * C
    n_chunks = H // TH
    unroll = True if n_chunks <= 8 else 4        # bounded unroll (review item)
    inv_n = 1.0 / float(H * W)

    def kernel(x_ref, w1_ref, w2_ref, o_ref, col_ref, y_ref):
        # col_ref : (H+2, W+2, C) reflect-padded conv input (compute dtype), single tap.
        # y_ref   : (H, W, C) f32 raw conv output (pre-norm), reused by both convs.

        def fill_col(load_rows):
            """col_ref <- reflect_pad(load_rows), streamed in TH-row chunks."""
            def body(i, carry):
                r = pl.multiple_of(i * TH, TH)
                rows = load_rows(r)                                              # (TH, W, C)
                col_ref[pl.ds(r + 1, TH), 1:W + 1, :] = rows                     # center cols
                col_ref[pl.ds(r + 1, TH), 0:1, :] = rows[:, 1:2, :]              # left pad  = x1
                col_ref[pl.ds(r + 1, TH), W + 1:W + 2, :] = rows[:, W - 2:W - 1, :]  # right = x_{W-2}
                return carry
            lax.fori_loop(0, n_chunks, body, 0, unroll=unroll)
            # Row reflection; copied rows already carry their width reflection (corners OK).
            col_ref[0:1, :, :] = col_ref[2:3, :, :]                              # pad row 0   = image row 1
            col_ref[H + 1:H + 2, :, :] = col_ref[H - 1:H, :, :]                  # pad row H+1 = image row H-2

        def conv_pass(w_ref):
            """3x3 conv of col_ref -> y_ref; fused per-channel (mean, rsqrt(var+eps))."""
            def body(i, carry):
                s, sq = carry
                r = pl.multiple_of(i * TH, TH)
                win = col_ref[pl.ds(r, TH + 2), :, :]                            # (TH+2, W+2, C)
                taps = [win[:, kx:kx + W, :] for kx in range(3)]                 # width taps, shared over ky
                acc = jnp.zeros((TH * W, C), jnp.float32)
                for ky in range(3):                                              # 3 fat matmuls, K = 3C
                    patch = jnp.concatenate([t[ky:ky + TH] for t in taps], axis=-1)
                    acc = acc + jnp.dot(patch.reshape(TH * W, K3), w_ref[ky],
                                        preferred_element_type=jnp.float32)
                y_ref[pl.ds(r, TH), :, :] = acc.reshape(TH, W, C)
                s = s + jnp.sum(acc, axis=0, keepdims=True)
                sq = sq + jnp.sum(acc * acc, axis=0, keepdims=True)
                return s, sq

            zero = jnp.zeros((1, C), jnp.float32)
            s, sq = lax.fori_loop(0, n_chunks, body, (zero, zero), unroll=unroll)
            mean = s * inv_n
            var = jnp.maximum(sq * inv_n - mean * mean, 0.0)                     # biased var (torch default)
            inv = lax.rsqrt(var + EPS)
            return mean.reshape(1, 1, C), inv.reshape(1, 1, C)

        # ---- conv1 + fused instance-norm statistics ----
        fill_col(lambda r: x_ref[pl.ds(r, TH), :, :].astype(compute_dtype))
        mean1, inv1 = conv_pass(w1_ref)

        # ---- conv2 on relu(instance_norm(conv1)); normalize/ReLU in f32 ----
        def load_hidden(r):
            v = (y_ref[pl.ds(r, TH), :, :] - mean1) * inv1
            return jnp.maximum(v, 0.0).astype(compute_dtype)

        fill_col(load_hidden)
        mean2, inv2 = conv_pass(w2_ref)

        # ---- residual add with instance-norm of conv2, streamed to the output ----
        def final_body(i, carry):
            r = pl.multiple_of(i * TH, TH)
            z = (y_ref[pl.ds(r, TH), :, :] - mean2) * inv2
            xr = x_ref[pl.ds(r, TH), :, :].astype(jnp.float32)
            o_ref[pl.ds(r, TH), :, :] = (xr + z).astype(o_ref.dtype)
            return carry

        lax.fori_loop(0, n_chunks, final_body, 0, unroll=unroll)

    return kernel


def _round_up(v, m):
    return (v + m - 1) // m * m


def _buf_bytes(shape, itemsize):
    """Approximate Mosaic VMEM footprint of a buffer (sublane/lane tile padding)."""
    *lead, s, c = shape
    sub = 8 if itemsize >= 4 else 8 * (4 // itemsize)
    n = 1
    for d in lead:
        n *= d
    return n * _round_up(max(s, 1), sub) * _round_up(max(c, 1), 128) * itemsize


def _chip_vmem_bytes():
    try:
        cap = getattr(pltpu.get_tpu_info(), "vmem_capacity_bytes", None)
        if cap:
            return int(cap)
    except Exception:
        pass
    return 128 << 20  # assume a v5e/v6e-class part if the query is unavailable


def _pick_row_chunk(H, W, C):
    """Largest row chunk dividing H with M = TH*W <= 512 and f32 acc tile <= 256 KiB."""
    best = 1
    for th in range(1, H + 1):
        if H % th == 0 and th * W <= 512 and th * W * C * 4 <= 256 * 1024:
            best = th
    return best


def residual_block(x_nchw, w1, b1, w2, b2, *, compute_dtype=jnp.bfloat16):
    """x_nchw: (N, C, H, W); w*: (C, C, 3, 3) torch OIHW; b*: (C,).

    b1/b2 are accepted for API parity but intentionally unused: a per-channel conv bias
    is exactly cancelled by the affine-free InstanceNorm2d that follows each conv.
    """
    del b1, b2
    N, C, H, W = x_nchw.shape
    assert H >= 2 and W >= 2, "ReflectionPad2d(1) needs spatial dims >= 2"

    x = jnp.transpose(x_nchw, (0, 2, 3, 1))                 # NCHW -> NHWC, no channel padding

    def reorg(w):  # (co, ci, ky, kx) -> (ky, kx*C + ci, co), MXU operand dtype
        return jnp.transpose(w, (2, 3, 1, 0)).reshape(3, 3 * C, C).astype(compute_dtype)

    w1r, w2r = reorg(w1), reorg(w2)

    TH = _pick_row_chunk(H, W, C)
    cdt_sz = jnp.dtype(compute_dtype).itemsize
    x_sz = jnp.dtype(x.dtype).itemsize

    # VMEM budget: double-buffered in/out image blocks + scratch + double-buffered weights.
    vmem_est = (2 * _buf_bytes((H, W, C), x_sz)              # input block (double-buffered)
                + 2 * _buf_bytes((H, W, C), x_sz)            # output block (double-buffered)
                + _buf_bytes((H + 2, W + 2, C), cdt_sz)      # reflect-padded im2col scratch
                + _buf_bytes((H, W, C), 4)                   # raw conv output scratch (f32)
                + 4 * _buf_bytes((3, 3 * C, C), cdt_sz)      # 2 weights, double-buffered
                + (4 << 20))                                 # compiler headroom
    vmem_cap = max(_chip_vmem_bytes() - (8 << 20), 16 << 20)  # ~56 MiB on v7x, ~120 MiB v5e/v6e
    vmem_limit = int(min(max(vmem_est, 32 << 20), vmem_cap))
    # TODO(synk): for v7x at large H*W*C, add a row-band grid axis with a two-phase
    # InstanceNorm (stats pass, then normalize/residual pass) so whole-image residency is
    # not required and both TensorCores get work even at N=1.
    # TODO(synk): single-buffer the grid-invariant weight operands (pl.Buffered(1)) to
    # recover a few MiB of VMEM headroom on v7x.

    kernel = _make_kernel(H, W, C, TH, compute_dtype)

    out_nhwc = pl.pallas_call(
        kernel,
        out_shape=jax.ShapeDtypeStruct((N, H, W, C), x.dtype),
        grid_spec=pltpu.PrefetchScalarGridSpec(
            num_scalar_prefetch=0,
            grid=(N,),
            in_specs=[
                pl.BlockSpec((None, H, W, C), lambda n: (n, 0, 0, 0)),
                pl.BlockSpec((3, 3 * C, C), lambda n: (0, 0, 0)),
                pl.BlockSpec((3, 3 * C, C), lambda n: (0, 0, 0)),
            ],
            out_specs=pl.BlockSpec((None, H, W, C), lambda n: (n, 0, 0, 0)),
            scratch_shapes=[
                pltpu.VMEM((H + 2, W + 2, C), compute_dtype),  # reflect-padded image / hidden
                pltpu.VMEM((H, W, C), jnp.float32),            # raw conv output (pre-norm)
            ],
        ),
        compiler_params=pltpu.CompilerParams(
            dimension_semantics=("parallel",),
            vmem_limit_bytes=vmem_limit,
        ),
    )(x, w1r, w2r)

    return jnp.transpose(out_nhwc, (0, 3, 1, 2))             # NHWC -> NCHW


def residual_block_ref(x, w1, b1, w2, b2):
    """Pure-JAX reference matching the PyTorch module (NCHW)."""
    def conv(h, w, b):
        hp = jnp.pad(h, ((0, 0), (0, 0), (1, 1), (1, 1)), mode="reflect")
        y = lax.conv_general_dilated(
            hp, w, (1, 1), "VALID",
            dimension_numbers=("NCHW", "OIHW", "NCHW"),
            precision=lax.Precision.HIGHEST)
        return y + b[None, :, None, None]

    def inorm(y):
        m = y.mean(axis=(2, 3), keepdims=True)
        v = ((y - m) ** 2).mean(axis=(2, 3), keepdims=True)
        return (y - m) / jnp.sqrt(v + EPS)

    h = jax.nn.relu(inorm(conv(x, w1, b1)))
    return x + inorm(conv(h, w2, b2))


if __name__ == "__main__":
    N, C, H, W = 2, 4, 16, 16  # small NCHW input consistent with ResidualBlock(C)

    key = jax.random.PRNGKey(0)
    kx, kw1, kb1, kw2, kb2 = jax.random.split(key, 5)
    x = jax.random.normal(kx, (N, C, H, W), dtype=jnp.float32)
    w1 = 0.1 * jax.random.normal(kw1, (C, C, 3, 3), dtype=jnp.float32)
    b1 = 0.1 * jax.random.normal(kb1, (C,), dtype=jnp.float32)
    w2 = 0.1 * jax.random.normal(kw2, (C, C, 3, 3), dtype=jnp.float32)
    b2 = 0.1 * jax.random.normal(kb2, (C,), dtype=jnp.float32)

    ref = residual_block_ref(x, w1, b1, w2, b2)

    # f32 matmul-operand path: close agreement with the reference.
    out_f32 = jax.block_until_ready(
        residual_block(x, w1, b1, w2, b2, compute_dtype=jnp.float32))
    assert out_f32.shape == (N, C, H, W)
    err_f32 = float(jnp.max(jnp.abs(out_f32 - ref)))
    assert jnp.allclose(out_f32, ref, atol=2e-3, rtol=2e-3), err_f32

    # Default bf16 matmul-operand path (f32 accumulation / stats / norm / residual).
    out = jax.block_until_ready(residual_block(x, w1, b1, w2, b2))
    assert out.shape == (N, C, H, W)
    err_bf16 = float(jnp.max(jnp.abs(out - ref)))
    assert err_bf16 < 1.5e-1, err_bf16

    print("KERNEL_OK")
</pallas_src>

<mosaic_0001>
module attributes {stable_mosaic.version = 11 : i64} {
  func.func @kernel(%arg0: i32, %arg1: memref<1x16x16x4xf32, #tpu.memory_space<vmem>>, %arg2: memref<3x12x4xf32, #tpu.memory_space<vmem>>, %arg3: memref<3x12x4xf32, #tpu.memory_space<vmem>>, %arg4: memref<1x16x16x4xf32, #tpu.memory_space<vmem>>, %arg5: memref<18x18x4xf32, #tpu.memory_space<vmem>>, %arg6: memref<16x16x4xf32, #tpu.memory_space<vmem>>) attributes {dimension_semantics = [#tpu.dimension_semantics<parallel>], iteration_bounds = array<i64: 2>, scalar_prefetch = 0 : i64, scratch_operands = 2 : i64, tpu.core_type = #tpu.core_type<tc>, window_params = [{transform_indices = @transform_0, window_bounds = array<i64: 1, 16, 16, 4>}, {pipeline_mode = #tpu.pipeline_mode<synchronous>, transform_indices = @transform_1, window_bounds = array<i64: 3, 12, 4>}, {pipeline_mode = #tpu.pipeline_mode<synchronous>, transform_indices = @transform_2, window_bounds = array<i64: 3, 12, 4>}, {transform_indices = @transform_3, window_bounds = array<i64: 1, 16, 16, 4>}]} {
    %c0_i32 = arith.constant 0 : i32
    %c16_i32 = arith.constant 16 : i32
    %0 = arith.muli %c0_i32, %c16_i32 : i32
    %1 = tpu.assume_multiple %0, 16 : i32
    %c0 = arith.constant 0 : index
    %2 = arith.index_cast %1 : i32 to index
    %c0_0 = arith.constant 0 : index
    %c0_1 = arith.constant 0 : index
    %3 = vector.load %arg1[%c0, %2, %c0_0, %c0_1] : memref<1x16x16x4xf32, #tpu.memory_space<vmem>>, vector<1x16x16x4xf32>
    %4 = vector.shape_cast %3 : vector<1x16x16x4xf32> to vector<16x16x4xf32>
    %c1_i32 = arith.constant 1 : i32
    %5 = arith.addi %1, %c1_i32 : i32
    %6 = arith.index_cast %5 : i32 to index
    %c1 = arith.constant 1 : index
    %c0_2 = arith.constant 0 : index
    %7 = vector.load %arg5[%6, %c1, %c0_2] : memref<18x18x4xf32, #tpu.memory_space<vmem>>, vector<16x16x4xf32>
    tpu.vector_store %arg5[%6, %c1, %c0_2], %4 {strides = array<i32>} : memref<18x18x4xf32, #tpu.memory_space<vmem>>, vector<16x16x4xf32>,
    %8 = vector.extract_strided_slice %4 {offsets = [0, 1, 0], sizes = [16, 1, 4], strides = [1, 1, 1]} : vector<16x16x4xf32> to vector<16x1x4xf32>
    %c1_i32_3 = arith.constant 1 : i32
    %9 = arith.addi %1, %c1_i32_3 : i32
    %10 = arith.index_cast %9 : i32 to index
    %c0_4 = arith.constant 0 : index
    %c0_5 = arith.constant 0 : index
    %11 = vector.load %arg5[%10, %c0_4, %c0_5] : memref<18x18x4xf32, #tpu.memory_space<vmem>>, vector<16x1x4xf32>
    tpu.vector_store %arg5[%10, %c0_4, %c0_5], %8 {strides = array<i32>} : memref<18x18x4xf32, #tpu.memory_space<vmem>>, vector<16x1x4xf32>,
    %12 = vector.extract_strided_slice %4 {offsets = [0, 14, 0], sizes = [16, 1, 4], strides = [1, 1, 1]} : vector<16x16x4xf32> to vector<16x1x4xf32>
    %c1_i32_6 = arith.constant 1 : i32
    %13 = arith.addi %1, %c1_i32_6 : i32
    %14 = arith.index_cast %13 : i32 to index
    %c17 = arith.constant 17 : index
    %c0_7 = arith.constant 0 : index
    %15 = vector.load %arg5[%14, %c17, %c0_7] : memref<18x18x4xf32, #tpu.memory_space<vmem>>, vector<16x1x4xf32>
    tpu.vector_store %arg5[%14, %c17, %c0_7], %12 {strides = array<i32>} : memref<18x18x4xf32, #tpu.memory_space<vmem>>, vector<16x1x4xf32>,
    %c1_i32_8 = arith.constant 1 : i32
    %c2 = arith.constant 2 : index
    %c0_9 = arith.constant 0 : index
    %c0_10 = arith.constant 0 : index
    %16 = vector.load %arg5[%c2, %c0_9, %c0_10] : memref<18x18x4xf32, #tpu.memory_space<vmem>>, vector<1x18x4xf32>
    %c0_11 = arith.constant 0 : index
    %c0_12 = arith.constant 0 : index
    %c0_13 = arith.constant 0 : index
    %17 = vector.load %arg5[%c0_11, %c0_12, %c0_13] : memref<18x18x4xf32, #tpu.memory_space<vmem>>, vector<1x18x4xf32>
    tpu.vector_store %arg5[%c0_11, %c0_12, %c0_13], %16 {strides = array<i32>} : memref<18x18x4xf32, #tpu.memory_space<vmem>>, vector<1x18x4xf32>,
    %c15 = arith.constant 15 : index
    %c0_14 = arith.constant 0 : index
    %c0_15 = arith.constant 0 : index
    %18 = vector.load %arg5[%c15, %c0_14, %c0_15] : memref<18x18x4xf32, #tpu.memory_space<vmem>>, vector<1x18x4xf32>
    %c17_16 = arith.constant 17 : index
    %c0_17 = arith.constant 0 : index
    %c0_18 = arith.constant 0 : index
    %19 = vector.load %arg5[%c17_16, %c0_17, %c0_18] : memref<18x18x4xf32, #tpu.memory_space<vmem>>, vector<1x18x4xf32>
    tpu.vector_store %arg5[%c17_16, %c0_17, %c0_18], %18 {strides = array<i32>} : memref<18x18x4xf32, #tpu.memory_space<vmem>>, vector<1x18x4xf32>,
    %cst = arith.constant 0.000000e+00 : f32
    %20 = vector.broadcast %cst : f32 to vector<1x4xf32>
    %c0_i32_19 = arith.constant 0 : i32
    %c16_i32_20 = arith.constant 16 : i32
    %21 = arith.muli %c0_i32_19, %c16_i32_20 : i32
    %22 = tpu.assume_multiple %21, 16 : i32
    %23 = arith.index_cast %22 : i32 to index
    %c0_21 = arith.constant 0 : index
    %c0_22 = arith.constant 0 : index
    %24 = vector.load %arg5[%23, %c0_21, %c0_22] : memref<18x18x4xf32, #tpu.memory_space<vmem>>, vector<18x18x4xf32>
    %25 = vector.extract_strided_slice %24 {offsets = [0, 0, 0], sizes = [18, 16, 4], strides = [1, 1, 1]} : vector<18x18x4xf32> to vector<18x16x4xf32>
    %26 = vector.extract_strided_slice %24 {offsets = [0, 1, 0], sizes = [18, 16, 4], strides = [1, 1, 1]} : vector<18x18x4xf32> to vector<18x16x4xf32>
    %27 = vector.extract_strided_slice %24 {offsets = [0, 2, 0], sizes = [18, 16, 4], strides = [1, 1, 1]} : vector<18x18x4xf32> to vector<18x16x4xf32>
    %cst_23 = arith.constant 0.000000e+00 : f32
    %28 = vector.broadcast %cst_23 : f32 to vector<256x4xf32>
    %29 = vector.extract_strided_slice %25 {offsets = [0, 0, 0], sizes = [16, 16, 4], strides = [1, 1, 1]} : vector<18x16x4xf32> to vector<16x16x4xf32>
    %30 = vector.extract_strided_slice %26 {offsets = [0, 0, 0], sizes = [16, 16, 4], strides = [1, 1, 1]} : vector<18x16x4xf32> to vector<16x16x4xf32>
    %31 = vector.extract_strided_slice %27 {offsets = [0, 0, 0], sizes = [16, 16, 4], strides = [1, 1, 1]} : vector<18x16x4xf32> to vector<16x16x4xf32>
    %32 = tpu.concatenate %29, %30, %31 in 2 : vector<16x16x4xf32>, vector<16x16x4xf32>, vector<16x16x4xf32> -> vector<16x16x12xf32>
    %33 = vector.shape_cast %32 : vector<16x16x12xf32> to vector<256x12xf32>
    %c0_24 = arith.constant 0 : index
    %c0_25 = arith.constant 0 : index
    %c0_26 = arith.constant 0 : index
    %34 = vector.load %arg2[%c0_24, %c0_25, %c0_26] : memref<3x12x4xf32, #tpu.memory_space<vmem>>, vector<1x12x4xf32>
    %35 = vector.shape_cast %34 : vector<1x12x4xf32> to vector<12x4xf32>
    %cst_27 = arith.constant dense<0.000000e+00> : vector<256x4xf32>
    %36 = tpu.matmul %33, %35, %cst_27 {dimension_numbers = #tpu.dot_dimension_numbers<[1], [0], [0], [1], [0, 0, 1, 1], [], []>} : vector<256x12xf32>, vector<12x4xf32>, vector<256x4xf32> -> vector<256x4xf32>
    %37 = arith.addf %28, %36 : vector<256x4xf32>
    %38 = vector.extract_strided_slice %25 {offsets = [1, 0, 0], sizes = [16, 16, 4], strides = [1, 1, 1]} : vector<18x16x4xf32> to vector<16x16x4xf32>
    %39 = vector.extract_strided_slice %26 {offsets = [1, 0, 0], sizes = [16, 16, 4], strides = [1, 1, 1]} : vector<18x16x4xf32> to vector<16x16x4xf32>
    %40 = vector.extract_strided_slice %27 {offsets = [1, 0, 0], sizes = [16, 16, 4], strides = [1, 1, 1]} : vector<18x16x4xf32> to vector<16x16x4xf32>
    %41 = tpu.concatenate %38, %39, %40 in 2 : vector<16x16x4xf32>, vector<16x16x4xf32>, vector<16x16x4xf32> -> vector<16x16x12xf32>
    %42 = vector.shape_cast %41 : vector<16x16x12xf32> to vector<256x12xf32>
    %c1_28 = arith.constant 1 : index
    %c0_29 = arith.constant 0 : index
    %c0_30 = arith.constant 0 : index
    %43 = vector.load %arg2[%c1_28, %c0_29, %c0_30] : memref<3x12x4xf32, #tpu.memory_space<vmem>>, vector<1x12x4xf32>
    %44 = vector.shape_cast %43 : vector<1x12x4xf32> to vector<12x4xf32>
    %cst_31 = arith.constant dense<0.000000e+00> : vector<256x4xf32>
    %45 = tpu.matmul %42, %44, %cst_31 {dimension_numbers = #tpu.dot_dimension_numbers<[1], [0], [0], [1], [0, 0, 1, 1], [], []>} : vector<256x12xf32>, vector<12x4xf32>, vector<256x4xf32> -> vector<256x4xf32>
    %46 = arith.addf %37, %45 : vector<256x4xf32>
    %47 = vector.extract_strided_slice %25 {offsets = [2, 0, 0], sizes = [16, 16, 4], strides = [1, 1, 1]} : vector<18x16x4xf32> to vector<16x16x4xf32>
    %48 = vector.extract_strided_slice %26 {offsets = [2, 0, 0], sizes = [16, 16, 4], strides = [1, 1, 1]} : vector<18x16x4xf32> to vector<16x16x4xf32>
    %49 = vector.extract_strided_slice %27 {offsets = [2, 0, 0], sizes = [16, 16, 4], strides = [1, 1, 1]} : vector<18x16x4xf32> to vector<16x16x4xf32>
    %50 = tpu.concatenate %47, %48, %49 in 2 : vector<16x16x4xf32>, vector<16x16x4xf32>, vector<16x16x4xf32> -> vector<16x16x12xf32>
    %51 = vector.shape_cast %50 : vector<16x16x12xf32> to vector<256x12xf32>
    %c2_32 = arith.constant 2 : index
    %c0_33 = arith.constant 0 : index
    %c0_34 = arith.constant 0 : index
    %52 = vector.load %arg2[%c2_32, %c0_33, %c0_34] : memref<3x12x4xf32, #tpu.memory_space<vmem>>, vector<1x12x4xf32>
    %53 = vector.shape_cast %52 : vector<1x12x4xf32> to vector<12x4xf32>
    %cst_35 = arith.constant dense<0.000000e+00> : vector<256x4xf32>
    %54 = tpu.matmul %51, %53, %cst_35 {dimension_numbers = #tpu.dot_dimension_numbers<[1], [0], [0], [1], [0, 0, 1, 1], [], []>} : vector<256x12xf32>, vector<12x4xf32>, vector<256x4xf32> -> vector<256x4xf32>
    %55 = arith.addf %46, %54 : vector<256x4xf32>
    %56 = vector.shape_cast %55 : vector<256x4xf32> to vector<16x16x4xf32>
    %57 = arith.index_cast %22 : i32 to index
    %c0_36 = arith.constant 0 : index
    %c0_37 = arith.constant 0 : index
    %58 = vector.load %arg6[%57, %c0_36, %c0_37] : memref<16x16x4xf32, #tpu.memory_space<vmem>>, vector<16x16x4xf32>
    tpu.vector_store %arg6[%57, %c0_36, %c0_37], %56 {strides = array<i32>} : memref<16x16x4xf32, #tpu.memory_space<vmem>>, vector<16x16x4xf32>,
    %cst_38 = arith.constant dense<0.000000e+00> : vector<4xf32>
    %59 = vector.multi_reduction <add>, %55, %cst_38 [0] : vector<256x4xf32> to vector<4xf32>
    %60 = vector.shape_cast %59 : vector<4xf32> to vector<1x4xf32>
    %61 = arith.addf %20, %60 : vector<1x4xf32>
    %62 = arith.mulf %55, %55 : vector<256x4xf32>
    %cst_39 = arith.constant dense<0.000000e+00> : vector<4xf32>
    %63 = vector.multi_reduction <add>, %62, %cst_39 [0] : vector<256x4xf32> to vector<4xf32>
    %64 = vector.shape_cast %63 : vector<4xf32> to vector<1x4xf32>
    %65 = arith.addf %20, %64 : vector<1x4xf32>
    %c1_i32_40 = arith.constant 1 : i32
    %cst_41 = arith.constant 3.906250e-03 : f32
    %66 = vector.broadcast %cst_41 : f32 to vector<1x4xf32>
    %67 = arith.mulf %61, %66 : vector<1x4xf32>
    %cst_42 = arith.constant 3.906250e-03 : f32
    %68 = vector.broadcast %cst_42 : f32 to vector<1x4xf32>
    %69 = arith.mulf %65, %68 : vector<1x4xf32>
    %70 = arith.mulf %67, %67 : vector<1x4xf32>
    %71 = arith.subf %69, %70 : vector<1x4xf32>
    %cst_43 = arith.constant 0.000000e+00 : f32
    %72 = vector.broadcast %cst_43 : f32 to vector<1x4xf32>
    %73 = arith.maximumf %71, %72 : vector<1x4xf32>
    %cst_44 = arith.constant 9.99999974E-6 : f32
    %74 = vector.broadcast %cst_44 : f32 to vector<1x4xf32>
    %75 = arith.addf %73, %74 : vector<1x4xf32>
    %76 = math.rsqrt %75 : vector<1x4xf32>
    %77 = vector.shape_cast %67 : vector<1x4xf32> to vector<1x1x4xf32>
    %78 = vector.shape_cast %76 : vector<1x4xf32> to vector<1x1x4xf32>
    %c0_i32_45 = arith.constant 0 : i32
    %c16_i32_46 = arith.constant 16 : i32
    %79 = arith.muli %c0_i32_45, %c16_i32_46 : i32
    %80 = tpu.assume_multiple %79, 16 : i32
    %81 = arith.index_cast %80 : i32 to index
    %c0_47 = arith.constant 0 : index
    %c0_48 = arith.constant 0 : index
    %82 = vector.load %arg6[%81, %c0_47, %c0_48] : memref<16x16x4xf32, #tpu.memory_space<vmem>>, vector<16x16x4xf32>
    %83 = vector.broadcast %77 : vector<1x1x4xf32> to vector<16x16x4xf32>
    %84 = arith.subf %82, %83 : vector<16x16x4xf32>
    %85 = vector.broadcast %78 : vector<1x1x4xf32> to vector<16x16x4xf32>
    %86 = arith.mulf %84, %85 : vector<16x16x4xf32>
    %cst_49 = arith.constant 0.000000e+00 : f32
    %87 = vector.broadcast %cst_49 : f32 to vector<16x16x4xf32>
    %88 = arith.maximumf %86, %87 : vector<16x16x4xf32>
    %c1_i32_50 = arith.constant 1 : i32
    %89 = arith.addi %80, %c1_i32_50 : i32
    %90 = arith.index_cast %89 : i32 to index
    %c1_51 = arith.constant 1 : index
    %c0_52 = arith.constant 0 : index
    %91 = vector.load %arg5[%90, %c1_51, %c0_52] : memref<18x18x4xf32, #tpu.memory_space<vmem>>, vector<16x16x4xf32>
    tpu.vector_store %arg5[%90, %c1_51, %c0_52], %88 {strides = array<i32>} : memref<18x18x4xf32, #tpu.memory_space<vmem>>, vector<16x16x4xf32>,
    %92 = vector.extract_strided_slice %88 {offsets = [0, 1, 0], sizes = [16, 1, 4], strides = [1, 1, 1]} : vector<16x16x4xf32> to vector<16x1x4xf32>
    %c1_i32_53 = arith.constant 1 : i32
    %93 = arith.addi %80, %c1_i32_53 : i32
    %94 = arith.index_cast %93 : i32 to index
    %c0_54 = arith.constant 0 : index
    %c0_55 = arith.constant 0 : index
    %95 = vector.load %arg5[%94, %c0_54, %c0_55] : memref<18x18x4xf32, #tpu.memory_space<vmem>>, vector<16x1x4xf32>
    tpu.vector_store %arg5[%94, %c0_54, %c0_55], %92 {strides = array<i32>} : memref<18x18x4xf32, #tpu.memory_space<vmem>>, vector<16x1x4xf32>,
    %96 = vector.extract_strided_slice %88 {offsets = [0, 14, 0], sizes = [16, 1, 4], strides = [1, 1, 1]} : vector<16x16x4xf32> to vector<16x1x4xf32>
    %c1_i32_56 = arith.constant 1 : i32
    %97 = arith.addi %80, %c1_i32_56 : i32
    %98 = arith.index_cast %97 : i32 to index
    %c17_57 = arith.constant 17 : index
    %c0_58 = arith.constant 0 : index
    %99 = vector.load %arg5[%98, %c17_57, %c0_58] : memref<18x18x4xf32, #tpu.memory_space<vmem>>, vector<16x1x4xf32>
    tpu.vector_store %arg5[%98, %c17_57, %c0_58], %96 {strides = array<i32>} : memref<18x18x4xf32, #tpu.memory_space<vmem>>, vector<16x1x4xf32>,
    %c1_i32_59 = arith.constant 1 : i32
    %c2_60 = arith.constant 2 : index
    %c0_61 = arith.constant 0 : index
    %c0_62 = arith.constant 0 : index
    %100 = vector.load %arg5[%c2_60, %c0_61, %c0_62] : memref<18x18x4xf32, #tpu.memory_space<vmem>>, vector<1x18x4xf32>
    %c0_63 = arith.constant 0 : index
    %c0_64 = arith.constant 0 : index
    %c0_65 = arith.constant 0 : index
    %101 = vector.load %arg5[%c0_63, %c0_64, %c0_65] : memref<18x18x4xf32, #tpu.memory_space<vmem>>, vector<1x18x4xf32>
    tpu.vector_store %arg5[%c0_63, %c0_64, %c0_65], %100 {strides = array<i32>} : memref<18x18x4xf32, #tpu.memory_space<vmem>>, vector<1x18x4xf32>,
    %c15_66 = arith.constant 15 : index
    %c0_67 = arith.constant 0 : index
    %c0_68 = arith.constant 0 : index
    %102 = vector.load %arg5[%c15_66, %c0_67, %c0_68] : memref<18x18x4xf32, #tpu.memory_space<vmem>>, vector<1x18x4xf32>
    %c17_69 = arith.constant 17 : index
    %c0_70 = arith.constant 0 : index
    %c0_71 = arith.constant 0 : index
    %103 = vector.load %arg5[%c17_69, %c0_70, %c0_71] : memref<18x18x4xf32, #tpu.memory_space<vmem>>, vector<1x18x4xf32>
    tpu.vector_store %arg5[%c17_69, %c0_70, %c0_71], %102 {strides = array<i32>} : memref<18x18x4xf32, #tpu.memory_space<vmem>>, vector<1x18x4xf32>,
    %cst_72 = arith.constant 0.000000e+00 : f32
    %104 = vector.broadcast %cst_72 : f32 to vector<1x4xf32>
    %c0_i32_73 = arith.constant 0 : i32
    %c16_i32_74 = arith.constant 16 : i32
    %105 = arith.muli %c0_i32_73, %c16_i32_74 : i32
    %106 = tpu.assume_multiple %105, 16 : i32
    %107 = arith.index_cast %106 : i32 to index
    %c0_75 = arith.constant 0 : index
    %c0_76 = arith.constant 0 : index
    %108 = vector.load %arg5[%107, %c0_75, %c0_76] : memref<18x18x4xf32, #tpu.memory_space<vmem>>, vector<18x18x4xf32>
    %109 = vector.extract_strided_slice %108 {offsets = [0, 0, 0], sizes = [18, 16, 4], strides = [1, 1, 1]} : vector<18x18x4xf32> to vector<18x16x4xf32>
    %110 = vector.extract_strided_slice %108 {offsets = [0, 1, 0], sizes = [18, 16, 4], strides = [1, 1, 1]} : vector<18x18x4xf32> to vector<18x16x4xf32>
    %111 = vector.extract_strided_slice %108 {offsets = [0, 2, 0], sizes = [18, 16, 4], strides = [1, 1, 1]} : vector<18x18x4xf32> to vector<18x16x4xf32>
    %cst_77 = arith.constant 0.000000e+00 : f32
    %112 = vector.broadcast %cst_77 : f32 to vector<256x4xf32>
    %113 = vector.extract_strided_slice %109 {offsets = [0, 0, 0], sizes = [16, 16, 4], strides = [1, 1, 1]} : vector<18x16x4xf32> to vector<16x16x4xf32>
    %114 = vector.extract_strided_slice %110 {offsets = [0, 0, 0], sizes = [16, 16, 4], strides = [1, 1, 1]} : vector<18x16x4xf32> to vector<16x16x4xf32>
    %115 = vector.extract_strided_slice %111 {offsets = [0, 0, 0], sizes = [16, 16, 4], strides = [1, 1, 1]} : vector<18x16x4xf32> to vector<16x16x4xf32>
    %116 = tpu.concatenate %113, %114, %115 in 2 : vector<16x16x4xf32>, vector<16x16x4xf32>, vector<16x16x4xf32> -> vector<16x16x12xf32>
    %117 = vector.shape_cast %116 : vector<16x16x12xf32> to vector<256x12xf32>
    %c0_78 = arith.constant 0 : index
    %c0_79 = arith.constant 0 : index
    %c0_80 = arith.constant 0 : index
    %118 = vector.load %arg3[%c0_78, %c0_79, %c0_80] : memref<3x12x4xf32, #tpu.memory_space<vmem>>, vector<1x12x4xf32>
    %119 = vector.shape_cast %118 : vector<1x12x4xf32> to vector<12x4xf32>
    %cst_81 = arith.constant dense<0.000000e+00> : vector<256x4xf32>
    %120 = tpu.matmul %117, %119, %cst_81 {dimension_numbers = #tpu.dot_dimension_numbers<[1], [0], [0], [1], [0, 0, 1, 1], [], []>} : vector<256x12xf32>, vector<12x4xf32>, vector<256x4xf32> -> vector<256x4xf32>
    %121 = arith.addf %112, %120 : vector<256x4xf32>
    %122 = vector.extract_strided_slice %109 {offsets = [1, 0, 0], sizes = [16, 16, 4], strides = [1, 1, 1]} : vector<18x16x4xf32> to vector<16x16x4xf32>
    %123 = vector.extract_strided_slice %110 {offsets = [1, 0, 0], sizes = [16, 16, 4], strides = [1, 1, 1]} : vector<18x16x4xf32> to vector<16x16x4xf32>
    %124 = vector.extract_strided_slice %111 {offsets = [1, 0, 0], sizes = [16, 16, 4], strides = [1, 1, 1]} : vector<18x16x4xf32> to vector<16x16x4xf32>
    %125 = tpu.concatenate %122, %123, %124 in 2 : vector<16x16x4xf32>, vector<16x16x4xf32>, vector<16x16x4xf32> -> vector<16x16x12xf32>
    %126 = vector.shape_cast %125 : vector<16x16x12xf32> to vector<256x12xf32>
    %c1_82 = arith.constant 1 : index
    %c0_83 = arith.constant 0 : index
    %c0_84 = arith.constant 0 : index
    %127 = vector.load %arg3[%c1_82, %c0_83, %c0_84] : memref<3x12x4xf32, #tpu.memory_space<vmem>>, vector<1x12x4xf32>
    %128 = vector.shape_cast %127 : vector<1x12x4xf32> to vector<12x4xf32>
    %cst_85 = arith.constant dense<0.000000e+00> : vector<256x4xf32>
    %129 = tpu.matmul %126, %128, %cst_85 {dimension_numbers = #tpu.dot_dimension_numbers<[1], [0], [0], [1], [0, 0, 1, 1], [], []>} : vector<256x12xf32>, vector<12x4xf32>, vector<256x4xf32> -> vector<256x4xf32>
    %130 = arith.addf %121, %129 : vector<256x4xf32>
    %131 = vector.extract_strided_slice %109 {offsets = [2, 0, 0], sizes = [16, 16, 4], strides = [1, 1, 1]} : vector<18x16x4xf32> to vector<16x16x4xf32>
    %132 = vector.extract_strided_slice %110 {offsets = [2, 0, 0], sizes = [16, 16, 4], strides = [1, 1, 1]} : vector<18x16x4xf32> to vector<16x16x4xf32>
    %133 = vector.extract_strided_slice %111 {offsets = [2, 0, 0], sizes = [16, 16, 4], strides = [1, 1, 1]} : vector<18x16x4xf32> to vector<16x16x4xf32>
    %134 = tpu.concatenate %131, %132, %133 in 2 : vector<16x16x4xf32>, vector<16x16x4xf32>, vector<16x16x4xf32> -> vector<16x16x12xf32>
    %135 = vector.shape_cast %134 : vector<16x16x12xf32> to vector<256x12xf32>
    %c2_86 = arith.constant 2 : index
    %c0_87 = arith.constant 0 : index
    %c0_88 = arith.constant 0 : index
    %136 = vector.load %arg3[%c2_86, %c0_87, %c0_88] : memref<3x12x4xf32, #tpu.memory_space<vmem>>, vector<1x12x4xf32>
    %137 = vector.shape_cast %136 : vector<1x12x4xf32> to vector<12x4xf32>
    %cst_89 = arith.constant dense<0.000000e+00> : vector<256x4xf32>
    %138 = tpu.matmul %135, %137, %cst_89 {dimension_numbers = #tpu.dot_dimension_numbers<[1], [0], [0], [1], [0, 0, 1, 1], [], []>} : vector<256x12xf32>, vector<12x4xf32>, vector<256x4xf32> -> vector<256x4xf32>
    %139 = arith.addf %130, %138 : vector<256x4xf32>
    %140 = vector.shape_cast %139 : vector<256x4xf32> to vector<16x16x4xf32>
    %141 = arith.index_cast %106 : i32 to index
    %c0_90 = arith.constant 0 : index
    %c0_91 = arith.constant 0 : index
    %142 = vector.load %arg6[%141, %c0_90, %c0_91] : memref<16x16x4xf32, #tpu.memory_space<vmem>>, vector<16x16x4xf32>
    tpu.vector_store %arg6[%141, %c0_90, %c0_91], %140 {strides = array<i32>} : memref<16x16x4xf32, #tpu.memory_space<vmem>>, vector<16x16x4xf32>,
    %cst_92 = arith.constant dense<0.000000e+00> : vector<4xf32>
    %143 = vector.multi_reduction <add>, %139, %cst_92 [0] : vector<256x4xf32> to vector<4xf32>
    %144 = vector.shape_cast %143 : vector<4xf32> to vector<1x4xf32>
    %145 = arith.addf %104, %144 : vector<1x4xf32>
    %146 = arith.mulf %139, %139 : vector<256x4xf32>
    %cst_93 = arith.constant dense<0.000000e+00> : vector<4xf32>
    %147 = vector.multi_reduction <add>, %146, %cst_93 [0] : vector<256x4xf32> to vector<4xf32>
    %148 = vector.shape_cast %147 : vector<4xf32> to vector<1x4xf32>
    %149 = arith.addf %104, %148 : vector<1x4xf32>
    %c1_i32_94 = arith.constant 1 : i32
    %cst_95 = arith.constant 3.906250e-03 : f32
    %150 = vector.broadcast %cst_95 : f32 to vector<1x4xf32>
    %151 = arith.mulf %145, %150 : vector<1x4xf32>
    %cst_96 = arith.constant 3.906250e-03 : f32
    %152 = vector.broadcast %cst_96 : f32 to vector<1x4xf32>
    %153 = arith.mulf %149, %152 : vector<1x4xf32>
    %154 = arith.mulf %151, %151 : vector<1x4xf32>
    %155 = arith.subf %153, %154 : vector<1x4xf32>
    %cst_97 = arith.constant 0.000000e+00 : f32
    %156 = vector.broadcast %cst_97 : f32 to vector<1x4xf32>
    %157 = arith.maximumf %155, %156 : vector<1x4xf32>
    %cst_98 = arith.constant 9.99999974E-6 : f32
    %158 = vector.broadcast %cst_98 : f32 to vector<1x4xf32>
    %159 = arith.addf %157, %158 : vector<1x4xf32>
    %160 = math.rsqrt %159 : vector<1x4xf32>
    %161 = vector.shape_cast %151 : vector<1x4xf32> to vector<1x1x4xf32>
    %162 = vector.shape_cast %160 : vector<1x4xf32> to vector<1x1x4xf32>
    %c0_i32_99 = arith.constant 0 : i32
    %c16_i32_100 = arith.constant 16 : i32
    %163 = arith.muli %c0_i32_99, %c16_i32_100 : i32
    %164 = tpu.assume_multiple %163, 16 : i32
    %165 = arith.index_cast %164 : i32 to index
    %c0_101 = arith.constant 0 : index
    %c0_102 = arith.constant 0 : index
    %166 = vector.load %arg6[%165, %c0_101, %c0_102] : memref<16x16x4xf32, #tpu.memory_space<vmem>>, vector<16x16x4xf32>
    %167 = vector.broadcast %161 : vector<1x1x4xf32> to vector<16x16x4xf32>
    %168 = arith.subf %166, %167 : vector<16x16x4xf32>
    %169 = vector.broadcast %162 : vector<1x1x4xf32> to vector<16x16x4xf32>
    %170 = arith.mulf %168, %169 : vector<16x16x4xf32>
    %c0_103 = arith.constant 0 : index
    %171 = arith.index_cast %164 : i32 to index
    %c0_104 = arith.constant 0 : index
    %c0_105 = arith.constant 0 : index
    %172 = vector.load %arg1[%c0_103, %171, %c0_104, %c0_105] : memref<1x16x16x4xf32, #tpu.memory_space<vmem>>, vector<1x16x16x4xf32>
    %173 = vector.shape_cast %172 : vector<1x16x16x4xf32> to vector<16x16x4xf32>
    %174 = arith.addf %173, %170 : vector<16x16x4xf32>
    %c0_106 = arith.constant 0 : index
    %175 = arith.index_cast %164 : i32 to index
    %c0_107 = arith.constant 0 : index
    %c0_108 = arith.constant 0 : index
    %176 = vector.load %arg4[%c0_106, %175, %c0_107, %c0_108] : memref<1x16x16x4xf32, #tpu.memory_space<vmem>>, vector<1x16x16x4xf32>
    %177 = vector.shape_cast %176 : vector<1x16x16x4xf32> to vector<16x16x4xf32>
    %178 = vector.shape_cast %174 : vector<16x16x4xf32> to vector<1x16x16x4xf32>
    tpu.vector_store %arg4[%c0_106, %175, %c0_107, %c0_108], %178 {strides = array<i32>} : memref<1x16x16x4xf32, #tpu.memory_space<vmem>>, vector<1x16x16x4xf32>,
    %c1_i32_109 = arith.constant 1 : i32
    return
  }
  func.func @transform_0(%arg0: i32) -> (i32, i32, i32, i32) {
    %c0_i32 = arith.constant 0 : i32
    %c0_i32_0 = arith.constant 0 : i32
    %c0_i32_1 = arith.constant 0 : i32
    %c0_i32_2 = arith.constant 0 : i32
    return %arg0, %c0_i32, %c0_i32_0, %c0_i32_1 : i32, i32, i32, i32
  }
  func.func @transform_1(%arg0: i32) -> (i32, i32, i32) {
    %c0_i32 = arith.constant 0 : i32
    %c0_i32_0 = arith.constant 0 : i32
    %c0_i32_1 = arith.constant 0 : i32
    %c0_i32_2 = arith.constant 0 : i32
    return %c0_i32, %c0_i32_0, %c0_i32_1 : i32, i32, i32
  }
  func.func @transform_2(%arg0: i32) -> (i32, i32, i32) {
    %c0_i32 = arith.constant 0 : i32
    %c0_i32_0 = arith.constant 0 : i32
    %c0_i32_1 = arith.constant 0 : i32
    %c0_i32_2 = arith.constant 0 : i32
    return %c0_i32, %c0_i32_0, %c0_i32_1 : i32, i32, i32
  }
  func.func @transform_3(%arg0: i32) -> (i32, i32, i32, i32) {
    %c0_i32 = arith.constant 0 : i32
    %c0_i32_0 = arith.constant 0 : i32
    %c0_i32_1 = arith.constant 0 : i32
    %c0_i32_2 = arith.constant 0 : i32
    return %arg0, %c0_i32, %c0_i32_0, %c0_i32_1 : i32, i32, i32, i32
  }
}

</mosaic_0001>

<bundles_post_ra>
// kernel: tpu_custom_call.1
= control target key start
LH: loop header
LB: loop body
LE: loop exit
PB: predicated region body
PF: predicated region fallthrough
CT: control target
= control target key end

     0   :  { %s4935_s12 = smov 0   ;;  %s7133_s0 = inlined_call_operand.vmem [shape: f32[2,16,16,4], index: 0, kind: input, shape index: {}]   ;;  %s7134_s1 = inlined_call_operand.vmem [shape: f32[3,12,4], index: 1, kind: input, shape index: {}]   ;;  %s7135_s2 = inlined_call_operand.vmem [shape: f32[3,12,4], index: 2, kind: input, shape index: {}]   ;;  %s7136_s3 = inlined_call_operand.vmem [shape: f32[2,16,16,4], index: 3, kind: output, shape index: {}]  }
   0x1 LB: > { %s3990_s13 = sadd.s32 4294967295, %s4910_s12   ;;  %p3994_p0 = scmp.ge.s32.totalorder %s4910_s12, 1  ;;  %s4910_s12 = sphi %s4935_s12, %s13_s12  }
   0x2   : > { %p137_p1 = scmp.lt.s32.totalorder %s4910_s12, 3 }
   0x4   : > { %p138_p2 = pnand %p3994_p0, %p137_p1 }
   0x6   : > { %141 = sbr.rel (%p138_p2) target bundleno = 1330 (0x532), region = 32 }
   0xd   : > { %p161_p3 = scmp.lt.s32.totalorder %s3990_s13, 1  ;;  %vm208_vm0 = vcmask 31744   ;;  %vm241_vm1 = vcmask 25601   ;;  %vm258_vm2 = vcmask 30726   ;;  %v3999_v6 = vld [vmem:[%s7134_s1 + $0x10] sm:$0xff]  ;;  %vm945_vm3 = vcmask 1043456  }
   0xe   : > { %v4000_v7 = vld [vmem:[%s7134_s1 + $0x18] sm:$0xf]  ;;  %vm572_vm4 = vcmask 1045504   ;;  %vm395_vm5 = vcmask 1046528   ;;  %vm4912_vm6 = vmmov 1   ;;  %s4913_s22 = smov 8  }
   0xf   : > { %s7142_s13 = smov (!%p161_p3, %s3990_s13), 1  ;;  %v4725_v23 = vpack.c.bf16 %v4000_v7, %v3999_v6  ;;  %vm5044_vm7 = vmpackc.low %vm945_vm3, %vm4912_vm6  ;;  %s4914_s23 = smov 4   ;;  %vm281_vm8 = vcmask 25600   ;;  %vm781_vm9 = vcmask 64512   ;;  %vm848_vm10 = vcmask 97280  }
  0x10   : > { %s4207_s14 = sshll.u32 %s7142_s13, 8 }
  0x11   : > { %s4951_s17 = scalar_lea.vmem %s7133_s0, %s4207_s14  ;;  %4727 = vmatprep.subr.msk.bf16.mxu0 %vm5044_vm7, %v4725_v23 }
  0x12   : > { %v173_v0 = vld [vmem:[%s4951_s17] sm:$0xff]  ;;  %v174_v1 = vld [vmem:[%s4951_s17 + $0x8] sm:$0xff]  ;;  %v175_v2 = vld [vmem:[%s4951_s17 + $0x10] sm:$0xff]  ;;  %4730 = vmatpush3.bf16.msk.msra.mxu0 %vm5044_vm7, %v4725_v23 }
  0x13   : > { %209 = vst.msk [vmem:[#allocation2 + $0x19] sm:$0xff] %vm208_vm0, %v173_v0  ;;  %210 = vst.msk [vmem:[#allocation2 + $0x21] sm:$0xff] %vm208_vm0, %v174_v1  ;;  %v176_v3 = vld [vmem:[%s4951_s17 + $0x18] sm:$0xff]  ;;  %v177_v4 = vld [vmem:[%s4951_s17 + $0x20] sm:$0xff] }
  0x14   : > { %242 = vst.msk [vmem:[#allocation2 + $0x17] sm:$0x2] %vm241_vm1, %v173_v0  ;;  %243 = vst.msk [vmem:[#allocation2 + $0x2f] sm:$0x2] %vm241_vm1, %v175_v2  ;;  %v178_v5 = vld [vmem:[%s4951_s17 + $0x28] sm:$0xff]  ;;  %v179_v8 = vld [vmem:[%s4951_s17 + $0x30] sm:$0xff] }
  0x15   : > { %259 = vst.msk [vmem:[#allocation2 + $0x23] sm:$0x40] %vm258_vm2, %v174_v1  ;;  %260 = vst.msk [vmem:[#allocation2 + $0x3b] sm:$0x40] %vm258_vm2, %v176_v3  ;;  %v180_v9 = vld [vmem:[%s4951_s17 + $0x38] sm:$0xff]  ;;  %v181_v10 = vld [vmem:[%s4951_s17 + $0x40] sm:$0xff] }
  0x16   : > { %211 = vst.msk [vmem:[#allocation2 + $0x31] sm:$0xff] %vm208_vm0, %v175_v2  ;;  %212 = vst.msk [vmem:[#allocation2 + $0x39] sm:$0xff] %vm208_vm0, %v176_v3  ;;  %v182_v11 = vld [vmem:[%s4951_s17 + $0x48] sm:$0xff]  ;;  %v183_v12 = vld [vmem:[%s4951_s17 + $0x50] sm:$0xff] }
  0x17   : > { %213 = vst.msk [vmem:[#allocation2 + $0x49] sm:$0xff] %vm208_vm0, %v177_v4  ;;  %214 = vst.msk [vmem:[#allocation2 + $0x51] sm:$0xff] %vm208_vm0, %v178_v5  ;;  %v184_v13 = vld [vmem:[%s4951_s17 + $0x58] sm:$0xff]  ;;  %v185_v14 = vld [vmem:[%s4951_s17 + $0x60] sm:$0xff] }
  0x18   : > { %261 = vst.msk [vmem:[#allocation2 + $0x53] sm:$0x40] %vm258_vm2, %v178_v5  ;;  %262 = vst.msk [vmem:[#allocation2 + $0x6b] sm:$0x40] %vm258_vm2, %v180_v9  ;;  %v186_v15 = vld [vmem:[%s4951_s17 + $0x68] sm:$0xff]  ;;  %v187_v16 = vld [vmem:[%s4951_s17 + $0x70] sm:$0xff] }
  0x19   : > { %244 = vst.msk [vmem:[#allocation2 + $0x47] sm:$0x2] %vm241_vm1, %v177_v4  ;;  %245 = vst.msk [vmem:[#allocation2 + $0x5f] sm:$0x2] %vm241_vm1, %v179_v8  ;;  %v188_v17 = vld [vmem:[%s4951_s17 + $0x78] sm:$0xff]  ;;  %v189_v18 = vld [vmem:[%s4951_s17 + $0x80] sm:$0xff] }
  0x1a   : > { %215 = vst.msk [vmem:[#allocation2 + $0x61] sm:$0xff] %vm208_vm0, %v179_v8  ;;  %216 = vst.msk [vmem:[#allocation2 + $0x69] sm:$0xff] %vm208_vm0, %v180_v9  ;;  %v190_v19 = vld [vmem:[%s4951_s17 + $0x88] sm:$0xff]  ;;  %v191_v20 = vld [vmem:[%s4951_s17 + $0x90] sm:$0xff] }
  0x1b   : > { %217 = vst.msk [vmem:[#allocation2 + $0x79] sm:$0xff] %vm208_vm0, %v181_v10  ;;  %218 = vst.msk [vmem:[#allocation2 + $0x81] sm:$0xff] %vm208_vm0, %v182_v11  ;;  %v192_v21 = vld [vmem:[%s4951_s17 + $0x98] sm:$0xff]  ;;  %v193_v22 = vld [vmem:[%s4951_s17 + $0xa0] sm:$0xff] }
  0x1c   : > { %246 = vst.msk [vmem:[#allocation2 + $0x77] sm:$0x2] %vm241_vm1, %v181_v10  ;;  %247 = vst.msk [vmem:[#allocation2 + $0x8f] sm:$0x2] %vm241_vm1, %v183_v12  ;;  %v194_v24 = vld [vmem:[%s4951_s17 + $0xa8] sm:$0xff]  ;;  %v195_v25 = vld [vmem:[%s4951_s17 + $0xb0] sm:$0xff] }
  0x1d   : > { %263 = vst.msk [vmem:[#allocation2 + $0x83] sm:$0x40] %vm258_vm2, %v182_v11  ;;  %264 = vst.msk [vmem:[#allocation2 + $0x9b] sm:$0x40] %vm258_vm2, %v184_v13  ;;  %v196_v26 = vld [vmem:[%s4951_s17 + $0xb8] sm:$0xff]  ;;  %v5027_v28 = vld [vmem:[#allocation2 + $0x20] sm:$0xff] }
  0x1e   : > { %219 = vst.msk [vmem:[#allocation2 + $0x91] sm:$0xff] %vm208_vm0, %v183_v12  ;;  %220 = vst.msk [vmem:[#allocation2 + $0x99] sm:$0xff] %vm208_vm0, %v184_v13  ;;  %v5025_v27 = vld [vmem:[#allocation2 + $0x18] sm:$0xff]  ;;  %v298_v29 = vld [vmem:[#allocation2 + $0x28] sm:$0x3]  ;;  %v579_v31 = vrot.slane %v5027_v28, 2 }
  0x1f   : > { %221 = vst.msk [vmem:[#allocation2 + $0xa9] sm:$0xff] %vm208_vm0, %v185_v14  ;;  %222 = vst.msk [vmem:[#allocation2 + $0xb1] sm:$0xff] %vm208_vm0, %v186_v15  ;;  %v578_v30 = vrot.slane %v5025_v27, 2  ;;  %v401_v32 = vrot.slane %v5025_v27, 1  ;;  %v402_v33 = vrot.slane %v5027_v28, 1  ;;  %v5039_v34 = vld [vmem:[#allocation2 + $0x38] sm:$0xff] }
  0x20   : > { %265 = vst.msk [vmem:[#allocation2 + $0xb3] sm:$0x40] %vm258_vm2, %v186_v15  ;;  %266 = vst.msk [vmem:[#allocation2 + $0xcb] sm:$0x40] %vm258_vm2, %v188_v17  ;;  %v5041_v35 = vld [vmem:[#allocation2 + $0x30] sm:$0xff]  ;;  %v581_v37 = vrot.slane %v298_v29, 2 }
  0x21   : > { %248 = vst.msk [vmem:[#allocation2 + $0xa7] sm:$0x2] %vm241_vm1, %v185_v14  ;;  %249 = vst.msk [vmem:[#allocation2 + $0xbf] sm:$0x2] %vm241_vm1, %v187_v16  ;;  %v404_v38 = vrot.slane %v298_v29, 1  ;;  %v580_v40 = vsel %vm572_vm4, %v578_v30, %v579_v31  ;;  %v403_v41 = vsel %vm395_vm5, %v401_v32, %v402_v33  ;;  %v407_v42 = vrot.slane %v5039_v34, 1 }
  0x22   : > { %223 = vst.msk [vmem:[#allocation2 + $0xc1] sm:$0xff] %vm208_vm0, %v187_v16  ;;  %224 = vst.msk [vmem:[#allocation2 + $0xc9] sm:$0xff] %vm208_vm0, %v188_v17  ;;  %v301_v39 = vld [vmem:[#allocation2 + $0x40] sm:$0x3]  ;;  %657 = vrot.lane.b32.xlu1 %v580_v40, %s4913_s22  ;;  %480 = vrot.lane.b32.xlu0 %v403_v41, %s4914_s23  ;;  %v582_v43 = vsel %vm572_vm4, %v579_v31, %v581_v37  ;;  %v406_v46 = vrot.slane %v5041_v35, 1  ;;  %v584_v47 = vrot.slane %v5039_v34, 2 }
  0x23   : > { %225 = vst.msk [vmem:[#allocation2 + $0xd9] sm:$0xff] %vm208_vm0, %v189_v18  ;;  %226 = vst.msk [vmem:[#allocation2 + $0xe1] sm:$0xff] %vm208_vm0, %v190_v19  ;;  %v405_v44 = vsel %vm395_vm5, %v402_v33, %v404_v38  ;;  %v409_v45 = vrot.slane %v301_v39, 1  ;;  %v586_v50 = vrot.slane %v301_v39, 2  ;;  %v583_v51 = vrot.slane %v5041_v35, 2  ;;  %v5070_v52 = vld [vmem:[#allocation2 + $0x50] sm:$0xff] }
  0x24   : > { %267 = vst.msk [vmem:[#allocation2 + $0xe3] sm:$0x40] %vm258_vm2, %v190_v19  ;;  %268 = vst.msk [vmem:[#allocation2 + $0xfb] sm:$0x40] %vm258_vm2, %v192_v21  ;;  %v408_v49 = vsel %vm395_vm5, %v406_v46, %v407_v42  ;;  %v304_v53 = vld [vmem:[#allocation2 + $0x58] sm:$0x3] }
  0x25   : > { %250 = vst.msk [vmem:[#allocation2 + $0xd7] sm:$0x2] %vm241_vm1, %v189_v18  ;;  %251 = vst.msk [vmem:[#allocation2 + $0xef] sm:$0x2] %vm241_vm1, %v191_v20  ;;  %v410_v48 = vsel %vm395_vm5, %v407_v42, %v409_v45  ;;  %v5072_v54 = vld [vmem:[#allocation2 + $0x48] sm:$0xff]  ;;  %v412_v55 = vrot.slane %v5070_v52, 1  ;;  %v587_v56 = vsel %vm572_vm4, %v584_v47, %v586_v50  ;;  %v585_v57 = vsel %vm572_vm4, %v583_v51, %v584_v47 }
  0x26   : > { %227 = vst.msk [vmem:[#allocation2 + $0xf1] sm:$0xff] %vm208_vm0, %v191_v20  ;;  %228 = vst.msk [vmem:[#allocation2 + $0xf9] sm:$0xff] %vm208_vm0, %v192_v21  ;;  %659 = vrot.lane.b32.xlu1 %v582_v43, %s4913_s22  ;;  %482 = vrot.lane.b32.xlu0 %v405_v44, %s4914_s23  ;;  %v414_v58 = vrot.slane %v304_v53, 1  ;;  %v411_v59 = vrot.slane %v5072_v54, 1  ;;  %v197_v60 = vld [vmem:[%s4951_s17 + $0xc0] sm:$0xff]  ;;  %v198_v61 = vld [vmem:[%s4951_s17 + $0xc8] sm:$0xff] }
  0x27   : > { %229 = vst.msk [vmem:[#allocation2 + $0x109] sm:$0xff] %vm208_vm0, %v193_v22  ;;  %230 = vst.msk [vmem:[#allocation2 + $0x111] sm:$0xff] %vm208_vm0, %v194_v24  ;;  %v199_v62 = vld [vmem:[%s4951_s17 + $0xd0] sm:$0xff]  ;;  %v200_v63 = vld [vmem:[%s4951_s17 + $0xd8] sm:$0xff]  ;;  %v589_v1 = vrot.slane %v5070_v52, 2  ;;  %v591_v7 = vrot.slane %v304_v53, 2 }
  0x28   : > { %252 = vst.msk [vmem:[#allocation2 + $0x107] sm:$0x2] %vm241_vm1, %v193_v22  ;;  %253 = vst.msk [vmem:[#allocation2 + $0x11f] sm:$0x2] %vm241_vm1, %v195_v25  ;;  %v201_v0 = vld [vmem:[%s4951_s17 + $0xe0] sm:$0xff]  ;;  %v202_v2 = vld [vmem:[%s4951_s17 + $0xe8] sm:$0xff]  ;;  %v415_v5 = vsel %vm395_vm5, %v412_v55, %v414_v58  ;;  %v413_v6 = vsel %vm395_vm5, %v411_v59, %v412_v55 }
  0x29   : > { %269 = vst.msk [vmem:[#allocation2 + $0x113] sm:$0x40] %vm258_vm2, %v194_v24  ;;  %270 = vst.msk [vmem:[#allocation2 + $0x12b] sm:$0x40] %vm258_vm2, %v196_v26  ;;  %v203_v3 = vld [vmem:[%s4951_s17 + $0xf0] sm:$0xff]  ;;  %v588_v8 = vrot.slane %v5072_v54, 2  ;;  %v592_v14 = vsel %vm572_vm4, %v589_v1, %v591_v7 }
  0x2a   : > { %231 = vst.msk [vmem:[#allocation2 + $0x121] sm:$0xff] %vm208_vm0, %v195_v25  ;;  %232 = vst.msk [vmem:[#allocation2 + $0x129] sm:$0xff] %vm208_vm0, %v196_v26  ;;  %486 = vrot.lane.b32.xlu1 %v410_v48, %s4914_s23  ;;  %484 = vrot.lane.b32.xlu0 %v408_v49, %s4914_s23  ;;  %v278_v4 = vld [vmem:[#allocation2 + $0x40] sm:$0x3]  ;;  %v5103_v9 = vld [vmem:[#allocation2 + $0x68] sm:$0xff] }
  0x2b   : > { %280 = vst.msk [vmem:[#allocation2 + $0x8] sm:$0xff] %vm208_vm0, %v5039_v34  ;;  %279 = vst.msk [vmem:[#allocation2] sm:$0xff] %vm208_vm0, %v5041_v35  ;;  %v204_v10 = vld [vmem:[%s4951_s17 + $0xf8] sm:$0xff]  ;;  %v307_v11 = vld [vmem:[#allocation2 + $0x70] sm:$0x3]  ;;  %v417_v13 = vrot.slane %v5103_v9, 1  ;;  %v590_v15 = vsel %vm572_vm4, %v588_v8, %v589_v1 }
  0x2c   : > { %233 = vst.msk [vmem:[#allocation2 + $0x139] sm:$0xff] %vm208_vm0, %v197_v60  ;;  %234 = vst.msk [vmem:[#allocation2 + $0x141] sm:$0xff] %vm208_vm0, %v198_v61  ;;  %v5111_v12 = vld [vmem:[#allocation2 + $0x60] sm:$0xff]  ;;  %v419_v16 = vrot.slane %v307_v11, 1  ;;  %v594_v18 = vrot.slane %v5103_v9, 2  ;;  %v596_v23 = vrot.slane %v307_v11, 2 }
  0x2d   : > { %271 = vst.msk [vmem:[#allocation2 + $0x143] sm:$0x40] %vm258_vm2, %v198_v61  ;;  %272 = vst.msk [vmem:[#allocation2 + $0x15b] sm:$0x40] %vm258_vm2, %v200_v63  ;;  %v416_v17 = vrot.slane %v5111_v12, 1  ;;  %v593_v24 = vrot.slane %v5111_v12, 2 }
  0x2e   : > { %254 = vst.msk [vmem:[#allocation2 + $0x137] sm:$0x2] %vm241_vm1, %v197_v60  ;;  %663 = vrot.lane.b32.xlu1 %v587_v56, %s4913_s22  ;;  %661 = vrot.lane.b32.xlu0 %v585_v57, %s4913_s22  ;;  %255 = vst.msk [vmem:[#allocation2 + $0x14f] sm:$0x2] %vm241_vm1, %v199_v62  ;;  %v420_v21 = vsel %vm395_vm5, %v417_v13, %v419_v16  ;;  %v5131_v25 = vld [vmem:[#allocation2 + $0x80] sm:$0xff]  ;;  %v5137_v29 = vld [vmem:[#allocation2 + $0x78] sm:$0xff]  ;;  %v597_v31 = vsel %vm572_vm4, %v594_v18, %v596_v23 }
  0x2f   : > { %235 = vst.msk [vmem:[#allocation2 + $0x151] sm:$0xff] %vm208_vm0, %v199_v62  ;;  %236 = vst.msk [vmem:[#allocation2 + $0x159] sm:$0xff] %vm208_vm0, %v200_v63  ;;  %v418_v22 = vsel %vm395_vm5, %v416_v17, %v417_v13  ;;  %v310_v26 = vld [vmem:[#allocation2 + $0x88] sm:$0x3]  ;;  %v422_v30 = vrot.slane %v5131_v25, 1  ;;  %v595_v32 = vsel %vm572_vm4, %v593_v24, %v594_v18  ;;  %v421_v37 = vrot.slane %v5137_v29, 1 }
  0x30   : > { %237 = vst.msk [vmem:[#allocation2 + $0x169] sm:$0xff] %vm208_vm0, %v201_v0  ;;  %238 = vst.msk [vmem:[#allocation2 + $0x171] sm:$0xff] %vm208_vm0, %v202_v2  ;;  %v424_v33 = vrot.slane %v310_v26, 1  ;;  %v599_v38 = vrot.slane %v5131_v25, 2  ;;  %v601_v41 = vrot.slane %v310_v26, 2  ;;  %v598_v42 = vrot.slane %v5137_v29, 2 }
  0x31   : > { %256 = vst.msk [vmem:[#allocation2 + $0x167] sm:$0x2] %vm241_vm1, %v201_v0  ;;  %257 = vst.msk [vmem:[#allocation2 + $0x17f] sm:$0x2] %vm241_vm1, %v203_v3  ;;  %v423_v40 = vsel %vm395_vm5, %v421_v37, %v422_v30  ;;  %v5151_v43 = vld [vmem:[#allocation2 + $0x98] sm:$0xff]  ;;  %v5153_v45 = vld [vmem:[#allocation2 + $0x90] sm:$0xff] }
  0x32   : > { %273 = vst.msk [vmem:[#allocation2 + $0x173] sm:$0x40] %vm258_vm2, %v202_v2  ;;  %274 = vst.msk [vmem:[#allocation2 + $0x18b] sm:$0x40] %vm258_vm2, %v204_v10  ;;  %490 = vrot.lane.b32.xlu1 %v415_v5, %s4914_s23  ;;  %488 = vrot.lane.b32.xlu0 %v413_v6, %s4914_s23  ;;  %v425_v39 = vsel %vm395_vm5, %v422_v30, %v424_v33  ;;  %v313_v44 = vld [vmem:[#allocation2 + $0xa0] sm:$0x3]  ;;  %v602_v47 = vsel %vm572_vm4, %v599_v38, %v601_v41 }
  0x33   : > { %239 = vst.msk [vmem:[#allocation2 + $0x181] sm:$0xff] %vm208_vm0, %v203_v3  ;;  %240 = vst.msk [vmem:[#allocation2 + $0x189] sm:$0xff] %vm208_vm0, %v204_v10  ;;  %v427_v46 = vrot.slane %v5151_v43, 1  ;;  %v600_v48 = vsel %vm572_vm4, %v598_v42, %v599_v38  ;;  %v429_v49 = vrot.slane %v313_v44, 1  ;;  %v426_v50 = vrot.slane %v5153_v45, 1  ;;  %v5167_v58 = vld [vmem:[#allocation2 + $0xb0] sm:$0xff] }
  0x34   : > { %282 = vst.msk [vmem:[#allocation2 + $0x10] sm:$0x3] %vm281_vm8, %v278_v4  ;;  %v604_v51 = vrot.slane %v5151_v43, 2  ;;  %v606_v56 = vrot.slane %v313_v44, 2  ;;  %v603_v57 = vrot.slane %v5153_v45, 2  ;;  %v5169_v60 = vld [vmem:[#allocation2 + $0xa8] sm:$0xff] }
  0x35   : > { %v430_v53 = vsel %vm395_vm5, %v427_v46, %v429_v49  ;;  %v428_v55 = vsel %vm395_vm5, %v426_v50, %v427_v46  ;;  %v316_v59 = vld [vmem:[#allocation2 + $0xb8] sm:$0x3]  ;;  %v432_v61 = vrot.slane %v5167_v58, 1  ;;  %v431_v1 = vrot.slane %v5169_v60, 1  ;;  %v5183_v7 = vld [vmem:[#allocation2 + $0xc8] sm:$0xff]  ;;  %v5185_v10 = vld [vmem:[#allocation2 + $0xc0] sm:$0xff] }
  0x36   : > { %667 = vrot.lane.b32.xlu1 %v592_v14, %s4913_s22  ;;  %665 = vrot.lane.b32.xlu0 %v590_v15, %s4913_s22  ;;  %v607_v62 = vsel %vm572_vm4, %v604_v51, %v606_v56  ;;  %v605_v63 = vsel %vm572_vm4, %v603_v57, %v604_v51  ;;  %v434_v0 = vrot.slane %v316_v59, 1  ;;  %v609_v2 = vrot.slane %v5167_v58, 2  ;;  %v319_v8 = vld [vmem:[#allocation2 + $0xd0] sm:$0x3]  ;;  %v5199_v24 = vld [vmem:[#allocation2 + $0xe0] sm:$0xff]  ;;  %v5201_v30 = vld [vmem:[#allocation2 + $0xd8] sm:$0xff] }
  0x37   : > { %v5124_v19 = vld [vmem:[#allocation2 + $0x170] sm:$0xff]  ;;  %v433_v4 = vsel %vm395_vm5, %v431_v1, %v432_v61  ;;  %v611_v5 = vrot.slane %v316_v59, 2  ;;  %v608_v6 = vrot.slane %v5169_v60, 2  ;;  %v437_v11 = vrot.slane %v5183_v7, 1  ;;  %v322_v26 = vld [vmem:[#allocation2 + $0xe8] sm:$0x3] }
  0x38   : > { %v5126_v20 = vld [vmem:[#allocation2 + $0x168] sm:$0xff]  ;;  %289 = vst.msk [vmem:[#allocation2 + $0x1a0] sm:$0xff] %vm208_vm0, %v5124_v19  ;;  %v435_v3 = vsel %vm395_vm5, %v432_v61, %v434_v0  ;;  %v439_v15 = vrot.slane %v319_v8, 1  ;;  %v436_v16 = vrot.slane %v5185_v10, 1  ;;  %v614_v17 = vrot.slane %v5183_v7, 2  ;;  %v814_v33 = vld [vmem:[%s7134_s1] sm:$0xff] }
  0x39   : > { %288 = vst.msk [vmem:[#allocation2 + $0x198] sm:$0xff] %vm208_vm0, %v5126_v20  ;;  %v612_v13 = vsel %vm572_vm4, %v609_v2, %v611_v5  ;;  %v610_v14 = vsel %vm572_vm4, %v608_v6, %v609_v2  ;;  %v613_v23 = vrot.slane %v5185_v10, 2  ;;  %v815_v37 = vld [vmem:[%s7134_s1 + $0x8] sm:$0xf]  ;;  %v619_v42 = vrot.slane %v5199_v24, 2  ;;  %v5226_v49 = vld [vmem:[#allocation2 + $0xf8] sm:$0xff] }
  0x3a   : > { %494 = vrot.lane.b32.xlu1 %v420_v21, %s4914_s23  ;;  %492 = vrot.lane.b32.xlu0 %v418_v22, %s4914_s23  ;;  %v440_v18 = vsel %vm395_vm5, %v437_v11, %v439_v15  ;;  %v438_v21 = vsel %vm395_vm5, %v436_v16, %v437_v11  ;;  %v616_v22 = vrot.slane %v319_v8, 2  ;;  %v5215_v41 = vpack.c.bf16 %v815_v37, %v814_v33  ;;  %v325_v50 = vld [vmem:[#allocation2 + $0x100] sm:$0x3]  ;;  %v5228_v51 = vld [vmem:[#allocation2 + $0xf0] sm:$0xff] }
  0x3b   : > { %v449_v57 = vrot.slane %v325_v50, 1  ;;  %v446_v59 = vrot.slane %v5228_v51, 1  ;;  %v624_v61 = vrot.slane %v5226_v49, 2  ;;  %v626_v0 = vrot.slane %v325_v50, 2  ;;  %v5242_v2 = vld [vmem:[#allocation2 + $0x110] sm:$0xff] }
  0x3c   : > { %v617_v38 = vsel %vm572_vm4, %v614_v17, %v616_v22  ;;  %4733 = vmatprep.subr.msk.bf16.mxu0 %vm5044_vm7, %v5215_v41  ;;  %v623_v1 = vrot.slane %v5228_v51, 2  ;;  %v452_v5 = vrot.slane %v5242_v2, 1  ;;  %v331_v22 = vld [vmem:[#allocation2 + $0x130] sm:$0x3] }
  0x3d   : > { %v627_v6 = vsel %vm572_vm4, %v624_v61, %v626_v0  ;;  %v459_v33 = vrot.slane %v331_v22, 1 }
  0x3e   : > { %671 = vrot.lane.b32.xlu1 %v597_v31, %s4913_s22  ;;  %669 = vrot.lane.b32.xlu0 %v595_v32, %s4913_s22  ;;  %v442_v31 = vrot.slane %v5199_v24, 1  ;;  %v444_v32 = vrot.slane %v322_v26, 1  ;;  %v625_v8 = vsel %vm572_vm4, %v623_v1, %v624_v61  ;;  %v5290_v1 = vld [vmem:[#allocation2 + $0x158] sm:$0xff] }
  0x40   : > { %v445_v44 = vsel %vm395_vm5, %v442_v31, %v444_v32 }
  0x42   : > { %498 = vrot.lane.b32.xlu1 %v425_v39, %s4914_s23  ;;  %496 = vrot.lane.b32.xlu0 %v423_v40, %s4914_s23  ;;  %v615_v39 = vsel %vm572_vm4, %v613_v23, %v614_v17  ;;  %v441_v40 = vrot.slane %v5201_v30, 1  ;;  %v5260_v23 = vld [vmem:[#allocation2 + $0x120] sm:$0xff] }
  0x43   : > { %v456_v37 = vrot.slane %v5260_v23, 1 }
  0x44   : > { %v443_v46 = vsel %vm395_vm5, %v441_v40, %v442_v31 }
  0x46   : > { %675 = vrot.lane.b32.xlu1 %v602_v47, %s4913_s22  ;;  %673 = vrot.lane.b32.xlu0 %v600_v48, %s4913_s22  ;;  %v621_v47 = vrot.slane %v322_v26, 2  ;;  %v618_v48 = vrot.slane %v5201_v30, 2 }
  0x48   : > { %v620_v56 = vsel %vm572_vm4, %v618_v48, %v619_v42  ;;  %v5276_v48 = vld [vmem:[#allocation2 + $0x138] sm:$0xff] }
  0x49   : > { %v638_v0 = vrot.slane %v5276_v48, 2 }
  0x4a   : > { %502 = vrot.lane.b32.xlu1 %v430_v53, %s4914_s23  ;;  %500 = vrot.lane.b32.xlu0 %v428_v55, %s4914_s23  ;;  %v447_v53 = vrot.slane %v5226_v49, 1  ;;  %v622_v55 = vsel %vm572_vm4, %v619_v42, %v621_v47  ;;  %v636_v42 = vrot.slane %v331_v22, 2  ;;  %v334_v47 = vld [vmem:[#allocation2 + $0x148] sm:$0x3] }
  0x4e   : > { %679 = vrot.lane.b32.xlu1 %v607_v62, %s4913_s22  ;;  %677 = vrot.lane.b32.xlu0 %v605_v63, %s4913_s22  ;;  %v450_v62 = vsel %vm395_vm5, %v447_v53, %v449_v57  ;;  %v448_v63 = vsel %vm395_vm5, %v446_v59, %v447_v53  ;;  %v461_v57 = vrot.slane %v5276_v48, 1 }
  0x52   : > { %506 = vrot.lane.b32.xlu1 %v435_v3, %s4914_s23  ;;  %504 = vrot.lane.b32.xlu0 %v433_v4, %s4914_s23  ;;  %v328_v3 = vld [vmem:[#allocation2 + $0x118] sm:$0x3]  ;;  %v5244_v4 = vld [vmem:[#allocation2 + $0x108] sm:$0xff] }
  0x53   : > { %v454_v11 = vrot.slane %v328_v3, 1  ;;  %v631_v17 = vrot.slane %v328_v3, 2  ;;  %v337_v3 = vld [vmem:[#allocation2 + $0x160] sm:$0x3] }
  0x55   : > { %v455_v15 = vsel %vm395_vm5, %v452_v5, %v454_v11 }
  0x56   : > { %683 = vrot.lane.b32.xlu1 %v612_v13, %s4913_s22  ;;  %681 = vrot.lane.b32.xlu0 %v610_v14, %s4913_s22  ;;  %v451_v13 = vrot.slane %v5244_v4, 1  ;;  %v629_v14 = vrot.slane %v5242_v2, 2 }
  0x58   : > { %v453_v16 = vsel %vm395_vm5, %v451_v13, %v452_v5  ;;  %v632_v31 = vsel %vm572_vm4, %v629_v14, %v631_v17  ;;  %v5292_v5 = vld [vmem:[#allocation2 + $0x150] sm:$0xff]  ;;  %v469_v13 = vrot.slane %v337_v3, 1 }
  0x59   : > { %v643_v22 = vrot.slane %v5292_v5, 2 }
  0x5a   : > { %510 = vrot.lane.b32.xlu1 %v440_v18, %s4914_s23  ;;  %508 = vrot.lane.b32.xlu0 %v438_v21, %s4914_s23  ;;  %v628_v18 = vrot.slane %v5244_v4, 2  ;;  %v5258_v21 = vld [vmem:[#allocation2 + $0x128] sm:$0xff] }
  0x5b   : > { %v457_v26 = vrot.slane %v5258_v21, 1 }
  0x5c   : > { %v630_v32 = vsel %vm572_vm4, %v628_v18, %v629_v14  ;;  %v466_v14 = vrot.slane %v5292_v5, 1  ;;  %v646_v18 = vrot.slane %v337_v3, 2 }
  0x5d   : > { %v458_v40 = vsel %vm395_vm5, %v456_v37, %v457_v26 }
  0x5e   : > { %687 = vrot.lane.b32.xlu1 %v617_v38, %s4913_s22  ;;  %685 = vrot.lane.b32.xlu0 %v615_v39, %s4913_s22  ;;  %v634_v38 = vrot.slane %v5258_v21, 2  ;;  %v460_v39 = vsel %vm395_vm5, %v457_v26, %v459_v33  ;;  %v340_v26 = vld [vmem:[#allocation2 + $0x178] sm:$0x3] }
  0x5f   : > { %v474_v37 = vrot.slane %v340_v26, 1 }
  0x60   : > { %v637_v53 = vsel %vm572_vm4, %v634_v38, %v636_v42 }
  0x62   : > { %514 = vrot.lane.b32.xlu1 %v445_v44, %s4914_s23  ;;  %512 = vrot.lane.b32.xlu0 %v443_v46, %s4914_s23  ;;  %v633_v44 = vrot.slane %v5260_v23, 2  ;;  %v5274_v46 = vld [vmem:[#allocation2 + $0x140] sm:$0xff] }
  0x63   : > { %v462_v50 = vrot.slane %v5274_v46, 1  ;;  %v639_v59 = vrot.slane %v5274_v46, 2 }
  0x65   : > { %v640_v11 = vsel %vm572_vm4, %v638_v0, %v639_v59 }
  0x66   : > { %691 = vrot.lane.b32.xlu1 %v622_v55, %s4913_s22  ;;  %689 = vrot.lane.b32.xlu0 %v620_v56, %s4913_s22  ;;  %v635_v55 = vsel %vm572_vm4, %v633_v44, %v634_v38  ;;  %v464_v56 = vrot.slane %v334_v47, 1  ;;  %v471_v38 = vrot.slane %v5126_v20, 1  ;;  %v651_v44 = vrot.slane %v340_v26, 2  ;;  %v5344_v26 = vld [vmem:[#allocation2] sm:$0xff] }
  0x68   : > { %v465_v61 = vsel %vm395_vm5, %v462_v50, %v464_v56  ;;  %v286_v56 = vld [vmem:[#allocation2 + $0x178] sm:$0x3] }
  0x69   : > { %290 = vst.msk [vmem:[#allocation2 + $0x1a8] sm:$0x3] %vm281_vm8, %v286_v56 }
  0x6a   : > { %518 = vrot.lane.b32.xlu1 %v450_v62, %s4914_s23  ;;  %516 = vrot.lane.b32.xlu0 %v448_v63, %s4914_s23  ;;  %v463_v62 = vsel %vm395_vm5, %v461_v57, %v462_v50  ;;  %v641_v63 = vrot.slane %v334_v47, 2  ;;  %v648_v47 = vrot.slane %v5126_v20, 2  ;;  %v5318_v50 = vld [vmem:[#allocation2 + $0x188] sm:$0xff] }
  0x6b   : > { %v820_v57 = vrot.slane %v5318_v50, 1 }
  0x6e   : > { %695 = vrot.lane.b32.xlu1 %v627_v6, %s4913_s22  ;;  %693 = vrot.lane.b32.xlu0 %v625_v8, %s4913_s22  ;;  %v467_v6 = vrot.slane %v5290_v1, 1  ;;  %v642_v8 = vsel %vm572_vm4, %v639_v59, %v641_v63 }
  0x70   : > { %v468_v17 = vsel %vm395_vm5, %v466_v14, %v467_v6 }
  0x72   : > { %522 = vrot.lane.b32.xlu1 %v455_v15, %s4914_s23  ;;  %520 = vrot.lane.b32.xlu0 %v453_v16, %s4914_s23  ;;  %v644_v15 = vrot.slane %v5290_v1, 2  ;;  %v470_v16 = vsel %vm395_vm5, %v467_v6, %v469_v13 }
  0x74   : > { %v645_v33 = vsel %vm572_vm4, %v643_v22, %v644_v15 }
  0x76   : > { %699 = vrot.lane.b32.xlu1 %v632_v31, %s4913_s22  ;;  %697 = vrot.lane.b32.xlu0 %v630_v32, %s4913_s22  ;;  %v472_v31 = vrot.slane %v5124_v19, 1  ;;  %v647_v32 = vsel %vm572_vm4, %v644_v15, %v646_v18 }
  0x78   : > { %v473_v42 = vsel %vm395_vm5, %v471_v38, %v472_v31  ;;  %v4067_v38 = vld [vmem:[%s7134_s1 + $0x20] sm:$0xff] }
  0x7a   : > { %526 = vrot.lane.b32.xlu1 %v460_v39, %s4914_s23  ;;  %524 = vrot.lane.b32.xlu0 %v458_v40, %s4914_s23  ;;  %v649_v39 = vrot.slane %v5124_v19, 2  ;;  %v475_v40 = vsel %vm395_vm5, %v472_v31, %v474_v37 }
  0x7c   : > { %v652_v59 = vsel %vm572_vm4, %v649_v39, %v651_v44 }
  0x7e   : > { %703 = vrot.lane.b32.xlu1 %v637_v53, %s4913_s22  ;;  %701 = vrot.lane.b32.xlu0 %v635_v55, %s4913_s22  ;;  %v343_v53 = vld [vmem:[#allocation2 + $0x190] sm:$0x3]  ;;  %v5320_v55 = vld [vmem:[#allocation2 + $0x180] sm:$0xff] }
  0x7f   : > { %v819_v63 = vrot.slane %v5320_v55, 1  ;;  %v833_v15 = vrot.slane %v343_v53, 2 }
  0x81   : > { %v821_v14 = vsel %vm395_vm5, %v819_v63, %v820_v57 }
  0x82   : > { %530 = vrot.lane.b32.xlu1 %v465_v61, %s4914_s23  ;;  %528 = vrot.lane.b32.xlu0 %v463_v62, %s4914_s23  ;;  %v650_v61 = vsel %vm572_vm4, %v648_v47, %v649_v39  ;;  %v822_v62 = vrot.slane %v343_v53, 1  ;;  %v4068_v39 = vld [vmem:[%s7134_s1 + $0x28] sm:$0xf] }
  0x83   : > { %v5365_v44 = vpack.c.bf16 %v4068_v39, %v4067_v38 }
  0x84   : > { %v823_v13 = vsel %vm395_vm5, %v820_v57, %v822_v62  ;;  %v573_v62 = vrot.slane %v5344_v26, 2 }
  0x86   : > { %707 = vrot.lane.b32.xlu1 %v642_v8, %s4913_s22  ;;  %705 = vrot.lane.b32.xlu0 %v640_v11, %s4913_s22  ;;  %v831_v11 = vrot.slane %v5318_v50, 2 }
  0x8a   : > { %534 = vrot.lane.b32.xlu1 %v470_v16, %s4914_s23  ;;  %532 = vrot.lane.b32.xlu0 %v468_v17, %s4914_s23  ;;  %v830_v16 = vrot.slane %v5320_v55, 2  ;;  %v295_v17 = vld [vmem:[#allocation2 + $0x10] sm:$0x3] }
  0x8b   : > { %v399_v37 = vrot.slane %v295_v17, 1 }
  0x8e   : > { %711 = vrot.lane.b32.xlu1 %v647_v32, %s4913_s22  ;;  %709 = vrot.lane.b32.xlu0 %v645_v33, %s4913_s22 }
  0x92   : > { %538 = vrot.lane.b32.xlu1 %v475_v40, %s4914_s23  ;;  %536 = vrot.lane.b32.xlu0 %v473_v42, %s4914_s23  ;;  %v832_v40 = vsel %vm572_vm4, %v830_v16, %v831_v11  ;;  %v396_v42 = vrot.slane %v5344_v26, 1 }
  0x94   : > { %v658_v0 = vpop.permute.xlu1 %657  ;;  %v481_v3 = vpop.permute.xlu0 %480 }
  0x95   : > { %v751_v6 = vsel %vm208_vm0, %v5025_v27, %v481_v3  ;;  %v5342_v27 = vld [vmem:[#allocation2 + $0x8] sm:$0xff] }
  0x96   : > { %715 = vrot.lane.b32.xlu1 %v652_v59, %s4913_s22  ;;  %713 = vrot.lane.b32.xlu0 %v650_v61, %s4913_s22  ;;  %v5334_v8 = vsel %vm781_vm9, %v751_v6, %v658_v0  ;;  %v397_v33 = vrot.slane %v5342_v27, 1  ;;  %v574_v56 = vrot.slane %v5342_v27, 2  ;;  %v576_v61 = vrot.slane %v295_v17, 2  ;;  %v5383_v6 = vld [vmem:[#allocation2 + $0x198] sm:$0xff] }
  0x97   : > { %4417 = vmatprep.mubr.msk.f32.mxu0 %vm848_vm10, %v5334_v8  ;;  %v1411_v16 = vrot.slane %v5383_v6, 1 }
  0x98   : > { %v660_v18 = vpop.permute.xlu1 %659  ;;  %v483_v22 = vpop.permute.xlu0 %482  ;;  %v400_v57 = vsel %vm395_vm5, %v397_v33, %v399_v37  ;;  %v398_v59 = vsel %vm395_vm5, %v396_v42, %v397_v33  ;;  %v1422_v37 = vrot.slane %v5383_v6, 2 }
  0x99   : > { %v752_v31 = vsel %vm208_vm0, %v5027_v28, %v483_v22  ;;  %v834_v28 = vsel %vm572_vm4, %v831_v11, %v833_v15  ;;  %v5385_v11 = vld [vmem:[#allocation2 + $0x1a0] sm:$0xff]  ;;  %v346_v15 = vld [vmem:[#allocation2 + $0x1a8] sm:$0x3] }
  0x9a   : > { %826 = vrot.lane.b32.xlu1 %v823_v13, %s4914_s23  ;;  %824 = vrot.lane.b32.xlu0 %v821_v14, %s4914_s23  ;;  %v5351_v32 = vsel %vm781_vm9, %v752_v31, %v660_v18  ;;  %v1412_v17 = vrot.slane %v5385_v11, 1  ;;  %v1414_v31 = vrot.slane %v346_v15, 1  ;;  %v1423_v38 = vrot.slane %v5385_v11, 2 }
  0x9b   : > { %4418 = vmatmul.mubr.msk.f32.vlgmr.msra.gmra.mrb[0].mxu0 %vm848_vm10, %v5351_v32 }
  0x9c   : > { %v487_v47 = vpop.permute.xlu1 %486  ;;  %v485_v53 = vpop.permute.xlu0 %484  ;;  %4736 = vmatpush3.bf16.msk.msra.mxu0 %vm5044_vm7, %v5215_v41  ;;  %v1413_v33 = vsel %vm395_vm5, %v1411_v16, %v1412_v17 }
  0x9d   : > { %4739 = vmatprep.subr.msk.bf16.mxu0 %vm5044_vm7, %v5365_v44  ;;  %v754_v41 = vsel %vm208_vm0, %v5039_v34, %v487_v47  ;;  %v753_v63 = vsel %vm208_vm0, %v5041_v35, %v485_v53  ;;  %v577_v34 = vsel %vm572_vm4, %v574_v56, %v576_v61  ;;  %v575_v35 = vsel %vm572_vm4, %v573_v62, %v574_v56 }
  0x9e   : > { %837 = vrot.lane.b32.xlu1 %v834_v28, %s4913_s22  ;;  %835 = vrot.lane.b32.xlu0 %v832_v40, %s4913_s22  ;;  %v1415_v47 = vsel %vm395_vm5, %v1412_v17, %v1414_v31  ;;  %v1425_v53 = vrot.slane %v346_v15, 2 }
  0xa0   : > { %v664_v0 = vpop.permute.xlu1 %663  ;;  %v662_v3 = vpop.permute.xlu0 %661  ;;  %v1426_v61 = vsel %vm572_vm4, %v1423_v38, %v1425_v53 }
  0xa1   : > { %v5388_v13 = vsel %vm781_vm9, %v754_v41, %v664_v0  ;;  %v5391_v14 = vsel %vm781_vm9, %v753_v63, %v662_v3 }
  0xa2   : > { %478 = vrot.lane.b32.xlu1 %v400_v57, %s4914_s23  ;;  %476 = vrot.lane.b32.xlu0 %v398_v59, %s4914_s23 }
  0xa3   : > { %4420 = vmatprep.mubr.msk.f32.mxu0 %vm848_vm10, %v5391_v14 }
  0xa4   : > { %4421 = vmatmul.mubr.msk.f32.gmra.mrb[2].mxu0 %vm848_vm10, %v5388_v13  ;;  %v491_v18 = vpop.permute.xlu1 %490  ;;  %v489_v22 = vpop.permute.xlu0 %488 }
  0xa5   : > { %v756_v39 = vsel %vm208_vm0, %v5070_v52, %v491_v18  ;;  %v755_v28 = vsel %vm208_vm0, %v5072_v54, %v489_v22  ;;  %v1424_v52 = vsel %vm572_vm4, %v1422_v37, %v1423_v38 }
  0xa6   : > { %655 = vrot.lane.b32.xlu1 %v577_v34, %s4913_s22  ;;  %653 = vrot.lane.b32.xlu0 %v575_v35, %s4913_s22 }
  0xa8   : > { %v668_v40 = vpop.permute.xlu1 %667  ;;  %v666_v42 = vpop.permute.xlu0 %665 }
  0xa9   : > { %v5414_v56 = vsel %vm781_vm9, %v756_v39, %v668_v40  ;;  %v5417_v57 = vsel %vm781_vm9, %v755_v28, %v666_v42 }
  0xaa   : > { %4423 = vmatprep.mubr.msk.f32.mxu0 %vm848_vm10, %v5417_v57  ;;  %1416 = vrot.lane.b32.xlu0 %v1413_v33, %s4914_s23 }
  0xab   : > { %4424 = vmatmul.mubr.msk.f32.gmra.mrb[4].mxu0 %vm848_vm10, %v5414_v56  ;;  %1418 = vrot.lane.b32.xlu1 %v1415_v47, %s4914_s23 }
  0xac   : > { %v495_v54 = vpop.permute.xlu1 %494  ;;  %v493_v59 = vpop.permute.xlu0 %492 }
  0xad   : > { %v758_v62 = vsel %vm208_vm0, %v5103_v9, %v495_v54  ;;  %v757_v41 = vsel %vm208_vm0, %v5111_v12, %v493_v59 }
  0xae   : > { %1427 = vrot.lane.b32.xlu0 %v1424_v52, %s4913_s22 }
  0xaf   : > { %1429 = vrot.lane.b32.xlu1 %v1426_v61, %s4913_s22 }
  0xb0   : > { %v672_v63 = vpop.permute.xlu1 %671  ;;  %v670_v0 = vpop.permute.xlu0 %669 }
  0xb1   : > { %v5434_v3 = vsel %vm781_vm9, %v758_v62, %v672_v63  ;;  %v5437_v15 = vsel %vm781_vm9, %v757_v41, %v670_v0 }
  0xb2   : > { %4426 = vmatprep.mubr.msk.f32.mxu0 %vm848_vm10, %v5437_v15 }
  0xb3   : > { %4427 = vmatmul.mubr.msk.f32.gmra.mrb[6].mxu0 %vm848_vm10, %v5434_v3 }
  0xb4   : > { %v499_v34 = vpop.permute.xlu1 %498  ;;  %v497_v35 = vpop.permute.xlu0 %496 }
  0xb5   : > { %v760_v9 = vsel %vm208_vm0, %v5131_v25, %v499_v34  ;;  %v759_v12 = vsel %vm208_vm0, %v5137_v29, %v497_v35 }
  0xb8   : > { %v676_v16 = vpop.permute.xlu1 %675  ;;  %v674_v17 = vpop.permute.xlu0 %673 }
  0xb9   : > { %v5448_v18 = vsel %vm781_vm9, %v760_v9, %v676_v16  ;;  %v5451_v22 = vsel %vm781_vm9, %v759_v12, %v674_v17 }
  0xba   : > { %4429 = vmatprep.mubr.msk.f32.mxu0 %vm848_vm10, %v5451_v22 }
  0xbb   : > { %4430 = vmatmul.mubr.msk.f32.gmra.mrb[8].mxu0 %vm848_vm10, %v5448_v18 }
  0xbc   : > { %v503_v31 = vpop.permute.xlu1 %502  ;;  %v501_v33 = vpop.permute.xlu0 %500 }
  0xbd   : > { %v762_v25 = vsel %vm208_vm0, %v5151_v43, %v503_v31  ;;  %v761_v29 = vsel %vm208_vm0, %v5153_v45, %v501_v33 }
  0xc0   : > { %v680_v37 = vpop.permute.xlu1 %679  ;;  %v678_v38 = vpop.permute.xlu0 %677 }
  0xc1   : > { %v5462_v39 = vsel %vm781_vm9, %v762_v25, %v680_v37  ;;  %v5465_v28 = vsel %vm781_vm9, %v761_v29, %v678_v38 }
  0xc2   : > { %4432 = vmatprep.mubr.msk.f32.mxu0 %vm848_vm10, %v5465_v28 }
  0xc3   : > { %4433 = vmatmul.mubr.msk.f32.gmra.mrb[10].mxu0 %vm848_vm10, %v5462_v39 }
  0xc4   : > { %v507_v40 = vpop.permute.xlu1 %506  ;;  %v505_v42 = vpop.permute.xlu0 %504 }
  0xc5   : > { %v764_v43 = vsel %vm208_vm0, %v5167_v58, %v507_v40  ;;  %v763_v45 = vsel %vm208_vm0, %v5169_v60, %v505_v42 }
  0xc8   : > { %v684_v47 = vpop.permute.xlu1 %683  ;;  %v682_v53 = vpop.permute.xlu0 %681 }
  0xc9   : > { %v5476_v52 = vsel %vm781_vm9, %v764_v43, %v684_v47  ;;  %v5479_v54 = vsel %vm781_vm9, %v763_v45, %v682_v53 }
  0xca   : > { %4435 = vmatprep.mubr.msk.f32.mxu0 %vm848_vm10, %v5479_v54 }
  0xcb   : > { %4436 = vmatmul.mubr.msk.f32.gmra.mrb[12].mxu0 %vm848_vm10, %v5476_v52 }
  0xcc   : > { %v511_v59 = vpop.permute.xlu1 %510  ;;  %v509_v61 = vpop.permute.xlu0 %508 }
  0xcd   : > { %v766_v58 = vsel %vm208_vm0, %v5183_v7, %v511_v59  ;;  %v765_v60 = vsel %vm208_vm0, %v5185_v10, %v509_v61 }
  0xd0   : > { %v688_v62 = vpop.permute.xlu1 %687  ;;  %v686_v41 = vpop.permute.xlu0 %685 }
  0xd1   : > { %v5490_v63 = vsel %vm781_vm9, %v766_v58, %v688_v62  ;;  %v5493_v0 = vsel %vm781_vm9, %v765_v60, %v686_v41 }
  0xd2   : > { %4438 = vmatprep.mubr.msk.f32.mxu0 %vm848_vm10, %v5493_v0 }
  0xd3   : > { %4439 = vmatmul.mubr.msk.f32.gmra.mrb[14].mxu0 %vm848_vm10, %v5490_v63 }
  0xd4   : > { %v515_v34 = vpop.permute.xlu1 %514  ;;  %v513_v35 = vpop.permute.xlu0 %512 }
  0xd5   : > { %v768_v7 = vsel %vm208_vm0, %v5199_v24, %v515_v34  ;;  %v767_v10 = vsel %vm208_vm0, %v5201_v30, %v513_v35 }
  0xd8   : > { %v692_v9 = vpop.permute.xlu1 %691  ;;  %v690_v12 = vpop.permute.xlu0 %689 }
  0xd9   : > { %v5504_v16 = vsel %vm781_vm9, %v768_v7, %v692_v9  ;;  %v5507_v17 = vsel %vm781_vm9, %v767_v10, %v690_v12 }
  0xda   : > { %4441 = vmatprep.mubr.msk.f32.mxu0 %vm848_vm10, %v5507_v17 }
  0xdb   : > { %4442 = vmatmul.mubr.msk.f32.gmra.mrb[16].mxu0 %vm848_vm10, %v5504_v16 }
  0xdc   : > { %v519_v31 = vpop.permute.xlu1 %518  ;;  %v517_v33 = vpop.permute.xlu0 %516 }
  0xdd   : > { %v770_v24 = vsel %vm208_vm0, %v5226_v49, %v519_v31  ;;  %v769_v30 = vsel %vm208_vm0, %v5228_v51, %v517_v33 }
  0xe0   : > { %v696_v25 = vpop.permute.xlu1 %695  ;;  %v694_v29 = vpop.permute.xlu0 %693 }
  0xe1   : > { %v5518_v37 = vsel %vm781_vm9, %v770_v24, %v696_v25  ;;  %v5521_v38 = vsel %vm781_vm9, %v769_v30, %v694_v29 }
  0xe2   : > { %4444 = vmatprep.mubr.msk.f32.mxu0 %vm848_vm10, %v5521_v38 }
  0xe3   : > { %4445 = vmatmul.mubr.msk.f32.gmra.mrb[18].mxu0 %vm848_vm10, %v5518_v37 }
  0xe4   : > { %v523_v40 = vpop.permute.xlu1 %522  ;;  %v521_v42 = vpop.permute.xlu0 %520 }
  0xe5   : > { %v772_v49 = vsel %vm208_vm0, %v5242_v2, %v523_v40  ;;  %v771_v51 = vsel %vm208_vm0, %v5244_v4, %v521_v42 }
  0xe8   : > { %v700_v43 = vpop.permute.xlu1 %699  ;;  %v698_v45 = vpop.permute.xlu0 %697 }
  0xe9   : > { %v5532_v47 = vsel %vm781_vm9, %v772_v49, %v700_v43  ;;  %v5535_v53 = vsel %vm781_vm9, %v771_v51, %v698_v45 }
  0xea   : > { %4447 = vmatprep.mubr.msk.f32.mxu0 %vm848_vm10, %v5535_v53 }
  0xeb   : > { %4448 = vmatmul.mubr.msk.f32.gmra.mrb[20].mxu0 %vm848_vm10, %v5532_v47 }
  0xec   : > { %v527_v59 = vpop.permute.xlu1 %526  ;;  %v525_v61 = vpop.permute.xlu0 %524 }
  0xed   : > { %v774_v2 = vsel %vm208_vm0, %v5258_v21, %v527_v59  ;;  %v773_v4 = vsel %vm208_vm0, %v5260_v23, %v525_v61 }
  0xf0   : > { %v704_v58 = vpop.permute.xlu1 %703  ;;  %v702_v60 = vpop.permute.xlu0 %701 }
  0xf1   : > { %v5546_v62 = vsel %vm781_vm9, %v774_v2, %v704_v58  ;;  %v5549_v41 = vsel %vm781_vm9, %v773_v4, %v702_v60 }
  0xf2   : > { %4450 = vmatprep.mubr.msk.f32.mxu0 %vm848_vm10, %v5549_v41 }
  0xf3   : > { %4451 = vmatmul.mubr.msk.f32.gmra.mrb[22].mxu0 %vm848_vm10, %v5546_v62 }
  0xf4   : > { %v531_v34 = vpop.permute.xlu1 %530  ;;  %v529_v35 = vpop.permute.xlu0 %528 }
  0xf5   : > { %v776_v21 = vsel %vm208_vm0, %v5274_v46, %v531_v34  ;;  %v775_v23 = vsel %vm208_vm0, %v5276_v48, %v529_v35 }
  0xf8   : > { %v708_v7 = vpop.permute.xlu1 %707  ;;  %v706_v10 = vpop.permute.xlu0 %705 }
  0xf9   : > { %v5560_v9 = vsel %vm781_vm9, %v776_v21, %v708_v7  ;;  %v5563_v12 = vsel %vm781_vm9, %v775_v23, %v706_v10 }
  0xfa   : > { %4453 = vmatprep.mubr.msk.f32.mxu0 %vm848_vm10, %v5563_v12 }
  0xfb   : > { %4454 = vmatmul.mubr.msk.f32.gmra.mrb[24].mxu0 %vm848_vm10, %v5560_v9 }
  0xfc   : > { %v535_v31 = vpop.permute.xlu1 %534  ;;  %v533_v33 = vpop.permute.xlu0 %532 }
  0xfd   : > { %v778_v46 = vsel %vm208_vm0, %v5290_v1, %v535_v31  ;;  %v777_v48 = vsel %vm208_vm0, %v5292_v5, %v533_v33 }
 0x100   : > { %v712_v24 = vpop.permute.xlu1 %711  ;;  %v710_v30 = vpop.permute.xlu0 %709 }
 0x101   : > { %v5574_v25 = vsel %vm781_vm9, %v778_v46, %v712_v24  ;;  %v5577_v29 = vsel %vm781_vm9, %v777_v48, %v710_v30 }
 0x102   : > { %4456 = vmatprep.mubr.msk.f32.mxu0 %vm848_vm10, %v5577_v29 }
 0x103   : > { %4457 = vmatmul.mubr.msk.f32.gmra.mrb[26].mxu0 %vm848_vm10, %v5574_v25 }
 0x104   : > { %v539_v40 = vpop.permute.xlu1 %538  ;;  %v537_v42 = vpop.permute.xlu0 %536 }
 0x105   : > { %v780_v1 = vsel %vm208_vm0, %v5124_v19, %v539_v40  ;;  %v779_v5 = vsel %vm208_vm0, %v5126_v20, %v537_v42 }
 0x108   : > { %v716_v49 = vpop.permute.xlu1 %715  ;;  %v714_v51 = vpop.permute.xlu0 %713 }
 0x109   : > { %v5588_v43 = vsel %vm781_vm9, %v780_v1, %v716_v49  ;;  %v5591_v45 = vsel %vm781_vm9, %v779_v5, %v714_v51 }
 0x10a   : > { %4459 = vmatprep.mubr.msk.f32.mxu0 %vm848_vm10, %v5591_v45 }
 0x10b   : > { %4460 = vmatmul.mubr.msk.f32.gmra.mrb[28].mxu0 %vm848_vm10, %v5588_v43 }
 0x10c   : > { %v827_v59 = vpop.permute.xlu1 %826  ;;  %v825_v61 = vpop.permute.xlu0 %824 }
 0x10d   : > { %v842_v19 = vsel %vm208_vm0, %v5318_v50, %v827_v59  ;;  %v841_v20 = vsel %vm208_vm0, %v5320_v55, %v825_v61 }
 0x110   : > { %v838_v2 = vpop.permute.xlu1 %837  ;;  %v836_v4 = vpop.permute.xlu0 %835 }
 0x111   : > { %v5602_v58 = vsel %vm781_vm9, %v842_v19, %v838_v2  ;;  %v5605_v60 = vsel %vm781_vm9, %v841_v20, %v836_v4 }
 0x112   : > { %4462 = vmatprep.mubr.msk.f32.mxu0 %vm848_vm10, %v5605_v60 }
 0x113   : > { %4463 = vmatmul.mubr.msk.f32.gmra.mrb[30].mxu0 %vm848_vm10, %v5602_v58 }
 0x114   : > { %v479_v34 = vpop.permute.xlu1 %478  ;;  %v477_v35 = vpop.permute.xlu0 %476 }
 0x115   : > { %v750_v50 = vsel %vm208_vm0, %v5342_v27, %v479_v34  ;;  %v749_v55 = vsel %vm208_vm0, %v5344_v26, %v477_v35 }
 0x118   : > { %v656_v21 = vpop.permute.xlu1 %655  ;;  %v654_v23 = vpop.permute.xlu0 %653 }
 0x119   : > { %v783_v7 = vsel %vm781_vm9, %v750_v50, %v656_v21  ;;  %v782_v10 = vsel %vm781_vm9, %v749_v55, %v654_v23 }
 0x11a   : > { %4469 = vmatprep.mubr.msk.f32.mxu0 %vm848_vm10, %v782_v10 }
 0x11b   : > { %4470 = vmatmul.mubr.msk.f32.vlgmr.msra.gmra.mrb[0].mxu0 %vm848_vm10, %v783_v7 }
 0x11c   : > { %4742 = vmatpush3.bf16.msk.msra.mxu0 %vm5044_vm7, %v5365_v44  ;;  %4472 = vmatprep.mubr.msk.f32.mxu0 %vm848_vm10, %v5334_v8  ;;  %v1417_v8 = vpop.permute.xlu0 %1416 }
 0x11d   : > { %v1419_v27 = vpop.permute.xlu1 %1418  ;;  %v1433_v26 = vsel %vm208_vm0, %v5383_v6, %v1417_v8 }
 0x11f   : > { %4473 = vmatmul.mubr.msk.f32.gmra.mrb[2].mxu0 %vm848_vm10, %v5351_v32 }
 0x120   : > { %4475 = vmatprep.mubr.msk.f32.mxu0 %vm848_vm10, %v5391_v14  ;;  %v1428_v32 = vpop.permute.xlu0 %1427 }
 0x121   : > { %v1435_v44 = vsel %vm781_vm9, %v1433_v26, %v1428_v32 }
 0x123   : > { %4476 = vmatmul.mubr.msk.f32.gmra.mrb[4].mxu0 %vm848_vm10, %v5388_v13 }
 0x124   : > { %4478 = vmatprep.mubr.msk.f32.mxu0 %vm848_vm10, %v5417_v57 }
 0x127   : > { %4479 = vmatmul.mubr.msk.f32.gmra.mrb[6].mxu0 %vm848_vm10, %v5414_v56 }
 0x128   : > { %4481 = vmatprep.mubr.msk.f32.mxu0 %vm848_vm10, %v5437_v15 }
 0x12b   : > { %4482 = vmatmul.mubr.msk.f32.gmra.mrb[8].mxu0 %vm848_vm10, %v5434_v3 }
 0x12c   : > { %4484 = vmatprep.mubr.msk.f32.mxu0 %vm848_vm10, %v5451_v22 }
 0x12f   : > { %4485 = vmatmul.mubr.msk.f32.gmra.mrb[10].mxu0 %vm848_vm10, %v5448_v18 }
 0x130   : > { %4487 = vmatprep.mubr.msk.f32.mxu0 %vm848_vm10, %v5465_v28 }
 0x133   : > { %4488 = vmatmul.mubr.msk.f32.gmra.mrb[12].mxu0 %vm848_vm10, %v5462_v39 }
 0x134   : > { %4490 = vmatprep.mubr.msk.f32.mxu0 %vm848_vm10, %v5479_v54 }
 0x137   : > { %4491 = vmatmul.mubr.msk.f32.gmra.mrb[14].mxu0 %vm848_vm10, %v5476_v52 }
 0x138   : > { %4493 = vmatprep.mubr.msk.f32.mxu0 %vm848_vm10, %v5493_v0 }
 0x13b   : > { %4494 = vmatmul.mubr.msk.f32.gmra.mrb[16].mxu0 %vm848_vm10, %v5490_v63 }
 0x13c   : > { %4496 = vmatprep.mubr.msk.f32.mxu0 %vm848_vm10, %v5507_v17 }
 0x13f   : > { %4497 = vmatmul.mubr.msk.f32.gmra.mrb[18].mxu0 %vm848_vm10, %v5504_v16 }
 0x140   : > { %4499 = vmatprep.mubr.msk.f32.mxu0 %vm848_vm10, %v5521_v38 }
 0x143   : > { %4500 = vmatmul.mubr.msk.f32.gmra.mrb[20].mxu0 %vm848_vm10, %v5518_v37 }
 0x144   : > { %4502 = vmatprep.mubr.msk.f32.mxu0 %vm848_vm10, %v5535_v53 }
 0x147   : > { %4503 = vmatmul.mubr.msk.f32.gmra.mrb[22].mxu0 %vm848_vm10, %v5532_v47 }
 0x148   : > { %4505 = vmatprep.mubr.msk.f32.mxu0 %vm848_vm10, %v5549_v41 }
 0x14b   : > { %4506 = vmatmul.mubr.msk.f32.gmra.mrb[24].mxu0 %vm848_vm10, %v5546_v62 }
 0x14c   : > { %4508 = vmatprep.mubr.msk.f32.mxu0 %vm848_vm10, %v5563_v12 }
 0x14f   : > { %4509 = vmatmul.mubr.msk.f32.gmra.mrb[26].mxu0 %vm848_vm10, %v5560_v9 }
 0x150   : > { %4511 = vmatprep.mubr.msk.f32.mxu0 %vm848_vm10, %v5577_v29 }
 0x153   : > { %4512 = vmatmul.mubr.msk.f32.gmra.mrb[28].mxu0 %vm848_vm10, %v5574_v25 }
 0x154   : > { %4514 = vmatprep.mubr.msk.f32.mxu0 %vm848_vm10, %v5591_v45 }
 0x157   : > { %4515 = vmatmul.mubr.msk.f32.gmra.mrb[30].mxu0 %vm848_vm10, %v5588_v43 }
 0x158   : > { %4521 = vmatprep.mubr.msk.f32.mxu0 %vm848_vm10, %v5391_v14  ;;  %v1430_v14 = vpop.permute.xlu1 %1429 }
 0x15b   : > { %4522 = vmatmul.mubr.msk.f32.vlgmr.msra.gmra.mrb[0].mxu0 %vm848_vm10, %v5388_v13  ;;  %v1434_v13 = vsel %vm208_vm0, %v5385_v11, %v1419_v27 }
 0x15c   : > { %4524 = vmatprep.mubr.msk.f32.mxu0 %vm848_vm10, %v5417_v57  ;;  %v1436_v6 = vsel %vm781_vm9, %v1434_v13, %v1430_v14 }
 0x15f   : > { %4525 = vmatmul.mubr.msk.f32.gmra.mrb[2].mxu0 %vm848_vm10, %v5414_v56 }
 0x160   : > { %4527 = vmatprep.mubr.msk.f32.mxu0 %vm848_vm10, %v5437_v15 }
 0x163   : > { %4528 = vmatmul.mubr.msk.f32.gmra.mrb[4].mxu0 %vm848_vm10, %v5434_v3 }
 0x164   : > { %4530 = vmatprep.mubr.msk.f32.mxu0 %vm848_vm10, %v5451_v22 }
 0x167   : > { %4531 = vmatmul.mubr.msk.f32.gmra.mrb[6].mxu0 %vm848_vm10, %v5448_v18 }
 0x168   : > { %4533 = vmatprep.mubr.msk.f32.mxu0 %vm848_vm10, %v5465_v28 }
 0x16b   : > { %4534 = vmatmul.mubr.msk.f32.gmra.mrb[8].mxu0 %vm848_vm10, %v5462_v39 }
 0x16c   : > { %4536 = vmatprep.mubr.msk.f32.mxu0 %vm848_vm10, %v5479_v54 }
 0x16f   : > { %4537 = vmatmul.mubr.msk.f32.gmra.mrb[10].mxu0 %vm848_vm10, %v5476_v52 }
 0x170   : > { %4539 = vmatprep.mubr.msk.f32.mxu0 %vm848_vm10, %v5493_v0 }
 0x173   : > { %4540 = vmatmul.mubr.msk.f32.gmra.mrb[12].mxu0 %vm848_vm10, %v5490_v63 }
 0x174   : > { %4542 = vmatprep.mubr.msk.f32.mxu0 %vm848_vm10, %v5507_v17 }
 0x177   : > { %4543 = vmatmul.mubr.msk.f32.gmra.mrb[14].mxu0 %vm848_vm10, %v5504_v16 }
 0x178   : > { %4545 = vmatprep.mubr.msk.f32.mxu0 %vm848_vm10, %v5521_v38 }
 0x17b   : > { %4546 = vmatmul.mubr.msk.f32.gmra.mrb[16].mxu0 %vm848_vm10, %v5518_v37 }
 0x17c   : > { %4548 = vmatprep.mubr.msk.f32.mxu0 %vm848_vm10, %v5535_v53 }
 0x17f   : > { %4549 = vmatmul.mubr.msk.f32.gmra.mrb[18].mxu0 %vm848_vm10, %v5532_v47 }
 0x180   : > { %4551 = vmatprep.mubr.msk.f32.mxu0 %vm848_vm10, %v5549_v41 }
 0x183   : > { %4552 = vmatmul.mubr.msk.f32.gmra.mrb[20].mxu0 %vm848_vm10, %v5546_v62 }
 0x184   : > { %4554 = vmatprep.mubr.msk.f32.mxu0 %vm848_vm10, %v5563_v12 }
 0x187   : > { %4555 = vmatmul.mubr.msk.f32.gmra.mrb[22].mxu0 %vm848_vm10, %v5560_v9 }
 0x188   : > { %4557 = vmatprep.mubr.msk.f32.mxu0 %vm848_vm10, %v5577_v29 }
 0x18b   : > { %4558 = vmatmul.mubr.msk.f32.gmra.mrb[24].mxu0 %vm848_vm10, %v5574_v25 }
 0x18c   : > { %4560 = vmatprep.mubr.msk.f32.mxu0 %vm848_vm10, %v5591_v45 }
 0x18f   : > { %4561 = vmatmul.mubr.msk.f32.gmra.mrb[26].mxu0 %vm848_vm10, %v5588_v43 }
 0x190   : > { %4563 = vmatprep.mubr.msk.f32.mxu0 %vm848_vm10, %v5605_v60 }
 0x193   : > { %4564 = vmatmul.mubr.msk.f32.gmra.mrb[28].mxu0 %vm848_vm10, %v5602_v58 }
 0x194   : > { %4566 = vmatprep.mubr.msk.f32.mxu0 %vm848_vm10, %v1435_v44 }
 0x197   : > { %4567 = vmatmul.mubr.msk.f32.gmra.mrb[30].mxu0 %vm848_vm10, %v1436_v6 }
 0x22e   : > { %v4523_v56 = vpop.f32.mrb[0].mxu0 }
 0x22f   : > { %1708 = vst.msk [vmem:[#allocation3 + $0x8] sm:$0xff] %vm208_vm0, %v4523_v56  ;;  %v1740_v57 = vsel %vm208_vm0, %v4523_v56, 0.0  ;;  %v1810_v3 = vmul.f32 %v4523_v56, %v4523_v56  ;;  %v1515_v15 = vpop.f32.mrb[1].mxu0 }
 0x230   : > { %1707 = vst.msk [vmem:[#allocation3] sm:$0xff] %vm208_vm0, %v1515_v15  ;;  %v1739_v11 = vsel %vm208_vm0, %v1515_v15, 0.0  ;;  %v1809_v18 = vmul.f32 %v1515_v15, %v1515_v15 }
 0x231   : > { %v1842_v22 = vsel %vm208_vm0, %v1810_v3, 0.0  ;;  %v1741_v39 = vadd.f32 %v1740_v57, %v1739_v11 }
 0x232   : > { %v1841_v28 = vsel %vm208_vm0, %v1809_v18, 0.0  ;;  %v4526_v52 = vpop.f32.mrb[2].mxu0 }
 0x233   : > { %v1843_v54 = vadd.f32 %v1842_v22, %v1841_v28  ;;  %1710 = vst.msk [vmem:[#allocation3 + $0x18] sm:$0xff] %vm208_vm0, %v4526_v52  ;;  %v1525_v63 = vpop.f32.mrb[3].mxu0  ;;  %v1812_v0 = vmul.f32 %v4526_v52, %v4526_v52  ;;  %v1744_v38 = vsel %vm208_vm0, %v4526_v52, 0.0 }
 0x234   : > { %1709 = vst.msk [vmem:[#allocation3 + $0x10] sm:$0xff] %vm208_vm0, %v1525_v63  ;;  %v1742_v16 = vsel %vm208_vm0, %v1525_v63, 0.0  ;;  %v1811_v17 = vmul.f32 %v1525_v63, %v1525_v63 }
 0x235   : > { %v1743_v37 = vadd.f32 %v1742_v16, %v1741_v39  ;;  %v1846_v12 = vsel %vm208_vm0, %v1812_v0, 0.0 }
 0x236   : > { %v1844_v47 = vsel %vm208_vm0, %v1811_v17, 0.0  ;;  %v4529_v53 = vpop.f32.mrb[4].mxu0 }
 0x237   : > { %v1845_v62 = vadd.f32 %v1844_v47, %v1843_v54  ;;  %1712 = vst.msk [vmem:[#allocation3 + $0x28] sm:$0xff] %vm208_vm0, %v4529_v53  ;;  %v1535_v41 = vpop.f32.mrb[5].mxu0  ;;  %v1745_v9 = vadd.f32 %v1744_v38, %v1743_v37  ;;  %v1814_v31 = vmul.f32 %v4529_v53, %v4529_v53  ;;  %v1748_v30 = vsel %vm208_vm0, %v4529_v53, 0.0 }
 0x238   : > { %1711 = vst.msk [vmem:[#allocation3 + $0x20] sm:$0xff] %vm208_vm0, %v1535_v41  ;;  %v1746_v33 = vsel %vm208_vm0, %v1535_v41, 0.0  ;;  %v1813_v46 = vmul.f32 %v1535_v41, %v1535_v41 }
 0x239   : > { %v1747_v48 = vadd.f32 %v1746_v33, %v1745_v9  ;;  %v1847_v24 = vadd.f32 %v1846_v12, %v1845_v62  ;;  %v1850_v5 = vsel %vm208_vm0, %v1814_v31, 0.0 }
 0x23a   : > { %v1848_v25 = vsel %vm208_vm0, %v1813_v46, 0.0  ;;  %v4532_v29 = vpop.f32.mrb[6].mxu0 }
 0x23b   : > { %v1849_v40 = vadd.f32 %v1848_v25, %v1847_v24  ;;  %1714 = vst.msk [vmem:[#allocation3 + $0x38] sm:$0xff] %vm208_vm0, %v4532_v29  ;;  %v1545_v42 = vpop.f32.mrb[7].mxu0  ;;  %v1749_v1 = vadd.f32 %v1748_v30, %v1747_v48  ;;  %v1816_v49 = vmul.f32 %v4532_v29, %v4532_v29  ;;  %v1752_v61 = vsel %vm208_vm0, %v4532_v29, 0.0 }
 0x23c   : > { %1713 = vst.msk [vmem:[#allocation3 + $0x30] sm:$0xff] %vm208_vm0, %v1545_v42  ;;  %v1750_v51 = vsel %vm208_vm0, %v1545_v42, 0.0  ;;  %v1815_v43 = vmul.f32 %v1545_v42, %v1545_v42 }
 0x23d   : > { %v1751_v45 = vadd.f32 %v1750_v51, %v1749_v1  ;;  %v1851_v59 = vadd.f32 %v1850_v5, %v1849_v40  ;;  %v1854_v60 = vsel %vm208_vm0, %v1816_v49, 0.0 }
 0x23e   : > { %v1852_v19 = vsel %vm208_vm0, %v1815_v43, 0.0  ;;  %v4535_v20 = vpop.f32.mrb[8].mxu0 }
 0x23f   : > { %v1853_v2 = vadd.f32 %v1852_v19, %v1851_v59  ;;  %1716 = vst.msk [vmem:[#allocation3 + $0x48] sm:$0xff] %vm208_vm0, %v4535_v20  ;;  %v1555_v4 = vpop.f32.mrb[9].mxu0  ;;  %v1753_v58 = vadd.f32 %v1752_v61, %v1751_v45  ;;  %v1818_v34 = vmul.f32 %v4535_v20, %v4535_v20  ;;  %v1756_v23 = vsel %vm208_vm0, %v4535_v20, 0.0 }
 0x240   : > { %1715 = vst.msk [vmem:[#allocation3 + $0x40] sm:$0xff] %vm208_vm0, %v1555_v4  ;;  %v1754_v35 = vsel %vm208_vm0, %v1555_v4, 0.0  ;;  %v1817_v50 = vmul.f32 %v1555_v4, %v1555_v4 }
 0x241   : > { %v1755_v55 = vadd.f32 %v1754_v35, %v1753_v58  ;;  %v1855_v21 = vadd.f32 %v1854_v60, %v1853_v2  ;;  %v1858_v32 = vsel %vm208_vm0, %v1818_v34, 0.0 }
 0x242   : > { %v1856_v7 = vsel %vm208_vm0, %v1817_v50, 0.0  ;;  %v4538_v10 = vpop.f32.mrb[10].mxu0 }
 0x243   : > { %v1857_v8 = vadd.f32 %v1856_v7, %v1855_v21  ;;  %1718 = vst.msk [vmem:[#allocation3 + $0x58] sm:$0xff] %vm208_vm0, %v4538_v10  ;;  %v1565_v27 = vpop.f32.mrb[11].mxu0  ;;  %v1757_v26 = vadd.f32 %v1756_v23, %v1755_v55  ;;  %v1820_v44 = vmul.f32 %v4538_v10, %v4538_v10  ;;  %v1760_v57 = vsel %vm208_vm0, %v4538_v10, 0.0 }
 0x244   : > { %1717 = vst.msk [vmem:[#allocation3 + $0x50] sm:$0xff] %vm208_vm0, %v1565_v27  ;;  %v1758_v13 = vsel %vm208_vm0, %v1565_v27, 0.0  ;;  %v1819_v14 = vmul.f32 %v1565_v27, %v1565_v27 }
 0x245   : > { %v1759_v6 = vadd.f32 %v1758_v13, %v1757_v26  ;;  %v1859_v56 = vadd.f32 %v1858_v32, %v1857_v8  ;;  %v1862_v39 = vsel %vm208_vm0, %v1820_v44, 0.0 }
 0x246   : > { %v1860_v3 = vsel %vm208_vm0, %v1819_v14, 0.0  ;;  %v4541_v15 = vpop.f32.mrb[12].mxu0 }
 0x247   : > { %v1861_v11 = vadd.f32 %v1860_v3, %v1859_v56  ;;  %1720 = vst.msk [vmem:[#allocation3 + $0x68] sm:$0xff] %vm208_vm0, %v4541_v15  ;;  %v1575_v18 = vpop.f32.mrb[13].mxu0  ;;  %v1761_v22 = vadd.f32 %v1760_v57, %v1759_v6  ;;  %v1822_v28 = vmul.f32 %v4541_v15, %v4541_v15  ;;  %v1764_v16 = vsel %vm208_vm0, %v4541_v15, 0.0 }
 0x248   : > { %1719 = vst.msk [vmem:[#allocation3 + $0x60] sm:$0xff] %vm208_vm0, %v1575_v18  ;;  %v1762_v52 = vsel %vm208_vm0, %v1575_v18, 0.0  ;;  %v1821_v54 = vmul.f32 %v1575_v18, %v1575_v18 }
 0x249   : > { %v1763_v63 = vadd.f32 %v1762_v52, %v1761_v22  ;;  %v1863_v0 = vadd.f32 %v1862_v39, %v1861_v11  ;;  %v1866_v62 = vsel %vm208_vm0, %v1822_v28, 0.0 }
 0x24a   : > { %v1864_v17 = vsel %vm208_vm0, %v1821_v54, 0.0  ;;  %v4544_v37 = vpop.f32.mrb[14].mxu0 }
 0x24b   : > { %v1865_v38 = vadd.f32 %v1864_v17, %v1863_v0  ;;  %1722 = vst.msk [vmem:[#allocation3 + $0x78] sm:$0xff] %vm208_vm0, %v4544_v37  ;;  %v1585_v47 = vpop.f32.mrb[15].mxu0  ;;  %v1765_v53 = vadd.f32 %v1764_v16, %v1763_v63  ;;  %v1824_v41 = vmul.f32 %v4544_v37, %v4544_v37  ;;  %v1768_v46 = vsel %vm208_vm0, %v4544_v37, 0.0 }
 0x24c   : > { %1721 = vst.msk [vmem:[#allocation3 + $0x70] sm:$0xff] %vm208_vm0, %v1585_v47  ;;  %v1766_v9 = vsel %vm208_vm0, %v1585_v47, 0.0  ;;  %v1823_v12 = vmul.f32 %v1585_v47, %v1585_v47 }
 0x24d   : > { %v1767_v31 = vadd.f32 %v1766_v9, %v1765_v53  ;;  %v1867_v33 = vadd.f32 %v1866_v62, %v1865_v38  ;;  %v1870_v40 = vsel %vm208_vm0, %v1824_v41, 0.0 }
 0x24e   : > { %v1868_v48 = vsel %vm208_vm0, %v1823_v12, 0.0  ;;  %v4547_v24 = vpop.f32.mrb[16].mxu0 }
 0x24f   : > { %v1869_v30 = vadd.f32 %v1868_v48, %v1867_v33  ;;  %1724 = vst.msk [vmem:[#allocation3 + $0x88] sm:$0xff] %vm208_vm0, %v4547_v24  ;;  %v1595_v25 = vpop.f32.mrb[17].mxu0  ;;  %v1769_v29 = vadd.f32 %v1768_v46, %v1767_v31  ;;  %v1826_v42 = vmul.f32 %v4547_v24, %v4547_v24  ;;  %v1772_v43 = vsel %vm208_vm0, %v4547_v24, 0.0 }
 0x250   : > { %1723 = vst.msk [vmem:[#allocation3 + $0x80] sm:$0xff] %vm208_vm0, %v1595_v25  ;;  %v1770_v1 = vsel %vm208_vm0, %v1595_v25, 0.0  ;;  %v1825_v5 = vmul.f32 %v1595_v25, %v1595_v25 }
 0x251   : > { %v1771_v49 = vadd.f32 %v1770_v1, %v1769_v29  ;;  %v1871_v51 = vadd.f32 %v1870_v40, %v1869_v30  ;;  %v1874_v2 = vsel %vm208_vm0, %v1826_v42, 0.0 }
 0x252   : > { %v1872_v45 = vsel %vm208_vm0, %v1825_v5, 0.0  ;;  %v4550_v59 = vpop.f32.mrb[18].mxu0 }
 0x253   : > { %v1873_v61 = vadd.f32 %v1872_v45, %v1871_v51  ;;  %1726 = vst.msk [vmem:[#allocation3 + $0x98] sm:$0xff] %vm208_vm0, %v4550_v59  ;;  %v1605_v19 = vpop.f32.mrb[19].mxu0  ;;  %v1773_v20 = vadd.f32 %v1772_v43, %v1771_v49  ;;  %v1828_v4 = vmul.f32 %v4550_v59, %v4550_v59  ;;  %v1776_v50 = vsel %vm208_vm0, %v4550_v59, 0.0 }
 0x254   : > { %1725 = vst.msk [vmem:[#allocation3 + $0x90] sm:$0xff] %vm208_vm0, %v1605_v19  ;;  %v1774_v58 = vsel %vm208_vm0, %v1605_v19, 0.0  ;;  %v1827_v60 = vmul.f32 %v1605_v19, %v1605_v19 }
 0x255   : > { %v1775_v34 = vadd.f32 %v1774_v58, %v1773_v20  ;;  %v1875_v35 = vadd.f32 %v1874_v2, %v1873_v61  ;;  %v1878_v8 = vsel %vm208_vm0, %v1828_v4, 0.0 }
 0x256   : > { %v1876_v55 = vsel %vm208_vm0, %v1827_v60, 0.0  ;;  %v4553_v21 = vpop.f32.mrb[20].mxu0 }
 0x257   : > { %v1877_v23 = vadd.f32 %v1876_v55, %v1875_v35  ;;  %1728 = vst.msk [vmem:[#allocation3 + $0xa8] sm:$0xff] %vm208_vm0, %v4553_v21  ;;  %v1615_v7 = vpop.f32.mrb[21].mxu0  ;;  %v1777_v10 = vadd.f32 %v1776_v50, %v1775_v34  ;;  %v1830_v27 = vmul.f32 %v4553_v21, %v4553_v21  ;;  %v1780_v14 = vsel %vm208_vm0, %v4553_v21, 0.0 }
 0x258   : > { %1727 = vst.msk [vmem:[#allocation3 + $0xa0] sm:$0xff] %vm208_vm0, %v1615_v7  ;;  %v1778_v26 = vsel %vm208_vm0, %v1615_v7, 0.0  ;;  %v1829_v32 = vmul.f32 %v1615_v7, %v1615_v7 }
 0x259   : > { %v1779_v44 = vadd.f32 %v1778_v26, %v1777_v10  ;;  %v1879_v13 = vadd.f32 %v1878_v8, %v1877_v23  ;;  %v1882_v11 = vsel %vm208_vm0, %v1830_v27, 0.0 }
 0x25a   : > { %v1880_v6 = vsel %vm208_vm0, %v1829_v32, 0.0  ;;  %v4556_v56 = vpop.f32.mrb[22].mxu0 }
 0x25b   : > { %v1881_v57 = vadd.f32 %v1880_v6, %v1879_v13  ;;  %1730 = vst.msk [vmem:[#allocation3 + $0xb8] sm:$0xff] %vm208_vm0, %v4556_v56  ;;  %v1625_v3 = vpop.f32.mrb[23].mxu0  ;;  %v1781_v15 = vadd.f32 %v1780_v14, %v1779_v44  ;;  %v1832_v18 = vmul.f32 %v4556_v56, %v4556_v56  ;;  %v1784_v54 = vsel %vm208_vm0, %v4556_v56, 0.0 }
 0x25c   : > { %1729 = vst.msk [vmem:[#allocation3 + $0xb0] sm:$0xff] %vm208_vm0, %v1625_v3  ;;  %v1782_v22 = vsel %vm208_vm0, %v1625_v3, 0.0  ;;  %v1831_v39 = vmul.f32 %v1625_v3, %v1625_v3 }
 0x25d   : > { %v1783_v28 = vadd.f32 %v1782_v22, %v1781_v15  ;;  %v1883_v52 = vadd.f32 %v1882_v11, %v1881_v57  ;;  %v1886_v38 = vsel %vm208_vm0, %v1832_v18, 0.0 }
 0x25e   : > { %v1884_v63 = vsel %vm208_vm0, %v1831_v39, 0.0  ;;  %v4559_v0 = vpop.f32.mrb[24].mxu0 }
 0x25f   : > { %v1885_v16 = vadd.f32 %v1884_v63, %v1883_v52  ;;  %1732 = vst.msk [vmem:[#allocation3 + $0xc8] sm:$0xff] %vm208_vm0, %v4559_v0  ;;  %v1635_v17 = vpop.f32.mrb[25].mxu0  ;;  %v1785_v37 = vadd.f32 %v1784_v54, %v1783_v28  ;;  %v1834_v47 = vmul.f32 %v4559_v0, %v4559_v0  ;;  %v1788_v12 = vsel %vm208_vm0, %v4559_v0, 0.0 }
 0x260   : > { %1731 = vst.msk [vmem:[#allocation3 + $0xc0] sm:$0xff] %vm208_vm0, %v1635_v17  ;;  %v1786_v53 = vsel %vm208_vm0, %v1635_v17, 0.0  ;;  %v1833_v62 = vmul.f32 %v1635_v17, %v1635_v17 }
 0x261   : > { %v1787_v41 = vadd.f32 %v1786_v53, %v1785_v37  ;;  %v1887_v9 = vadd.f32 %v1886_v38, %v1885_v16  ;;  %v1890_v30 = vsel %vm208_vm0, %v1834_v47, 0.0 }
 0x262   : > { %v1888_v31 = vsel %vm208_vm0, %v1833_v62, 0.0  ;;  %v4562_v33 = vpop.f32.mrb[26].mxu0  ;;  %v5850_v62 = vld [vmem:[#allocation3 + $0x8] sm:$0xff] }
 0x263   : > { %v1889_v46 = vadd.f32 %v1888_v31, %v1887_v9  ;;  %1734 = vst.msk [vmem:[#allocation3 + $0xd8] sm:$0xff] %vm208_vm0, %v4562_v33  ;;  %v1645_v48 = vpop.f32.mrb[27].mxu0  ;;  %v1789_v24 = vadd.f32 %v1788_v12, %v1787_v41  ;;  %v1836_v25 = vmul.f32 %v4562_v33, %v4562_v33  ;;  %v1792_v5 = vsel %vm208_vm0, %v4562_v33, 0.0  ;;  %v5852_v41 = vld [vmem:[#allocation3] sm:$0xff]  ;;  %v5854_v9 = vld [vmem:[#allocation3 + $0x10] sm:$0xff]  ;;  %v5856_v12 = vld [vmem:[#allocation3 + $0x18] sm:$0xff] }
 0x264   : > { %1733 = vst.msk [vmem:[#allocation3 + $0xd0] sm:$0xff] %vm208_vm0, %v1645_v48  ;;  %v1790_v29 = vsel %vm208_vm0, %v1645_v48, 0.0  ;;  %v1835_v40 = vmul.f32 %v1645_v48, %v1645_v48  ;;  %v5858_v31 = vld [vmem:[#allocation3 + $0x28] sm:$0xff]  ;;  %v5860_v33 = vld [vmem:[#allocation3 + $0x20] sm:$0xff]  ;;  %v5864_v48 = vld [vmem:[#allocation3 + $0x38] sm:$0xff] }
 0x265   : > { %v1791_v42 = vadd.f32 %v1790_v29, %v1789_v24  ;;  %v1891_v1 = vadd.f32 %v1890_v30, %v1889_v46  ;;  %v1894_v61 = vsel %vm208_vm0, %v1836_v25, 0.0  ;;  %v5862_v46 = vld [vmem:[#allocation3 + $0x30] sm:$0xff]  ;;  %v5866_v24 = vld [vmem:[#allocation3 + $0x48] sm:$0xff]  ;;  %v5868_v30 = vld [vmem:[#allocation3 + $0x40] sm:$0xff] }
 0x266   : > { %v1892_v49 = vsel %vm208_vm0, %v1835_v40, 0.0  ;;  %v4565_v51 = vpop.f32.mrb[28].mxu0  ;;  %v5870_v29 = vld [vmem:[#allocation3 + $0x58] sm:$0xff]  ;;  %v5872_v40 = vld [vmem:[#allocation3 + $0x50] sm:$0xff] }
 0x267   : > { %v1893_v43 = vadd.f32 %v1892_v49, %v1891_v1  ;;  %1736 = vst.msk [vmem:[#allocation3 + $0xe8] sm:$0xff] %vm208_vm0, %v4565_v51  ;;  %v1655_v45 = vpop.f32.mrb[29].mxu0  ;;  %v1793_v59 = vadd.f32 %v1792_v5, %v1791_v42  ;;  %v1838_v19 = vmul.f32 %v4565_v51, %v4565_v51  ;;  %v1796_v60 = vsel %vm208_vm0, %v4565_v51, 0.0  ;;  %v5874_v42 = vld [vmem:[#allocation3 + $0x68] sm:$0xff] }
 0x268   : > { %1735 = vst.msk [vmem:[#allocation3 + $0xe0] sm:$0xff] %vm208_vm0, %v1655_v45  ;;  %v1794_v20 = vsel %vm208_vm0, %v1655_v45, 0.0  ;;  %v1837_v2 = vmul.f32 %v1655_v45, %v1655_v45  ;;  %v5885_v45 = vld [vmem:[#allocation3 + $0x78] sm:$0xff] }
 0x269   : > { %v1795_v4 = vadd.f32 %v1794_v20, %v1793_v59  ;;  %v1895_v58 = vadd.f32 %v1894_v61, %v1893_v43  ;;  %v1898_v23 = vsel %vm208_vm0, %v1838_v19, 0.0  ;;  %v5883_v43 = vld [vmem:[#allocation3 + $0x60] sm:$0xff]  ;;  %v5887_v59 = vld [vmem:[#allocation3 + $0x70] sm:$0xff] }
 0x26a   : > { %v1896_v34 = vsel %vm208_vm0, %v1837_v2, 0.0  ;;  %v4568_v35 = vpop.f32.mrb[30].mxu0 }
 0x26b   : > { %v1897_v50 = vadd.f32 %v1896_v34, %v1895_v58  ;;  %1738 = vst.msk [vmem:[#allocation3 + $0xf8] sm:$0xff] %vm208_vm0, %v4568_v35  ;;  %v1665_v55 = vpop.f32.mrb[31].mxu0  ;;  %v1797_v21 = vadd.f32 %v1796_v60, %v1795_v4  ;;  %v1840_v7 = vmul.f32 %v4568_v35, %v4568_v35  ;;  %v1800_v32 = vsel %vm208_vm0, %v4568_v35, 0.0  ;;  %v5897_v4 = vld [vmem:[#allocation3 + $0x88] sm:$0xff]  ;;  %v5899_v58 = vld [vmem:[#allocation3 + $0x80] sm:$0xff]  ;;  %v5901_v60 = vld [vmem:[#allocation3 + $0x98] sm:$0xff] }
 0x26c   : > { %1737 = vst.msk [vmem:[#allocation3 + $0xf0] sm:$0xff] %vm208_vm0, %v1665_v55  ;;  %v1798_v10 = vsel %vm208_vm0, %v1665_v55, 0.0  ;;  %v1839_v8 = vmul.f32 %v1665_v55, %v1665_v55 }
 0x26d   : > { %v1799_v27 = vadd.f32 %v1798_v10, %v1797_v21  ;;  %v1899_v26 = vadd.f32 %v1898_v23, %v1897_v50  ;;  %v1902_v6 = vsel %vm208_vm0, %v1840_v7, 0.0  ;;  %v1936_v21 = vld [vmem:[#allocation3 + $0x90] sm:$0xff]  ;;  %v5911_v23 = vld [vmem:[#allocation3 + $0xa8] sm:$0xff]  ;;  %v1938_v7 = vld [vmem:[#allocation3 + $0xa0] sm:$0xff] }
 0x26e   : > { %v1900_v44 = vsel %vm208_vm0, %v1839_v8, 0.0 }
 0x26f   : > { %v1801_v13 = vadd.f32 %v1800_v32, %v1799_v27  ;;  %v1901_v14 = vadd.f32 %v1900_v44, %v1899_v26  ;;  %v1941_v32 = vld [vmem:[#allocation3 + $0xb8] sm:$0xff]  ;;  %v1940_v44 = vld [vmem:[#allocation3 + $0xb0] sm:$0xff] }
 0x271   : > { %v1802_v56 = vrot.slane %v1801_v13, 4  ;;  %v1903_v57 = vadd.f32 %v1902_v6, %v1901_v14 }
 0x273   : > { %v1803_v3 = vadd.f32 %v1802_v56, %v1801_v13  ;;  %v1904_v15 = vrot.slane %v1903_v57, 4  ;;  %v1948_v25 = vld [vmem:[#allocation3 + $0xf0] sm:$0xff]  ;;  %v1943_v13 = vld [vmem:[#allocation3 + $0xc8] sm:$0xff] }
 0x275   : > { %v1804_v11 = vrot.slane %v1803_v3, 2  ;;  %v1905_v18 = vadd.f32 %v1904_v15, %v1903_v57  ;;  %v1945_v15 = vld [vmem:[#allocation3 + $0xd8] sm:$0xff] }
 0x277   : > { %v1805_v22 = vadd.f32 %v1804_v11, %v1803_v3  ;;  %v1906_v39 = vrot.slane %v1905_v18, 2  ;;  %v1942_v3 = vld [vmem:[#allocation3 + $0xc0] sm:$0xff]  ;;  %v1944_v11 = vld [vmem:[#allocation3 + $0xd0] sm:$0xff] }
 0x279   : > { %v1806_v28 = vrot.slane %v1805_v22, 1  ;;  %v1907_v52 = vadd.f32 %v1906_v39, %v1905_v18 }
 0x27b   : > { %v1807_v54 = vadd.f32 %v1806_v28, %v1805_v22  ;;  %v1908_v63 = vrot.slane %v1907_v52, 1 }
 0x27d   : > { %v1909_v0 = vadd.f32 %v1908_v63, %v1907_v52  ;;  %v5846_v16 = vmul.f32 0.00390625, %v1807_v54  ;;  %v1947_v52 = vld [vmem:[#allocation3 + $0xe8] sm:$0xff]  ;;  %v1946_v54 = vld [vmem:[#allocation3 + $0xe0] sm:$0xff]  ;;  %v1949_v63 = vld [vmem:[#allocation3 + $0xf8] sm:$0xff] }
 0x27f   : > { %v1912_v17 = vmul.f32 0.00390625, %v1909_v0  ;;  %v1913_v37 = vmul.f32 %v5846_v16, %v5846_v16  ;;  %v1980_v1 = vsub.f32 %v1948_v25, %v5846_v16  ;;  %v1950_v5 = vsub.f32 %v5852_v41, %v5846_v16 }
 0x280   : > { %v1951_v49 = vsub.f32 %v5850_v62, %v5846_v16  ;;  %v1952_v51 = vsub.f32 %v5854_v9, %v5846_v16  ;;  %v1953_v61 = vsub.f32 %v5856_v12, %v5846_v16  ;;  %v1954_v19 = vsub.f32 %v5860_v33, %v5846_v16 }
 0x281   : > { %v1914_v38 = vsub.f32 %v1912_v17, %v1913_v37  ;;  %v1955_v20 = vsub.f32 %v5858_v31, %v5846_v16  ;;  %v1956_v2 = vsub.f32 %v5862_v46, %v5846_v16  ;;  %v1957_v34 = vsub.f32 %v5864_v48, %v5846_v16 }
 0x282   : > { %v1958_v35 = vsub.f32 %v5868_v30, %v5846_v16  ;;  %v1959_v50 = vsub.f32 %v5866_v24, %v5846_v16  ;;  %v1960_v55 = vsub.f32 %v5872_v40, %v5846_v16  ;;  %v1961_v10 = vsub.f32 %v5870_v29, %v5846_v16 }
 0x283   : > { %v1915_v47 = vmax.f32 %v1914_v38, 0.0  ;;  %v1962_v8 = vsub.f32 %v5883_v43, %v5846_v16  ;;  %v1963_v27 = vsub.f32 %v5874_v42, %v5846_v16  ;;  %v1964_v26 = vsub.f32 %v5887_v59, %v5846_v16 }
 0x284   : > { %v1965_v14 = vsub.f32 %v5885_v45, %v5846_v16  ;;  %v1966_v6 = vsub.f32 %v5899_v58, %v5846_v16  ;;  %v1967_v56 = vsub.f32 %v5897_v4, %v5846_v16  ;;  %v1968_v57 = vsub.f32 %v1936_v21, %v5846_v16 }
 0x285   : > { %v1916_v53 = vadd.f32 1e-05, %v1915_v47  ;;  %v1969_v18 = vsub.f32 %v5901_v60, %v5846_v16  ;;  %v1970_v22 = vsub.f32 %v1938_v7, %v5846_v16  ;;  %v1971_v39 = vsub.f32 %v5911_v23, %v5846_v16 }
 0x286   : > { %v1972_v28 = vsub.f32 %v1940_v44, %v5846_v16  ;;  %v1973_v0 = vsub.f32 %v1941_v32, %v5846_v16  ;;  %v1974_v17 = vsub.f32 %v1942_v3, %v5846_v16  ;;  %v1975_v37 = vsub.f32 %v1943_v13, %v5846_v16  ;;  %v4103_v32 = vld [vmem:[%s7135_s2 + $0x18] sm:$0xf] }
 0x287   : > { %4900 = vrsqrt.f32 %v1916_v53  ;;  %v1976_v38 = vsub.f32 %v1944_v11, %v5846_v16  ;;  %v1977_v53 = vsub.f32 %v1945_v15, %v5846_v16  ;;  %v1978_v62 = vsub.f32 %v1946_v54, %v5846_v16 }
 0x288   : > { %v1979_v41 = vsub.f32 %v1947_v52, %v5846_v16  ;;  %v1981_v9 = vsub.f32 %v1949_v63, %v5846_v16 }
 0x291   : > { %v4901_v47 = vpop.eup %4900 }
 0x292   : > { %v2012_v12 = vmul.f32 %v4901_v47, %v1980_v1  ;;  %v1982_v31 = vmul.f32 %v4901_v47, %v1950_v5  ;;  %v1983_v33 = vmul.f32 %v4901_v47, %v1951_v49  ;;  %v1984_v46 = vmul.f32 %v4901_v47, %v1952_v51 }
 0x293   : > { %v1985_v48 = vmul.f32 %v4901_v47, %v1953_v61  ;;  %v1986_v24 = vmul.f32 %v4901_v47, %v1954_v19  ;;  %v1987_v30 = vmul.f32 %v4901_v47, %v1955_v20  ;;  %v1988_v25 = vmul.f32 %v4901_v47, %v1956_v2 }
 0x294   : > { %v2044_v29 = vmax.f32 %v2012_v12, 0.0  ;;  %v2014_v40 = vmax.f32 %v1982_v31, 0.0  ;;  %v2015_v42 = vmax.f32 %v1983_v33, 0.0  ;;  %v5942_v43 = vmul.f32 %v4901_v47, %v1957_v34 }
 0x295   : > { %v5944_v45 = vmul.f32 %v4901_v47, %v1958_v35  ;;  %v5946_v59 = vmul.f32 %v4901_v47, %v1959_v50  ;;  %v5948_v4 = vmul.f32 %v4901_v47, %v1960_v55  ;;  %v5950_v16 = vmul.f32 %v4901_v47, %v1961_v10 }
 0x296   : > { %2076 = vst.msk [vmem:[#allocation2 + $0x181] sm:$0xff] %vm208_vm0, %v2044_v29  ;;  %2046 = vst.msk [vmem:[#allocation2 + $0x19] sm:$0xff] %vm208_vm0, %v2014_v40  ;;  %v5957_v1 = vmul.f32 %v4901_v47, %v1962_v8  ;;  %v5959_v5 = vmul.f32 %v4901_v47, %v1963_v27  ;;  %v5961_v49 = vmul.f32 %v4901_v47, %v1964_v26  ;;  %v2016_v27 = vmax.f32 %v1984_v46, 0.0  ;;  %v4102_v26 = vld [vmem:[%s7135_s2 + $0x10] sm:$0xff] }
 0x297   : > { %2093 = vst.msk [vmem:[#allocation2 + $0x17f] sm:$0x2] %vm241_vm1, %v2044_v29  ;;  %v5963_v51 = vmul.f32 %v4901_v47, %v1965_v14  ;;  %2078 = vst.msk [vmem:[#allocation2 + $0x17] sm:$0x2] %vm241_vm1, %v2014_v40  ;;  %v5966_v61 = vmul.f32 %v4901_v47, %v1966_v6  ;;  %v5968_v19 = vmul.f32 %v4901_v47, %v1967_v56  ;;  %v2017_v44 = vmax.f32 %v1985_v48, 0.0 }
 0x298   : > { %2047 = vst.msk [vmem:[#allocation2 + $0x21] sm:$0xff] %vm208_vm0, %v2015_v42  ;;  %v5970_v20 = vmul.f32 %v4901_v47, %v1968_v57  ;;  %v5972_v2 = vmul.f32 %v4901_v47, %v1969_v18  ;;  %v5974_v58 = vmul.f32 %v4901_v47, %v1970_v22  ;;  %v5976_v60 = vmul.f32 %v4901_v47, %v1971_v39 }
 0x299   : > { %2094 = vst.msk [vmem:[#allocation2 + $0x23] sm:$0x40] %vm258_vm2, %v2015_v42  ;;  %v5978_v34 = vmul.f32 %v4901_v47, %v1972_v28  ;;  %v5980_v35 = vmul.f32 %v4901_v47, %v1973_v0  ;;  %v5982_v50 = vmul.f32 %v4901_v47, %v1974_v17  ;;  %v5984_v55 = vmul.f32 %v4901_v47, %v1975_v37 }
 0x29a   : > { %v5986_v21 = vmul.f32 %v4901_v47, %v1976_v38  ;;  %v5988_v23 = vmul.f32 %v4901_v47, %v1977_v53  ;;  %v5990_v7 = vmul.f32 %v4901_v47, %v1978_v62  ;;  %v5992_v10 = vmul.f32 %v4901_v47, %v1979_v41  ;;  %2048 = vst.msk [vmem:[#allocation2 + $0x31] sm:$0xff] %vm208_vm0, %v2016_v27 }
 0x29b   : > { %v5994_v8 = vmul.f32 %v4901_v47, %v1981_v9  ;;  %v2018_v13 = vmax.f32 %v1986_v24, 0.0  ;;  %v2019_v14 = vmax.f32 %v1987_v30, 0.0  ;;  %v2020_v6 = vmax.f32 %v1988_v25, 0.0  ;;  %2079 = vst.msk [vmem:[#allocation2 + $0x2f] sm:$0x2] %vm241_vm1, %v2016_v27 }
 0x29c   : > { %v2021_v56 = vmax.f32 %v5942_v43, 0.0  ;;  %v2022_v57 = vmax.f32 %v5944_v45, 0.0  ;;  %v2023_v3 = vmax.f32 %v5946_v59, 0.0  ;;  %v2024_v15 = vmax.f32 %v5948_v4, 0.0  ;;  %2049 = vst.msk [vmem:[#allocation2 + $0x39] sm:$0xff] %vm208_vm0, %v2017_v44 }
 0x29d   : > { %v2025_v39 = vmax.f32 %v5950_v16, 0.0  ;;  %v2026_v28 = vmax.f32 %v5957_v1, 0.0  ;;  %2050 = vst.msk [vmem:[#allocation2 + $0x49] sm:$0xff] %vm208_vm0, %v2018_v13  ;;  %2051 = vst.msk [vmem:[#allocation2 + $0x51] sm:$0xff] %vm208_vm0, %v2019_v14  ;;  %v4743_v52 = vpack.c.bf16 %v4103_v32, %v4102_v26  ;;  %v2027_v17 = vmax.f32 %v5959_v5, 0.0 }
 0x29e   : > { %v6012_v22 = vld [vmem:[#allocation2 + $0x18] sm:$0xff]  ;;  %2052 = vst.msk [vmem:[#allocation2 + $0x61] sm:$0xff] %vm208_vm0, %v2020_v6  ;;  %2053 = vst.msk [vmem:[#allocation2 + $0x69] sm:$0xff] %vm208_vm0, %v2021_v56  ;;  %v2028_v37 = vmax.f32 %v5961_v49, 0.0  ;;  %v2029_v38 = vmax.f32 %v5963_v51, 0.0  ;;  %v2030_v47 = vmax.f32 %v5966_v61, 0.0 }
 0x29f   : > { %v6008_v11 = vld [vmem:[#allocation2 + $0x20] sm:$0xff]  ;;  %2080 = vst.msk [vmem:[#allocation2 + $0x47] sm:$0x2] %vm241_vm1, %v2018_v13  ;;  %2081 = vst.msk [vmem:[#allocation2 + $0x5f] sm:$0x2] %vm241_vm1, %v2020_v6  ;;  %v2229_v0 = vrot.slane %v6012_v22, 1  ;;  %4745 = vmatprep.subr.msk.bf16.mxu1 %vm5044_vm7, %v4743_v52 }
 0x2a0   : > { %v6010_v18 = vld [vmem:[#allocation2 + $0x28] sm:$0x3]  ;;  %2095 = vst.msk [vmem:[#allocation2 + $0x3b] sm:$0x40] %vm258_vm2, %v2017_v44  ;;  %2096 = vst.msk [vmem:[#allocation2 + $0x53] sm:$0x40] %vm258_vm2, %v2019_v14  ;;  %4748 = vmatpush3.bf16.msk.msra.mxu1 %vm5044_vm7, %v4743_v52 }
 0x2a1   : > { %v2230_v54 = vrot.slane %v6008_v11, 1  ;;  %v2232_v63 = vrot.slane %v6010_v18, 1  ;;  %2054 = vst.msk [vmem:[#allocation2 + $0x79] sm:$0xff] %vm208_vm0, %v2022_v57  ;;  %2055 = vst.msk [vmem:[#allocation2 + $0x81] sm:$0xff] %vm208_vm0, %v2023_v3  ;;  %v2031_v53 = vmax.f32 %v5968_v19, 0.0  ;;  %v2032_v9 = vmax.f32 %v5970_v20, 0.0 }
 0x2a2   : > { %2056 = vst.msk [vmem:[#allocation2 + $0x91] sm:$0xff] %vm208_vm0, %v2024_v15  ;;  %2057 = vst.msk [vmem:[#allocation2 + $0x99] sm:$0xff] %vm208_vm0, %v2025_v39  ;;  %v2033_v12 = vmax.f32 %v5972_v2, 0.0  ;;  %v2034_v31 = vmax.f32 %v5974_v58, 0.0  ;;  %v2035_v33 = vmax.f32 %v5976_v60, 0.0  ;;  %v2036_v46 = vmax.f32 %v5978_v34, 0.0 }
 0x2a3   : > { %2082 = vst.msk [vmem:[#allocation2 + $0x77] sm:$0x2] %vm241_vm1, %v2022_v57  ;;  %2083 = vst.msk [vmem:[#allocation2 + $0x8f] sm:$0x2] %vm241_vm1, %v2024_v15  ;;  %v2233_v62 = vsel %vm395_vm5, %v2230_v54, %v2232_v63  ;;  %v2231_v41 = vsel %vm395_vm5, %v2229_v0, %v2230_v54  ;;  %v2037_v48 = vmax.f32 %v5980_v35, 0.0  ;;  %v2038_v24 = vmax.f32 %v5982_v50, 0.0 }
 0x2a4   : > { %2097 = vst.msk [vmem:[#allocation2 + $0x6b] sm:$0x40] %vm258_vm2, %v2021_v56  ;;  %2098 = vst.msk [vmem:[#allocation2 + $0x83] sm:$0x40] %vm258_vm2, %v2023_v3  ;;  %2310 = vrot.lane.b32.xlu1 %v2233_v62, %s4914_s23  ;;  %2308 = vrot.lane.b32.xlu0 %v2231_v41, %s4914_s23  ;;  %v2039_v30 = vmax.f32 %v5984_v55, 0.0  ;;  %v2040_v25 = vmax.f32 %v5986_v21, 0.0 }
 0x2a5   : > { %2058 = vst.msk [vmem:[#allocation2 + $0xa9] sm:$0xff] %vm208_vm0, %v2026_v28  ;;  %2059 = vst.msk [vmem:[#allocation2 + $0xb1] sm:$0xff] %vm208_vm0, %v2027_v17  ;;  %v2041_v29 = vmax.f32 %v5988_v23, 0.0  ;;  %v2042_v40 = vmax.f32 %v5990_v7, 0.0  ;;  %v2043_v42 = vmax.f32 %v5992_v10, 0.0  ;;  %v2045_v43 = vmax.f32 %v5994_v8, 0.0 }
 0x2a6   : > { %2084 = vst.msk [vmem:[#allocation2 + $0xa7] sm:$0x2] %vm241_vm1, %v2026_v28  ;;  %2085 = vst.msk [vmem:[#allocation2 + $0xbf] sm:$0x2] %vm241_vm1, %v2028_v37  ;;  %v2406_v45 = vrot.slane %v6008_v11, 2  ;;  %v6088_v59 = vld [vmem:[#allocation2 + $0x30] sm:$0xff] }
 0x2a7   : > { %2099 = vst.msk [vmem:[#allocation2 + $0x9b] sm:$0x40] %vm258_vm2, %v2025_v39  ;;  %2100 = vst.msk [vmem:[#allocation2 + $0xb3] sm:$0x40] %vm258_vm2, %v2027_v17  ;;  %v2408_v4 = vrot.slane %v6010_v18, 2  ;;  %v2405_v16 = vrot.slane %v6012_v22, 2 }
 0x2a8   : > { %2060 = vst.msk [vmem:[#allocation2 + $0xc1] sm:$0xff] %vm208_vm0, %v2028_v37  ;;  %2061 = vst.msk [vmem:[#allocation2 + $0xc9] sm:$0xff] %vm208_vm0, %v2029_v38  ;;  %v6100_v1 = vld [vmem:[#allocation2 + $0x38] sm:$0xff]  ;;  %v2130_v5 = vld [vmem:[#allocation2 + $0x40] sm:$0x3]  ;;  %v2234_v49 = vrot.slane %v6088_v59, 1 }
 0x2a9   : > { %2062 = vst.msk [vmem:[#allocation2 + $0xd9] sm:$0xff] %vm208_vm0, %v2030_v47  ;;  %2063 = vst.msk [vmem:[#allocation2 + $0xe1] sm:$0xff] %vm208_vm0, %v2031_v53  ;;  %v2409_v51 = vsel %vm572_vm4, %v2406_v45, %v2408_v4  ;;  %v2407_v61 = vsel %vm572_vm4, %v2405_v16, %v2406_v45  ;;  %v2235_v19 = vrot.slane %v6100_v1, 1  ;;  %v2237_v20 = vrot.slane %v2130_v5, 1  ;;  %v6122_v50 = vld [vmem:[#allocation2 + $0x50] sm:$0xff]  ;;  %v6126_v21 = vld [vmem:[#allocation2 + $0x48] sm:$0xff] }
 0x2aa   : > { %2086 = vst.msk [vmem:[#allocation2 + $0xd7] sm:$0x2] %vm241_vm1, %v2030_v47  ;;  %2087 = vst.msk [vmem:[#allocation2 + $0xef] sm:$0x2] %vm241_vm1, %v2032_v9  ;;  %2486 = vrot.lane.b32.xlu1 %v2409_v51, %s4913_s22  ;;  %2484 = vrot.lane.b32.xlu0 %v2407_v61, %s4913_s22  ;;  %v2411_v2 = vrot.slane %v6100_v1, 2  ;;  %v2413_v34 = vrot.slane %v2130_v5, 2 }
 0x2ab   : > { %2101 = vst.msk [vmem:[#allocation2 + $0xcb] sm:$0x40] %vm258_vm2, %v2029_v38  ;;  %2102 = vst.msk [vmem:[#allocation2 + $0xe3] sm:$0x40] %vm258_vm2, %v2031_v53  ;;  %v2238_v58 = vsel %vm395_vm5, %v2235_v19, %v2237_v20  ;;  %v2236_v60 = vsel %vm395_vm5, %v2234_v49, %v2235_v19  ;;  %v2410_v35 = vrot.slane %v6088_v59, 2  ;;  %v2240_v23 = vrot.slane %v6122_v50, 1 }
 0x2ac   : > { %2064 = vst.msk [vmem:[#allocation2 + $0xf1] sm:$0xff] %vm208_vm0, %v2032_v9  ;;  %2065 = vst.msk [vmem:[#allocation2 + $0xf9] sm:$0xff] %vm208_vm0, %v2033_v12  ;;  %v2133_v55 = vld [vmem:[#allocation2 + $0x58] sm:$0x3]  ;;  %v2414_v7 = vsel %vm572_vm4, %v2411_v2, %v2413_v34  ;;  %v2239_v27 = vrot.slane %v6126_v21, 1  ;;  %v2416_v26 = vrot.slane %v6122_v50, 2 }
 0x2ad   : > { %2103 = vst.msk [vmem:[#allocation2 + $0xfb] sm:$0x40] %vm258_vm2, %v2033_v12  ;;  %2104 = vst.msk [vmem:[#allocation2 + $0x113] sm:$0x40] %vm258_vm2, %v2035_v33  ;;  %v2412_v10 = vsel %vm572_vm4, %v2410_v35, %v2411_v2  ;;  %v2242_v8 = vrot.slane %v2133_v55, 1  ;;  %v2418_v13 = vrot.slane %v2133_v55, 2 }
 0x2ae   : > { %2066 = vst.msk [vmem:[#allocation2 + $0x109] sm:$0xff] %vm208_vm0, %v2034_v31  ;;  %2067 = vst.msk [vmem:[#allocation2 + $0x111] sm:$0xff] %vm208_vm0, %v2035_v33  ;;  %2314 = vrot.lane.b32.xlu1 %v2238_v58, %s4914_s23  ;;  %2312 = vrot.lane.b32.xlu0 %v2236_v60, %s4914_s23  ;;  %v2241_v44 = vsel %vm395_vm5, %v2239_v27, %v2240_v23  ;;  %v2415_v14 = vrot.slane %v6126_v21, 2  ;;  %v6138_v6 = vld [vmem:[#allocation2 + $0x68] sm:$0xff]  ;;  %v2136_v3 = vld [vmem:[#allocation2 + $0x70] sm:$0x3] }
 0x2af   : > { %2068 = vst.msk [vmem:[#allocation2 + $0x121] sm:$0xff] %vm208_vm0, %v2036_v46  ;;  %2069 = vst.msk [vmem:[#allocation2 + $0x129] sm:$0xff] %vm208_vm0, %v2037_v48  ;;  %v2243_v32 = vsel %vm395_vm5, %v2240_v23, %v2242_v8  ;;  %v6146_v15 = vld [vmem:[#allocation2 + $0x60] sm:$0xff]  ;;  %v2245_v18 = vrot.slane %v6138_v6, 1  ;;  %v2419_v28 = vsel %vm572_vm4, %v2416_v26, %v2418_v13  ;;  %v2247_v54 = vrot.slane %v2136_v3, 1  ;;  %v6168_v9 = vld [vmem:[#allocation2 + $0x78] sm:$0xff] }
 0x2b0   : > { %2088 = vst.msk [vmem:[#allocation2 + $0x107] sm:$0x2] %vm241_vm1, %v2034_v31  ;;  %2089 = vst.msk [vmem:[#allocation2 + $0x11f] sm:$0x2] %vm241_vm1, %v2036_v46  ;;  %v2112_v39 = vld [vmem:[#allocation2 + $0x40] sm:$0x3]  ;;  %v2417_v52 = vsel %vm572_vm4, %v2415_v14, %v2416_v26 }
 0x2b1   : > { %2105 = vst.msk [vmem:[#allocation2 + $0x12b] sm:$0x40] %vm258_vm2, %v2037_v48  ;;  %2106 = vst.msk [vmem:[#allocation2 + $0x143] sm:$0x40] %vm258_vm2, %v2039_v30  ;;  %v2244_v63 = vrot.slane %v6146_v15, 1  ;;  %v2421_v17 = vrot.slane %v6138_v6, 2  ;;  %v2248_v37 = vsel %vm395_vm5, %v2245_v18, %v2247_v54 }
 0x2b2   : > { %2070 = vst.msk [vmem:[#allocation2 + $0x139] sm:$0xff] %vm208_vm0, %v2038_v24  ;;  %2071 = vst.msk [vmem:[#allocation2 + $0x141] sm:$0xff] %vm208_vm0, %v2039_v30  ;;  %2490 = vrot.lane.b32.xlu1 %v2414_v7, %s4913_s22  ;;  %2488 = vrot.lane.b32.xlu0 %v2412_v10, %s4913_s22  ;;  %v2423_v47 = vrot.slane %v2136_v3, 2  ;;  %v2420_v53 = vrot.slane %v6146_v15, 2  ;;  %v6164_v62 = vld [vmem:[#allocation2 + $0x80] sm:$0xff]  ;;  %v2249_v48 = vrot.slane %v6168_v9, 1 }
 0x2b3   : > { %2072 = vst.msk [vmem:[#allocation2 + $0x151] sm:$0xff] %vm208_vm0, %v2040_v25  ;;  %2073 = vst.msk [vmem:[#allocation2 + $0x159] sm:$0xff] %vm208_vm0, %v2041_v29  ;;  %v2246_v38 = vsel %vm395_vm5, %v2244_v63, %v2245_v18  ;;  %v2139_v41 = vld [vmem:[#allocation2 + $0x88] sm:$0x3]  ;;  %v2250_v12 = vrot.slane %v6164_v62, 1  ;;  %v6184_v45 = vld [vmem:[#allocation2 + $0x90] sm:$0xff] }
 0x2b4   : > { %2090 = vst.msk [vmem:[#allocation2 + $0x137] sm:$0x2] %vm241_vm1, %v2038_v24  ;;  %2091 = vst.msk [vmem:[#allocation2 + $0x14f] sm:$0x2] %vm241_vm1, %v2040_v25  ;;  %v2424_v31 = vsel %vm572_vm4, %v2421_v17, %v2423_v47  ;;  %v2422_v33 = vsel %vm572_vm4, %v2420_v53, %v2421_v17  ;;  %v2252_v46 = vrot.slane %v2139_v41, 1  ;;  %v2426_v24 = vrot.slane %v6164_v62, 2 }
 0x2b5   : > { %2107 = vst.msk [vmem:[#allocation2 + $0x15b] sm:$0x40] %vm258_vm2, %v2041_v29  ;;  %2108 = vst.msk [vmem:[#allocation2 + $0x173] sm:$0x40] %vm258_vm2, %v2043_v42  ;;  %v2251_v25 = vsel %vm395_vm5, %v2249_v48, %v2250_v12  ;;  %v2428_v29 = vrot.slane %v2139_v41, 2  ;;  %v2254_v51 = vrot.slane %v6184_v45, 1 }
 0x2b6   : > { %2113 = vst.msk [vmem:[#allocation2] sm:$0xff] %vm208_vm0, %v6088_v59  ;;  %2074 = vst.msk [vmem:[#allocation2 + $0x169] sm:$0xff] %vm208_vm0, %v2042_v40  ;;  %2318 = vrot.lane.b32.xlu1 %v2243_v32, %s4914_s23  ;;  %2316 = vrot.lane.b32.xlu0 %v2241_v44, %s4914_s23  ;;  %v2253_v30 = vsel %vm395_vm5, %v2250_v12, %v2252_v46  ;;  %v2430_v58 = vrot.slane %v6184_v45, 2  ;;  %v6196_v60 = vld [vmem:[#allocation2 + $0xb0] sm:$0xff]  ;;  %v2145_v34 = vld [vmem:[#allocation2 + $0xb8] sm:$0x3] }
 0x2b7   : > { %2075 = vst.msk [vmem:[#allocation2 + $0x171] sm:$0xff] %vm208_vm0, %v2043_v42  ;;  %2077 = vst.msk [vmem:[#allocation2 + $0x189] sm:$0xff] %vm208_vm0, %v2045_v43  ;;  %v6180_v42 = vld [vmem:[#allocation2 + $0x98] sm:$0xff]  ;;  %v2429_v16 = vsel %vm572_vm4, %v2426_v24, %v2428_v29  ;;  %v6200_v35 = vld [vmem:[#allocation2 + $0xa8] sm:$0xff]  ;;  %v2260_v55 = vrot.slane %v6196_v60, 1  ;;  %v2262_v10 = vrot.slane %v2145_v34, 1 }
 0x2b8   : > { %2092 = vst.msk [vmem:[#allocation2 + $0x167] sm:$0x2] %vm241_vm1, %v2042_v40  ;;  %v2425_v40 = vrot.slane %v6168_v9, 2  ;;  %v2255_v4 = vrot.slane %v6180_v42, 1  ;;  %v2431_v61 = vrot.slane %v6180_v42, 2  ;;  %v2259_v8 = vrot.slane %v6200_v35, 1 }
 0x2b9   : > { %2109 = vst.msk [vmem:[#allocation2 + $0x18b] sm:$0x40] %vm258_vm2, %v2045_v43  ;;  %v2142_v43 = vld [vmem:[#allocation2 + $0xa0] sm:$0x3]  ;;  %v2436_v27 = vrot.slane %v6196_v60, 2  ;;  %v2263_v26 = vsel %vm395_vm5, %v2260_v55, %v2262_v10  ;;  %v2438_v44 = vrot.slane %v2145_v34, 2 }
 0x2ba   : > { %2114 = vst.msk [vmem:[#allocation2 + $0x8] sm:$0xff] %vm208_vm0, %v6100_v1  ;;  %2494 = vrot.lane.b32.xlu1 %v2419_v28, %s4913_s22  ;;  %2492 = vrot.lane.b32.xlu0 %v2417_v52, %s4913_s22  ;;  %v2427_v5 = vsel %vm572_vm4, %v2425_v40, %v2426_v24  ;;  %v2257_v49 = vrot.slane %v2142_v43, 1  ;;  %v2256_v20 = vsel %vm395_vm5, %v2254_v51, %v2255_v4  ;;  %v2433_v2 = vrot.slane %v2142_v43, 2  ;;  %v6212_v14 = vld [vmem:[#allocation2 + $0xc8] sm:$0xff]  ;;  %v2148_v3 = vld [vmem:[#allocation2 + $0xd0] sm:$0x3] }
 0x2bb   : > { %2115 = vst.msk [vmem:[#allocation2 + $0x10] sm:$0x3] %vm281_vm8, %v2112_v39  ;;  %v2432_v7 = vsel %vm572_vm4, %v2430_v58, %v2431_v61  ;;  %v2261_v32 = vsel %vm395_vm5, %v2259_v8, %v2260_v55  ;;  %v2435_v13 = vrot.slane %v6200_v35, 2  ;;  %v6216_v18 = vld [vmem:[#allocation2 + $0xc0] sm:$0xff]  ;;  %v2265_v39 = vrot.slane %v6212_v14, 1  ;;  %v6232_v12 = vld [vmem:[#allocation2 + $0xd8] sm:$0xff] }
 0x2bc   : > { %v2258_v19 = vsel %vm395_vm5, %v2255_v4, %v2257_v49  ;;  %v2434_v23 = vsel %vm572_vm4, %v2431_v61, %v2433_v2  ;;  %v2439_v28 = vsel %vm572_vm4, %v2436_v27, %v2438_v44  ;;  %v2267_v54 = vrot.slane %v2148_v3, 1  ;;  %v6228_v53 = vld [vmem:[#allocation2 + $0xe0] sm:$0xff]  ;;  %v2151_v41 = vld [vmem:[#allocation2 + $0xe8] sm:$0x3]  ;;  %v6255_v49 = vld [vmem:[#allocation2 + $0xf8] sm:$0xff] }
 0x2bd   : > { %v2437_v52 = vsel %vm572_vm4, %v2435_v13, %v2436_v27  ;;  %v2264_v63 = vrot.slane %v6216_v18, 1  ;;  %v2440_v47 = vrot.slane %v6216_v18, 2  ;;  %v2270_v48 = vrot.slane %v6228_v53, 1  ;;  %v2154_v51 = vld [vmem:[#allocation2 + $0x100] sm:$0x3]  ;;  %v6259_v61 = vld [vmem:[#allocation2 + $0xf0] sm:$0xff] }
 0x2be   : > { %v6140_v56 = vld [vmem:[#allocation2 + $0x170] sm:$0xff]  ;;  %v2118_v0 = vld [vmem:[#allocation2 + $0x178] sm:$0x3]  ;;  %2322 = vrot.lane.b32.xlu1 %v2248_v37, %s4914_s23  ;;  %2320 = vrot.lane.b32.xlu0 %v2246_v38, %s4914_s23  ;;  %v2268_v17 = vsel %vm395_vm5, %v2265_v39, %v2267_v54  ;;  %v2443_v38 = vrot.slane %v2148_v3, 2  ;;  %v2269_v29 = vrot.slane %v6232_v12, 1  ;;  %v2446_v40 = vrot.slane %v6228_v53, 2 }
 0x2bf   : > { %v6142_v57 = vld [vmem:[#allocation2 + $0x168] sm:$0xff]  ;;  %2120 = vst.msk [vmem:[#allocation2 + $0x1a0] sm:$0xff] %vm208_vm0, %v6140_v56  ;;  %v2266_v37 = vsel %vm395_vm5, %v2264_v63, %v2265_v39  ;;  %v2277_v58 = vrot.slane %v2154_v51, 1  ;;  %v2274_v34 = vrot.slane %v6259_v61, 1  ;;  %v2451_v55 = vrot.slane %v6255_v49, 2  ;;  %v6271_v27 = vld [vmem:[#allocation2 + $0x110] sm:$0xff] }
 0x2c0   : > { %2119 = vst.msk [vmem:[#allocation2 + $0x198] sm:$0xff] %vm208_vm0, %v6142_v57  ;;  %v2271_v4 = vsel %vm395_vm5, %v2269_v29, %v2270_v48  ;;  %v2453_v10 = vrot.slane %v2154_v51, 2  ;;  %v2450_v8 = vrot.slane %v6259_v61, 2  ;;  %v2280_v44 = vrot.slane %v6271_v27, 1 }
 0x2c1   : > { %2121 = vst.msk [vmem:[#allocation2 + $0x1a8] sm:$0x3] %vm281_vm8, %v2118_v0  ;;  %v2441_v0 = vrot.slane %v6212_v14, 2 }
 0x2c2   : > { %2498 = vrot.lane.b32.xlu1 %v2424_v31, %s4913_s22  ;;  %2496 = vrot.lane.b32.xlu0 %v2422_v33, %s4913_s22  ;;  %v2640_v31 = vld [vmem:[%s7135_s2] sm:$0xff]  ;;  %v2641_v33 = vld [vmem:[%s7135_s2 + $0x8] sm:$0xf]  ;;  %v2454_v13 = vsel %vm572_vm4, %v2451_v55, %v2453_v10  ;;  %v2452_v3 = vsel %vm572_vm4, %v2450_v8, %v2451_v55  ;;  %v6319_v8 = vld [vmem:[#allocation2 + $0x158] sm:$0xff] }
 0x2c3   : > { %v6240_v46 = vpack.c.bf16 %v2641_v33, %v2640_v31  ;;  %v2444_v24 = vsel %vm572_vm4, %v2441_v0, %v2443_v38  ;;  %v2160_v38 = vld [vmem:[#allocation2 + $0x130] sm:$0x3] }
 0x2c5   : > { %4751 = vmatprep.subr.msk.bf16.mxu1 %vm5044_vm7, %v6240_v46 }
 0x2c6   : > { %2326 = vrot.lane.b32.xlu1 %v2253_v30, %s4914_s23  ;;  %2324 = vrot.lane.b32.xlu0 %v2251_v25, %s4914_s23  ;;  %v2442_v30 = vsel %vm572_vm4, %v2440_v47, %v2441_v0  ;;  %v2272_v25 = vrot.slane %v2151_v41, 1  ;;  %v6291_v47 = vld [vmem:[#allocation2 + $0x120] sm:$0xff] }
 0x2c8   : > { %v2273_v43 = vsel %vm395_vm5, %v2270_v48, %v2272_v25  ;;  %v2287_v48 = vrot.slane %v2160_v38, 1 }
 0x2ca   : > { %2502 = vrot.lane.b32.xlu1 %v2429_v16, %s4913_s22  ;;  %2500 = vrot.lane.b32.xlu0 %v2427_v5, %s4913_s22  ;;  %v2448_v16 = vrot.slane %v2151_v41, 2  ;;  %v2445_v5 = vrot.slane %v6232_v12, 2 }
 0x2cc   : > { %v2447_v2 = vsel %vm572_vm4, %v2445_v5, %v2446_v40  ;;  %v6307_v5 = vld [vmem:[#allocation2 + $0x138] sm:$0xff] }
 0x2cd   : > { %v2465_v10 = vrot.slane %v6307_v5, 2 }
 0x2ce   : > { %2330 = vrot.lane.b32.xlu1 %v2258_v19, %s4914_s23  ;;  %2328 = vrot.lane.b32.xlu0 %v2256_v20, %s4914_s23  ;;  %v2275_v19 = vrot.slane %v6255_v49, 1  ;;  %v2449_v20 = vsel %vm572_vm4, %v2446_v40, %v2448_v16  ;;  %v2463_v40 = vrot.slane %v2160_v38, 2  ;;  %v2163_v16 = vld [vmem:[#allocation2 + $0x148] sm:$0x3] }
 0x2d2   : > { %2506 = vrot.lane.b32.xlu1 %v2434_v23, %s4913_s22  ;;  %2504 = vrot.lane.b32.xlu0 %v2432_v7, %s4913_s22  ;;  %v2278_v23 = vsel %vm395_vm5, %v2275_v19, %v2277_v58  ;;  %v2276_v7 = vsel %vm395_vm5, %v2274_v34, %v2275_v19  ;;  %v2289_v58 = vrot.slane %v6307_v5, 1 }
 0x2d6   : > { %2334 = vrot.lane.b32.xlu1 %v2263_v26, %s4914_s23  ;;  %2332 = vrot.lane.b32.xlu0 %v2261_v32, %s4914_s23  ;;  %v2157_v26 = vld [vmem:[#allocation2 + $0x118] sm:$0x3]  ;;  %v6275_v32 = vld [vmem:[#allocation2 + $0x108] sm:$0xff] }
 0x2d7   : > { %v2282_v39 = vrot.slane %v2157_v26, 1  ;;  %v2458_v0 = vrot.slane %v2157_v26, 2  ;;  %v2166_v26 = vld [vmem:[#allocation2 + $0x160] sm:$0x3] }
 0x2d9   : > { %v2283_v54 = vsel %vm395_vm5, %v2280_v44, %v2282_v39 }
 0x2da   : > { %2510 = vrot.lane.b32.xlu1 %v2439_v28, %s4913_s22  ;;  %2508 = vrot.lane.b32.xlu0 %v2437_v52, %s4913_s22  ;;  %v2279_v28 = vrot.slane %v6275_v32, 1  ;;  %v2456_v52 = vrot.slane %v6271_v27, 2 }
 0x2dc   : > { %v2281_v63 = vsel %vm395_vm5, %v2279_v28, %v2280_v44  ;;  %v2459_v31 = vsel %vm572_vm4, %v2456_v52, %v2458_v0  ;;  %v6323_v44 = vld [vmem:[#allocation2 + $0x150] sm:$0xff]  ;;  %v2297_v28 = vrot.slane %v2166_v26, 1 }
 0x2dd   : > { %v2470_v38 = vrot.slane %v6323_v44, 2 }
 0x2de   : > { %2338 = vrot.lane.b32.xlu1 %v2268_v17, %s4914_s23  ;;  %2336 = vrot.lane.b32.xlu0 %v2266_v37, %s4914_s23  ;;  %v2455_v17 = vrot.slane %v6275_v32, 2  ;;  %v6287_v37 = vld [vmem:[#allocation2 + $0x128] sm:$0xff] }
 0x2df   : > { %v2285_v41 = vrot.slane %v6287_v37, 1 }
 0x2e0   : > { %v2457_v33 = vsel %vm572_vm4, %v2455_v17, %v2456_v52  ;;  %v2294_v52 = vrot.slane %v6323_v44, 1  ;;  %v2473_v17 = vrot.slane %v2166_v26, 2 }
 0x2e1   : > { %v2288_v25 = vsel %vm395_vm5, %v2285_v41, %v2287_v48 }
 0x2e2   : > { %2514 = vrot.lane.b32.xlu1 %v2444_v24, %s4913_s22  ;;  %2512 = vrot.lane.b32.xlu0 %v2442_v30, %s4913_s22  ;;  %v2284_v24 = vrot.slane %v6291_v47, 1  ;;  %v2461_v30 = vrot.slane %v6287_v37, 2 }
 0x2e4   : > { %v2286_v29 = vsel %vm395_vm5, %v2284_v24, %v2285_v41  ;;  %v2464_v19 = vsel %vm572_vm4, %v2461_v30, %v2463_v40  ;;  %v2169_v41 = vld [vmem:[#allocation2 + $0x178] sm:$0x3] }
 0x2e5   : > { %v2302_v24 = vrot.slane %v2169_v41, 1 }
 0x2e6   : > { %2342 = vrot.lane.b32.xlu1 %v2273_v43, %s4914_s23  ;;  %2340 = vrot.lane.b32.xlu0 %v2271_v4, %s4914_s23  ;;  %v2460_v43 = vrot.slane %v6291_v47, 2  ;;  %v6303_v4 = vld [vmem:[#allocation2 + $0x140] sm:$0xff] }
 0x2e7   : > { %v2290_v51 = vrot.slane %v6303_v4, 1  ;;  %v2466_v34 = vrot.slane %v6303_v4, 2 }
 0x2e9   : > { %v2467_v39 = vsel %vm572_vm4, %v2465_v10, %v2466_v34 }
 0x2ea   : > { %2518 = vrot.lane.b32.xlu1 %v2449_v20, %s4913_s22  ;;  %2516 = vrot.lane.b32.xlu0 %v2447_v2, %s4913_s22  ;;  %v2462_v20 = vsel %vm572_vm4, %v2460_v43, %v2461_v30  ;;  %v2292_v2 = vrot.slane %v2163_v16, 1  ;;  %v2299_v30 = vrot.slane %v6142_v57, 1  ;;  %v2478_v43 = vrot.slane %v2169_v41, 2  ;;  %v6381_v41 = vld [vmem:[#allocation2] sm:$0xff] }
 0x2ec   : > { %v2293_v55 = vsel %vm395_vm5, %v2290_v51, %v2292_v2  ;;  %v2172_v2 = vld [vmem:[#allocation2 + $0x190] sm:$0x3] }
 0x2ee   : > { %2346 = vrot.lane.b32.xlu1 %v2278_v23, %s4914_s23  ;;  %2344 = vrot.lane.b32.xlu0 %v2276_v7, %s4914_s23  ;;  %v2291_v23 = vsel %vm395_vm5, %v2289_v58, %v2290_v51  ;;  %v2468_v7 = vrot.slane %v2163_v16, 2  ;;  %v2475_v16 = vrot.slane %v6142_v57, 2  ;;  %v6351_v58 = vld [vmem:[#allocation2 + $0x180] sm:$0xff] }
 0x2ef   : > { %v2645_v10 = vrot.slane %v6351_v58, 1 }
 0x2f2   : > { %2522 = vrot.lane.b32.xlu1 %v2454_v13, %s4913_s22  ;;  %2520 = vrot.lane.b32.xlu0 %v2452_v3, %s4913_s22  ;;  %v2295_v13 = vrot.slane %v6319_v8, 1  ;;  %v2469_v3 = vsel %vm572_vm4, %v2466_v34, %v2468_v7  ;;  %v2648_v7 = vrot.slane %v2172_v2, 1 }
 0x2f4   : > { %v2296_v0 = vsel %vm395_vm5, %v2294_v52, %v2295_v13 }
 0x2f6   : > { %2350 = vrot.lane.b32.xlu1 %v2283_v54, %s4914_s23  ;;  %2348 = vrot.lane.b32.xlu0 %v2281_v63, %s4914_s23  ;;  %v2471_v54 = vrot.slane %v6319_v8, 2  ;;  %v2298_v63 = vsel %vm395_vm5, %v2295_v13, %v2297_v28 }
 0x2f8   : > { %v2472_v48 = vsel %vm572_vm4, %v2470_v38, %v2471_v54  ;;  %v2124_v38 = vld [vmem:[#allocation2 + $0x10] sm:$0x3] }
 0x2fa   : > { %2526 = vrot.lane.b32.xlu1 %v2459_v31, %s4913_s22  ;;  %2524 = vrot.lane.b32.xlu0 %v2457_v33, %s4913_s22  ;;  %v2300_v31 = vrot.slane %v6140_v56, 1  ;;  %v2474_v33 = vsel %vm572_vm4, %v2471_v54, %v2473_v17  ;;  %v6376_v17 = vld [vmem:[#allocation2 + $0x8] sm:$0xff] }
 0x2fc   : > { %v2301_v40 = vsel %vm395_vm5, %v2299_v30, %v2300_v31 }
 0x2fe   : > { %2354 = vrot.lane.b32.xlu1 %v2288_v25, %s4914_s23  ;;  %2352 = vrot.lane.b32.xlu0 %v2286_v29, %s4914_s23  ;;  %v2476_v25 = vrot.slane %v6140_v56, 2  ;;  %v2303_v29 = vsel %vm395_vm5, %v2300_v31, %v2302_v24  ;;  %v4170_v31 = vld [vmem:[%s7135_s2 + $0x20] sm:$0xff] }
 0x300   : > { %v2479_v34 = vsel %vm572_vm4, %v2476_v25, %v2478_v43 }
 0x302   : > { %2530 = vrot.lane.b32.xlu1 %v2464_v19, %s4913_s22  ;;  %2528 = vrot.lane.b32.xlu0 %v2462_v20, %s4913_s22  ;;  %v6349_v20 = vld [vmem:[#allocation2 + $0x188] sm:$0xff] }
 0x303   : > { %v2657_v28 = vrot.slane %v6349_v20, 2 }
 0x306   : > { %2358 = vrot.lane.b32.xlu1 %v2293_v55, %s4914_s23  ;;  %2356 = vrot.lane.b32.xlu0 %v2291_v23, %s4914_s23  ;;  %v2477_v55 = vsel %vm572_vm4, %v2475_v16, %v2476_v25  ;;  %v2646_v23 = vrot.slane %v6349_v20, 1  ;;  %v2224_v16 = vrot.slane %v6381_v41, 1 }
 0x30a   : > { %2534 = vrot.lane.b32.xlu1 %v2469_v3, %s4913_s22  ;;  %2532 = vrot.lane.b32.xlu0 %v2467_v39, %s4913_s22 }
 0x30e   : > { %2362 = vrot.lane.b32.xlu1 %v2298_v63, %s4914_s23  ;;  %2360 = vrot.lane.b32.xlu0 %v2296_v0, %s4914_s23  ;;  %v2649_v63 = vsel %vm395_vm5, %v2646_v23, %v2648_v7  ;;  %v2659_v0 = vrot.slane %v2172_v2, 2 }
 0x310   : > { %v2660_v25 = vsel %vm572_vm4, %v2657_v28, %v2659_v0 }
 0x312   : > { %2538 = vrot.lane.b32.xlu1 %v2474_v33, %s4913_s22  ;;  %2536 = vrot.lane.b32.xlu0 %v2472_v48, %s4913_s22  ;;  %v4171_v33 = vld [vmem:[%s7135_s2 + $0x28] sm:$0xf] }
 0x313   : > { %v6392_v30 = vpack.c.bf16 %v4171_v33, %v4170_v31 }
 0x316   : > { %2366 = vrot.lane.b32.xlu1 %v2303_v29, %s4914_s23  ;;  %2364 = vrot.lane.b32.xlu0 %v2301_v40, %s4914_s23  ;;  %v2311_v51 = vpop.permute.xlu1 %2310  ;;  %v2309_v19 = vpop.permute.xlu0 %2308  ;;  %v2225_v29 = vrot.slane %v6376_v17, 1  ;;  %v2227_v40 = vrot.slane %v2124_v38, 1 }
 0x317   : > { %v2579_v26 = vsel %vm208_vm0, %v6008_v11, %v2311_v51  ;;  %v2578_v13 = vsel %vm208_vm0, %v6012_v22, %v2309_v19  ;;  %v2647_v11 = vsel %vm395_vm5, %v2645_v10, %v2646_v23  ;;  %v2656_v22 = vrot.slane %v6351_v58, 2 }
 0x318   : > { %v2228_v7 = vsel %vm395_vm5, %v2225_v29, %v2227_v40  ;;  %v2403_v10 = vrot.slane %v2124_v38, 2 }
 0x319   : > { %v2658_v43 = vsel %vm572_vm4, %v2656_v22, %v2657_v28 }
 0x31a   : > { %2542 = vrot.lane.b32.xlu1 %v2479_v34, %s4913_s22  ;;  %2540 = vrot.lane.b32.xlu0 %v2477_v55, %s4913_s22  ;;  %v2401_v34 = vrot.slane %v6376_v17, 2 }
 0x31c   : > { %v2487_v3 = vpop.permute.xlu1 %2486  ;;  %v2485_v39 = vpop.permute.xlu0 %2484 }
 0x31d   : > { %v6365_v52 = vsel %vm781_vm9, %v2579_v26, %v2487_v3  ;;  %v6368_v54 = vsel %vm781_vm9, %v2578_v13, %v2485_v39  ;;  %v6420_v26 = vld [vmem:[#allocation2 + $0x1a0] sm:$0xff]  ;;  %v2175_v13 = vld [vmem:[#allocation2 + $0x1a8] sm:$0x3]  ;;  %v6425_v3 = vld [vmem:[#allocation2 + $0x198] sm:$0xff] }
 0x31e   : > { %4573 = vmatprep.mubr.msk.f32.mxu1 %vm848_vm10, %v6368_v54  ;;  %2652 = vrot.lane.b32.xlu1 %v2649_v63, %s4914_s23  ;;  %v2404_v63 = vsel %vm572_vm4, %v2401_v34, %v2403_v10  ;;  %v3236_v0 = vrot.slane %v6420_v26, 1  ;;  %v3235_v38 = vrot.slane %v6425_v3, 1 }
 0x31f   : > { %2650 = vrot.lane.b32.xlu0 %v2647_v11, %s4914_s23  ;;  %4574 = vmatmul.mubr.msk.f32.vlgmr.msra.gmra.mrb[0].mxu1 %vm848_vm10, %v6365_v52  ;;  %v3238_v11 = vrot.slane %v2175_v13, 1 }
 0x320   : > { %v2315_v48 = vpop.permute.xlu1 %2314  ;;  %v2313_v24 = vpop.permute.xlu0 %2312  ;;  %4754 = vmatpush3.bf16.msk.msra.mxu1 %vm5044_vm7, %v6240_v46 }
 0x321   : > { %4757 = vmatprep.subr.msk.bf16.mxu1 %vm5044_vm7, %v6392_v30  ;;  %v2581_v46 = vsel %vm208_vm0, %v6100_v1, %v2315_v48  ;;  %v2580_v51 = vsel %vm208_vm0, %v6088_v59, %v2313_v24  ;;  %v2226_v59 = vsel %vm395_vm5, %v2224_v16, %v2225_v29  ;;  %v2400_v1 = vrot.slane %v6381_v41, 2 }
 0x322   : > { %2663 = vrot.lane.b32.xlu1 %v2660_v25, %s4913_s22  ;;  %v3247_v25 = vrot.slane %v6420_v26, 2  ;;  %v3249_v16 = vrot.slane %v2175_v13, 2 }
 0x323   : > { %2661 = vrot.lane.b32.xlu0 %v2658_v43, %s4913_s22  ;;  %v2402_v22 = vsel %vm572_vm4, %v2400_v1, %v2401_v34  ;;  %v3239_v43 = vsel %vm395_vm5, %v3236_v0, %v3238_v11 }
 0x324   : > { %v2491_v19 = vpop.permute.xlu1 %2490  ;;  %v2489_v2 = vpop.permute.xlu0 %2488 }
 0x325   : > { %v6409_v55 = vsel %vm781_vm9, %v2581_v46, %v2491_v19  ;;  %v6412_v23 = vsel %vm781_vm9, %v2580_v51, %v2489_v2  ;;  %v3250_v19 = vsel %vm572_vm4, %v3247_v25, %v3249_v16 }
 0x326   : > { %4576 = vmatprep.mubr.msk.f32.mxu1 %vm848_vm10, %v6412_v23  ;;  %2306 = vrot.lane.b32.xlu1 %v2228_v7, %s4914_s23 }
 0x327   : > { %2304 = vrot.lane.b32.xlu0 %v2226_v59, %s4914_s23  ;;  %4577 = vmatmul.mubr.msk.f32.gmra.mrb[2].mxu1 %vm848_vm10, %v6409_v55 }
 0x328   : > { %v2319_v39 = vpop.permute.xlu1 %2318  ;;  %v2317_v28 = vpop.permute.xlu0 %2316 }
 0x329   : > { %v2583_v31 = vsel %vm208_vm0, %v6122_v50, %v2319_v39  ;;  %v2582_v33 = vsel %vm208_vm0, %v6126_v21, %v2317_v28  ;;  %v3237_v50 = vsel %vm395_vm5, %v3235_v38, %v3236_v0  ;;  %v3246_v21 = vrot.slane %v6425_v3, 2 }
 0x32a   : > { %2482 = vrot.lane.b32.xlu1 %v2404_v63, %s4913_s22 }
 0x32b   : > { %2480 = vrot.lane.b32.xlu0 %v2402_v22, %s4913_s22  ;;  %v3248_v2 = vsel %vm572_vm4, %v3246_v21, %v3247_v25 }
 0x32c   : > { %v2495_v48 = vpop.permute.xlu1 %2494  ;;  %v2493_v24 = vpop.permute.xlu0 %2492 }
 0x32d   : > { %v6439_v29 = vsel %vm781_vm9, %v2583_v31, %v2495_v48  ;;  %v6442_v40 = vsel %vm781_vm9, %v2582_v33, %v2493_v24 }
 0x32e   : > { %4579 = vmatprep.mubr.msk.f32.mxu1 %vm848_vm10, %v6442_v40  ;;  %3242 = vrot.lane.b32.xlu1 %v3239_v43, %s4914_s23 }
 0x32f   : > { %3240 = vrot.lane.b32.xlu0 %v3237_v50, %s4914_s23  ;;  %4580 = vmatmul.mubr.msk.f32.gmra.mrb[4].mxu1 %vm848_vm10, %v6439_v29  ;;  %s7018_s23 = scalar_lea.vmem %s7136_s3, %s4207_s14 }
 0x330   : > { %v2323_v46 = vpop.permute.xlu1 %2322  ;;  %v2321_v51 = vpop.permute.xlu0 %2320 }
 0x331   : > { %v2585_v34 = vsel %vm208_vm0, %v6138_v6, %v2323_v46  ;;  %v2584_v7 = vsel %vm208_vm0, %v6146_v15, %v2321_v51 }
 0x332   : > { %3253 = vrot.lane.b32.xlu1 %v3250_v19, %s4913_s22 }
 0x333   : > { %3251 = vrot.lane.b32.xlu0 %v3248_v2, %s4913_s22 }
 0x334   : > { %v2499_v10 = vpop.permute.xlu1 %2498  ;;  %v2497_v59 = vpop.permute.xlu0 %2496 }
 0x335   : > { %v6462_v1 = vsel %vm781_vm9, %v2585_v34, %v2499_v10  ;;  %v6465_v13 = vsel %vm781_vm9, %v2584_v7, %v2497_v59 }
 0x336   : > { %4582 = vmatprep.mubr.msk.f32.mxu1 %vm848_vm10, %v6465_v13 }
 0x337   : > { %4583 = vmatmul.mubr.msk.f32.gmra.mrb[6].mxu1 %vm848_vm10, %v6462_v1 }
 0x338   : > { %v2327_v39 = vpop.permute.xlu1 %2326  ;;  %v2325_v28 = vpop.permute.xlu0 %2324 }
 0x339   : > { %v2587_v6 = vsel %vm208_vm0, %v6164_v62, %v2327_v39  ;;  %v2586_v15 = vsel %vm208_vm0, %v6168_v9, %v2325_v28 }
 0x33c   : > { %v2503_v63 = vpop.permute.xlu1 %2502  ;;  %v2501_v0 = vpop.permute.xlu0 %2500 }
 0x33d   : > { %v6476_v11 = vsel %vm781_vm9, %v2587_v6, %v2503_v63  ;;  %v6479_v22 = vsel %vm781_vm9, %v2586_v15, %v2501_v0 }
 0x33e   : > { %4585 = vmatprep.mubr.msk.f32.mxu1 %vm848_vm10, %v6479_v22 }
 0x33f   : > { %4586 = vmatmul.mubr.msk.f32.gmra.mrb[8].mxu1 %vm848_vm10, %v6476_v11 }
 0x340   : > { %v2331_v38 = vpop.permute.xlu1 %2330  ;;  %v2329_v31 = vpop.permute.xlu0 %2328 }
 0x341   : > { %v2589_v62 = vsel %vm208_vm0, %v6180_v42, %v2331_v38  ;;  %v2588_v9 = vsel %vm208_vm0, %v6184_v45, %v2329_v31 }
 0x344   : > { %v2507_v33 = vpop.permute.xlu1 %2506  ;;  %v2505_v48 = vpop.permute.xlu0 %2504 }
 0x345   : > { %v6490_v24 = vsel %vm781_vm9, %v2589_v62, %v2507_v33  ;;  %v6493_v25 = vsel %vm781_vm9, %v2588_v9, %v2505_v48 }
 0x346   : > { %4588 = vmatprep.mubr.msk.f32.mxu1 %vm848_vm10, %v6493_v25 }
 0x347   : > { %4589 = vmatmul.mubr.msk.f32.gmra.mrb[10].mxu1 %vm848_vm10, %v6490_v24 }
 0x348   : > { %v2335_v43 = vpop.permute.xlu1 %2334  ;;  %v2333_v16 = vpop.permute.xlu0 %2332 }
 0x349   : > { %v2591_v42 = vsel %vm208_vm0, %v6196_v60, %v2335_v43  ;;  %v2590_v45 = vsel %vm208_vm0, %v6200_v35, %v2333_v16 }
 0x34c   : > { %v2511_v50 = vpop.permute.xlu1 %2510  ;;  %v2509_v21 = vpop.permute.xlu0 %2508 }
 0x34d   : > { %v6504_v46 = vsel %vm781_vm9, %v2591_v42, %v2511_v50  ;;  %v6507_v51 = vsel %vm781_vm9, %v2590_v45, %v2509_v21 }
 0x34e   : > { %4591 = vmatprep.mubr.msk.f32.mxu1 %vm848_vm10, %v6507_v51 }
 0x34f   : > { %4592 = vmatmul.mubr.msk.f32.gmra.mrb[12].mxu1 %vm848_vm10, %v6504_v46 }
 0x350   : > { %v2339_v19 = vpop.permute.xlu1 %2338  ;;  %v2337_v2 = vpop.permute.xlu0 %2336 }
 0x351   : > { %v2593_v60 = vsel %vm208_vm0, %v6212_v14, %v2339_v19  ;;  %v2592_v35 = vsel %vm208_vm0, %v6216_v18, %v2337_v2 }
 0x354   : > { %v2515_v34 = vpop.permute.xlu1 %2514  ;;  %v2513_v7 = vpop.permute.xlu0 %2512 }
 0x355   : > { %v6518_v10 = vsel %vm781_vm9, %v2593_v60, %v2515_v34  ;;  %v6521_v59 = vsel %vm781_vm9, %v2592_v35, %v2513_v7 }
 0x356   : > { %4594 = vmatprep.mubr.msk.f32.mxu1 %vm848_vm10, %v6521_v59 }
 0x357   : > { %4595 = vmatmul.mubr.msk.f32.gmra.mrb[14].mxu1 %vm848_vm10, %v6518_v10 }
 0x358   : > { %v2343_v39 = vpop.permute.xlu1 %2342  ;;  %v2341_v28 = vpop.permute.xlu0 %2340 }
 0x359   : > { %v2595_v14 = vsel %vm208_vm0, %v6228_v53, %v2343_v39  ;;  %v2594_v18 = vsel %vm208_vm0, %v6232_v12, %v2341_v28 }
 0x35c   : > { %v2519_v6 = vpop.permute.xlu1 %2518  ;;  %v2517_v15 = vpop.permute.xlu0 %2516 }
 0x35d   : > { %v6532_v63 = vsel %vm781_vm9, %v2595_v14, %v2519_v6  ;;  %v6535_v0 = vsel %vm781_vm9, %v2594_v18, %v2517_v15 }
 0x35e   : > { %4597 = vmatprep.mubr.msk.f32.mxu1 %vm848_vm10, %v6535_v0 }
 0x35f   : > { %4598 = vmatmul.mubr.msk.f32.gmra.mrb[16].mxu1 %vm848_vm10, %v6532_v63 }
 0x360   : > { %v2347_v38 = vpop.permute.xlu1 %2346  ;;  %v2345_v31 = vpop.permute.xlu0 %2344 }
 0x361   : > { %v2597_v53 = vsel %vm208_vm0, %v6255_v49, %v2347_v38  ;;  %v2596_v12 = vsel %vm208_vm0, %v6259_v61, %v2345_v31 }
 0x364   : > { %v2523_v62 = vpop.permute.xlu1 %2522  ;;  %v2521_v9 = vpop.permute.xlu0 %2520 }
 0x365   : > { %v6546_v33 = vsel %vm781_vm9, %v2597_v53, %v2523_v62  ;;  %v6549_v48 = vsel %vm781_vm9, %v2596_v12, %v2521_v9 }
 0x366   : > { %4600 = vmatprep.mubr.msk.f32.mxu1 %vm848_vm10, %v6549_v48 }
 0x367   : > { %4601 = vmatmul.mubr.msk.f32.gmra.mrb[18].mxu1 %vm848_vm10, %v6546_v33 }
 0x368   : > { %v2351_v43 = vpop.permute.xlu1 %2350  ;;  %v2349_v16 = vpop.permute.xlu0 %2348 }
 0x369   : > { %v2599_v49 = vsel %vm208_vm0, %v6271_v27, %v2351_v43  ;;  %v2598_v61 = vsel %vm208_vm0, %v6275_v32, %v2349_v16 }
 0x36c   : > { %v2527_v42 = vpop.permute.xlu1 %2526  ;;  %v2525_v45 = vpop.permute.xlu0 %2524 }
 0x36d   : > { %v6560_v50 = vsel %vm781_vm9, %v2599_v49, %v2527_v42  ;;  %v6563_v21 = vsel %vm781_vm9, %v2598_v61, %v2525_v45 }
 0x36e   : > { %4603 = vmatprep.mubr.msk.f32.mxu1 %vm848_vm10, %v6563_v21 }
 0x36f   : > { %4604 = vmatmul.mubr.msk.f32.gmra.mrb[20].mxu1 %vm848_vm10, %v6560_v50 }
 0x370   : > { %v2355_v19 = vpop.permute.xlu1 %2354  ;;  %v2353_v2 = vpop.permute.xlu0 %2352 }
 0x371   : > { %v2601_v27 = vsel %vm208_vm0, %v6287_v37, %v2355_v19  ;;  %v2600_v32 = vsel %vm208_vm0, %v6291_v47, %v2353_v2 }
 0x374   : > { %v2531_v60 = vpop.permute.xlu1 %2530  ;;  %v2529_v35 = vpop.permute.xlu0 %2528 }
 0x375   : > { %v6574_v34 = vsel %vm781_vm9, %v2601_v27, %v2531_v60  ;;  %v6577_v7 = vsel %vm781_vm9, %v2600_v32, %v2529_v35 }
 0x376   : > { %4606 = vmatprep.mubr.msk.f32.mxu1 %vm848_vm10, %v6577_v7 }
 0x377   : > { %4607 = vmatmul.mubr.msk.f32.gmra.mrb[22].mxu1 %vm848_vm10, %v6574_v34 }
 0x378   : > { %v2359_v39 = vpop.permute.xlu1 %2358  ;;  %v2357_v28 = vpop.permute.xlu0 %2356 }
 0x379   : > { %v2603_v37 = vsel %vm208_vm0, %v6303_v4, %v2359_v39  ;;  %v2602_v47 = vsel %vm208_vm0, %v6307_v5, %v2357_v28 }
 0x37c   : > { %v2535_v14 = vpop.permute.xlu1 %2534  ;;  %v2533_v18 = vpop.permute.xlu0 %2532 }
 0x37d   : > { %v6588_v6 = vsel %vm781_vm9, %v2603_v37, %v2535_v14  ;;  %v6591_v15 = vsel %vm781_vm9, %v2602_v47, %v2533_v18 }
 0x37e   : > { %4609 = vmatprep.mubr.msk.f32.mxu1 %vm848_vm10, %v6591_v15 }
 0x37f   : > { %4610 = vmatmul.mubr.msk.f32.gmra.mrb[24].mxu1 %vm848_vm10, %v6588_v6 }
 0x380   : > { %v2363_v38 = vpop.permute.xlu1 %2362  ;;  %v2361_v31 = vpop.permute.xlu0 %2360 }
 0x381   : > { %v2605_v4 = vsel %vm208_vm0, %v6319_v8, %v2363_v38  ;;  %v2604_v5 = vsel %vm208_vm0, %v6323_v44, %v2361_v31 }
 0x384   : > { %v2539_v53 = vpop.permute.xlu1 %2538  ;;  %v2537_v12 = vpop.permute.xlu0 %2536 }
 0x385   : > { %v6602_v62 = vsel %vm781_vm9, %v2605_v4, %v2539_v53  ;;  %v6605_v9 = vsel %vm781_vm9, %v2604_v5, %v2537_v12 }
 0x386   : > { %4612 = vmatprep.mubr.msk.f32.mxu1 %vm848_vm10, %v6605_v9 }
 0x387   : > { %4613 = vmatmul.mubr.msk.f32.gmra.mrb[26].mxu1 %vm848_vm10, %v6602_v62 }
 0x388   : > { %v2367_v43 = vpop.permute.xlu1 %2366  ;;  %v2365_v16 = vpop.permute.xlu0 %2364 }
 0x389   : > { %v2607_v8 = vsel %vm208_vm0, %v6140_v56, %v2367_v43  ;;  %v2606_v44 = vsel %vm208_vm0, %v6142_v57, %v2365_v16 }
 0x38c   : > { %v2543_v49 = vpop.permute.xlu1 %2542  ;;  %v2541_v61 = vpop.permute.xlu0 %2540 }
 0x38d   : > { %v6616_v42 = vsel %vm781_vm9, %v2607_v8, %v2543_v49  ;;  %v6619_v45 = vsel %vm781_vm9, %v2606_v44, %v2541_v61 }
 0x38e   : > { %4615 = vmatprep.mubr.msk.f32.mxu1 %vm848_vm10, %v6619_v45 }
 0x38f   : > { %4616 = vmatmul.mubr.msk.f32.gmra.mrb[28].mxu1 %vm848_vm10, %v6616_v42 }
 0x390   : > { %v2653_v19 = vpop.permute.xlu1 %2652 }
 0x391   : > { %v2651_v2 = vpop.permute.xlu0 %2650  ;;  %v2668_v56 = vsel %vm208_vm0, %v6349_v20, %v2653_v19 }
 0x392   : > { %v2667_v27 = vsel %vm208_vm0, %v6351_v58, %v2651_v2 }
 0x394   : > { %v2664_v57 = vpop.permute.xlu1 %2663 }
 0x395   : > { %v6630_v32 = vsel %vm781_vm9, %v2668_v56, %v2664_v57  ;;  %v2662_v60 = vpop.permute.xlu0 %2661 }
 0x396   : > { %v6633_v35 = vsel %vm781_vm9, %v2667_v27, %v2662_v60 }
 0x397   : > { %4618 = vmatprep.mubr.msk.f32.mxu1 %vm848_vm10, %v6633_v35 }
 0x398   : > { %4619 = vmatmul.mubr.msk.f32.gmra.mrb[30].mxu1 %vm848_vm10, %v6630_v32  ;;  %v2307_v39 = vpop.permute.xlu1 %2306 }
 0x399   : > { %v2305_v28 = vpop.permute.xlu0 %2304  ;;  %v2577_v20 = vsel %vm208_vm0, %v6376_v17, %v2307_v39 }
 0x39a   : > { %v2576_v58 = vsel %vm208_vm0, %v6381_v41, %v2305_v28 }
 0x39c   : > { %v2483_v37 = vpop.permute.xlu1 %2482 }
 0x39d   : > { %v2609_v47 = vsel %vm781_vm9, %v2577_v20, %v2483_v37  ;;  %v2481_v14 = vpop.permute.xlu0 %2480 }
 0x39e   : > { %v2608_v18 = vsel %vm781_vm9, %v2576_v58, %v2481_v14 }
 0x39f   : > { %4625 = vmatprep.mubr.msk.f32.mxu1 %vm848_vm10, %v2608_v18 }
 0x3a0   : > { %4626 = vmatmul.mubr.msk.f32.vlgmr.msra.gmra.mrb[0].mxu1 %vm848_vm10, %v2609_v47 }
 0x3a1   : > { %4760 = vmatpush3.bf16.msk.msra.mxu1 %vm5044_vm7, %v6392_v30  ;;  %4628 = vmatprep.mubr.msk.f32.mxu1 %vm848_vm10, %v6368_v54  ;;  %v3241_v36 = vpop.permute.xlu0 %3240 }
 0x3a2   : > { %v3257_v17 = vsel %vm208_vm0, %v6425_v3, %v3241_v36 }
 0x3a4   : > { %4629 = vmatmul.mubr.msk.f32.gmra.mrb[2].mxu1 %vm848_vm10, %v6365_v52  ;;  %v3243_v52 = vpop.permute.xlu1 %3242 }
 0x3a5   : > { %4631 = vmatprep.mubr.msk.f32.mxu1 %vm848_vm10, %v6412_v23  ;;  %v3252_v54 = vpop.permute.xlu0 %3251 }
 0x3a6   : > { %v3259_v30 = vsel %vm781_vm9, %v3257_v17, %v3252_v54 }
 0x3a8   : > { %4632 = vmatmul.mubr.msk.f32.gmra.mrb[4].mxu1 %vm848_vm10, %v6409_v55  ;;  %v3254_v41 = vpop.permute.xlu1 %3253 }
 0x3a9   : > { %4634 = vmatprep.mubr.msk.f32.mxu1 %vm848_vm10, %v6442_v40 }
 0x3ac   : > { %4635 = vmatmul.mubr.msk.f32.gmra.mrb[6].mxu1 %vm848_vm10, %v6439_v29 }
 0x3ad   : > { %4637 = vmatprep.mubr.msk.f32.mxu1 %vm848_vm10, %v6465_v13 }
 0x3b0   : > { %4638 = vmatmul.mubr.msk.f32.gmra.mrb[8].mxu1 %vm848_vm10, %v6462_v1 }
 0x3b1   : > { %4640 = vmatprep.mubr.msk.f32.mxu1 %vm848_vm10, %v6479_v22 }
 0x3b4   : > { %4641 = vmatmul.mubr.msk.f32.gmra.mrb[10].mxu1 %vm848_vm10, %v6476_v11 }
 0x3b5   : > { %4643 = vmatprep.mubr.msk.f32.mxu1 %vm848_vm10, %v6493_v25 }
 0x3b8   : > { %4644 = vmatmul.mubr.msk.f32.gmra.mrb[12].mxu1 %vm848_vm10, %v6490_v24 }
 0x3b9   : > { %4646 = vmatprep.mubr.msk.f32.mxu1 %vm848_vm10, %v6507_v51 }
 0x3bc   : > { %4647 = vmatmul.mubr.msk.f32.gmra.mrb[14].mxu1 %vm848_vm10, %v6504_v46 }
 0x3bd   : > { %4649 = vmatprep.mubr.msk.f32.mxu1 %vm848_vm10, %v6521_v59 }
 0x3c0   : > { %4650 = vmatmul.mubr.msk.f32.gmra.mrb[16].mxu1 %vm848_vm10, %v6518_v10 }
 0x3c1   : > { %4652 = vmatprep.mubr.msk.f32.mxu1 %vm848_vm10, %v6535_v0 }
 0x3c4   : > { %4653 = vmatmul.mubr.msk.f32.gmra.mrb[18].mxu1 %vm848_vm10, %v6532_v63 }
 0x3c5   : > { %4655 = vmatprep.mubr.msk.f32.mxu1 %vm848_vm10, %v6549_v48 }
 0x3c8   : > { %4656 = vmatmul.mubr.msk.f32.gmra.mrb[20].mxu1 %vm848_vm10, %v6546_v33 }
 0x3c9   : > { %4658 = vmatprep.mubr.msk.f32.mxu1 %vm848_vm10, %v6563_v21 }
 0x3cc   : > { %4659 = vmatmul.mubr.msk.f32.gmra.mrb[22].mxu1 %vm848_vm10, %v6560_v50 }
 0x3cd   : > { %4661 = vmatprep.mubr.msk.f32.mxu1 %vm848_vm10, %v6577_v7 }
 0x3d0   : > { %4662 = vmatmul.mubr.msk.f32.gmra.mrb[24].mxu1 %vm848_vm10, %v6574_v34 }
 0x3d1   : > { %4664 = vmatprep.mubr.msk.f32.mxu1 %vm848_vm10, %v6591_v15 }
 0x3d4   : > { %4665 = vmatmul.mubr.msk.f32.gmra.mrb[26].mxu1 %vm848_vm10, %v6588_v6 }
 0x3d5   : > { %4667 = vmatprep.mubr.msk.f32.mxu1 %vm848_vm10, %v6605_v9 }
 0x3d8   : > { %4668 = vmatmul.mubr.msk.f32.gmra.mrb[28].mxu1 %vm848_vm10, %v6602_v62 }
 0x3d9   : > { %4670 = vmatprep.mubr.msk.f32.mxu1 %vm848_vm10, %v6619_v45 }
 0x3dc   : > { %4671 = vmatmul.mubr.msk.f32.gmra.mrb[30].mxu1 %vm848_vm10, %v6616_v42 }
 0x3dd   : > { %4677 = vmatprep.mubr.msk.f32.mxu1 %vm848_vm10, %v6412_v23 }
 0x3e0   : > { %4678 = vmatmul.mubr.msk.f32.vlgmr.msra.gmra.mrb[0].mxu1 %vm848_vm10, %v6409_v55  ;;  %v3258_v55 = vsel %vm208_vm0, %v6420_v26, %v3243_v52 }
 0x3e1   : > { %4680 = vmatprep.mubr.msk.f32.mxu1 %vm848_vm10, %v6442_v40  ;;  %v3260_v23 = vsel %vm781_vm9, %v3258_v55, %v3254_v41 }
 0x3e4   : > { %4681 = vmatmul.mubr.msk.f32.gmra.mrb[2].mxu1 %vm848_vm10, %v6439_v29 }
 0x3e5   : > { %4683 = vmatprep.mubr.msk.f32.mxu1 %vm848_vm10, %v6465_v13 }
 0x3e8   : > { %4684 = vmatmul.mubr.msk.f32.gmra.mrb[4].mxu1 %vm848_vm10, %v6462_v1 }
 0x3e9   : > { %4686 = vmatprep.mubr.msk.f32.mxu1 %vm848_vm10, %v6479_v22 }
 0x3ec   : > { %4687 = vmatmul.mubr.msk.f32.gmra.mrb[6].mxu1 %vm848_vm10, %v6476_v11 }
 0x3ed   : > { %4689 = vmatprep.mubr.msk.f32.mxu1 %vm848_vm10, %v6493_v25 }
 0x3f0   : > { %4690 = vmatmul.mubr.msk.f32.gmra.mrb[8].mxu1 %vm848_vm10, %v6490_v24 }
 0x3f1   : > { %4692 = vmatprep.mubr.msk.f32.mxu1 %vm848_vm10, %v6507_v51 }
 0x3f4   : > { %4693 = vmatmul.mubr.msk.f32.gmra.mrb[10].mxu1 %vm848_vm10, %v6504_v46 }
 0x3f5   : > { %4695 = vmatprep.mubr.msk.f32.mxu1 %vm848_vm10, %v6521_v59 }
 0x3f8   : > { %4696 = vmatmul.mubr.msk.f32.gmra.mrb[12].mxu1 %vm848_vm10, %v6518_v10 }
 0x3f9   : > { %4698 = vmatprep.mubr.msk.f32.mxu1 %vm848_vm10, %v6535_v0 }
 0x3fc   : > { %4699 = vmatmul.mubr.msk.f32.gmra.mrb[14].mxu1 %vm848_vm10, %v6532_v63 }
 0x3fd   : > { %4701 = vmatprep.mubr.msk.f32.mxu1 %vm848_vm10, %v6549_v48 }
 0x400   : > { %4702 = vmatmul.mubr.msk.f32.gmra.mrb[16].mxu1 %vm848_vm10, %v6546_v33 }
 0x401   : > { %4704 = vmatprep.mubr.msk.f32.mxu1 %vm848_vm10, %v6563_v21 }
 0x404   : > { %4705 = vmatmul.mubr.msk.f32.gmra.mrb[18].mxu1 %vm848_vm10, %v6560_v50 }
 0x405   : > { %4707 = vmatprep.mubr.msk.f32.mxu1 %vm848_vm10, %v6577_v7 }
 0x408   : > { %4708 = vmatmul.mubr.msk.f32.gmra.mrb[20].mxu1 %vm848_vm10, %v6574_v34 }
 0x409   : > { %4710 = vmatprep.mubr.msk.f32.mxu1 %vm848_vm10, %v6591_v15 }
 0x40c   : > { %4711 = vmatmul.mubr.msk.f32.gmra.mrb[22].mxu1 %vm848_vm10, %v6588_v6 }
 0x40d   : > { %4713 = vmatprep.mubr.msk.f32.mxu1 %vm848_vm10, %v6605_v9 }
 0x410   : > { %4714 = vmatmul.mubr.msk.f32.gmra.mrb[24].mxu1 %vm848_vm10, %v6602_v62 }
 0x411   : > { %4716 = vmatprep.mubr.msk.f32.mxu1 %vm848_vm10, %v6619_v45 }
 0x414   : > { %4717 = vmatmul.mubr.msk.f32.gmra.mrb[26].mxu1 %vm848_vm10, %v6616_v42 }
 0x415   : > { %4719 = vmatprep.mubr.msk.f32.mxu1 %vm848_vm10, %v6633_v35 }
 0x418   : > { %4720 = vmatmul.mubr.msk.f32.gmra.mrb[28].mxu1 %vm848_vm10, %v6630_v32 }
 0x419   : > { %4722 = vmatprep.mubr.msk.f32.mxu1 %vm848_vm10, %v3259_v30 }
 0x41c   : > { %4723 = vmatmul.mubr.msk.f32.gmra.mrb[30].mxu1 %vm848_vm10, %v3260_v23 }
 0x4b3   : > { %v4679_v29 = vpop.f32.mrb[0].mxu1 }
 0x4b4   : > { %3531 = vst.msk [vmem:[#allocation3 + $0x8] sm:$0xff] %vm208_vm0, %v4679_v29  ;;  %v3563_v3 = vsel %vm208_vm0, %v4679_v29, 0.0  ;;  %v3633_v40 = vmul.f32 %v4679_v29, %v4679_v29  ;;  %v3339_v1 = vpop.f32.mrb[1].mxu1 }
 0x4b5   : > { %3530 = vst.msk [vmem:[#allocation3] sm:$0xff] %vm208_vm0, %v3339_v1  ;;  %v3562_v13 = vsel %vm208_vm0, %v3339_v1, 0.0  ;;  %v3632_v11 = vmul.f32 %v3339_v1, %v3339_v1 }
 0x4b6   : > { %v3665_v22 = vsel %vm208_vm0, %v3633_v40, 0.0  ;;  %v3564_v24 = vadd.f32 %v3563_v3, %v3562_v13 }
 0x4b7   : > { %v3664_v26 = vsel %vm208_vm0, %v3632_v11, 0.0  ;;  %v4682_v25 = vpop.f32.mrb[2].mxu1 }
 0x4b8   : > { %v3666_v46 = vadd.f32 %v3665_v22, %v3664_v26  ;;  %3533 = vst.msk [vmem:[#allocation3 + $0x18] sm:$0xff] %vm208_vm0, %v4682_v25  ;;  %v3349_v51 = vpop.f32.mrb[3].mxu1  ;;  %v3635_v10 = vmul.f32 %v4682_v25, %v4682_v25  ;;  %v3567_v33 = vsel %vm208_vm0, %v4682_v25, 0.0 }
 0x4b9   : > { %3532 = vst.msk [vmem:[#allocation3 + $0x10] sm:$0xff] %vm208_vm0, %v3349_v51  ;;  %v3565_v59 = vsel %vm208_vm0, %v3349_v51, 0.0  ;;  %v3634_v63 = vmul.f32 %v3349_v51, %v3349_v51 }
 0x4ba   : > { %v3566_v0 = vadd.f32 %v3565_v59, %v3564_v24  ;;  %v3669_v6 = vsel %vm208_vm0, %v3635_v10, 0.0 }
 0x4bb   : > { %v3667_v48 = vsel %vm208_vm0, %v3634_v63, 0.0  ;;  %v4685_v50 = vpop.f32.mrb[4].mxu1 }
 0x4bc   : > { %v3668_v21 = vadd.f32 %v3667_v48, %v3666_v46  ;;  %3535 = vst.msk [vmem:[#allocation3 + $0x28] sm:$0xff] %vm208_vm0, %v4685_v50  ;;  %v3359_v34 = vpop.f32.mrb[5].mxu1  ;;  %v3568_v7 = vadd.f32 %v3567_v33, %v3566_v0  ;;  %v3637_v15 = vmul.f32 %v4685_v50, %v4685_v50  ;;  %v3571_v53 = vsel %vm208_vm0, %v4685_v50, 0.0 }
 0x4bd   : > { %3534 = vst.msk [vmem:[#allocation3 + $0x20] sm:$0xff] %vm208_vm0, %v3359_v34  ;;  %v3569_v38 = vsel %vm208_vm0, %v3359_v34, 0.0  ;;  %v3636_v31 = vmul.f32 %v3359_v34, %v3359_v34 }
 0x4be   : > { %v3570_v4 = vadd.f32 %v3569_v38, %v3568_v7  ;;  %v3670_v5 = vadd.f32 %v3669_v6, %v3668_v21  ;;  %v3673_v8 = vsel %vm208_vm0, %v3637_v15, 0.0 }
 0x4bf   : > { %v3671_v12 = vsel %vm208_vm0, %v3636_v31, 0.0  ;;  %v4688_v62 = vpop.f32.mrb[6].mxu1 }
 0x4c0   : > { %v3672_v9 = vadd.f32 %v3671_v12, %v3670_v5  ;;  %3537 = vst.msk [vmem:[#allocation3 + $0x38] sm:$0xff] %vm208_vm0, %v4688_v62  ;;  %v3369_v43 = vpop.f32.mrb[7].mxu1  ;;  %v3572_v16 = vadd.f32 %v3571_v53, %v3570_v4  ;;  %v3639_v44 = vmul.f32 %v4688_v62, %v4688_v62  ;;  %v3575_v19 = vsel %vm208_vm0, %v4688_v62, 0.0 }
 0x4c1   : > { %3536 = vst.msk [vmem:[#allocation3 + $0x30] sm:$0xff] %vm208_vm0, %v3369_v43  ;;  %v3573_v49 = vsel %vm208_vm0, %v3369_v43, 0.0  ;;  %v3638_v61 = vmul.f32 %v3369_v43, %v3369_v43 }
 0x4c2   : > { %v3574_v42 = vadd.f32 %v3573_v49, %v3572_v16  ;;  %v3674_v45 = vadd.f32 %v3673_v8, %v3672_v9  ;;  %v3677_v60 = vsel %vm208_vm0, %v3639_v44, 0.0 }
 0x4c3   : > { %v3675_v2 = vsel %vm208_vm0, %v3638_v61, 0.0  ;;  %v4691_v56 = vpop.f32.mrb[8].mxu1 }
 0x4c4   : > { %v3676_v57 = vadd.f32 %v3675_v2, %v3674_v45  ;;  %3539 = vst.msk [vmem:[#allocation3 + $0x48] sm:$0xff] %vm208_vm0, %v4691_v56  ;;  %v3379_v27 = vpop.f32.mrb[9].mxu1  ;;  %v3576_v32 = vadd.f32 %v3575_v19, %v3574_v42  ;;  %v3641_v35 = vmul.f32 %v4691_v56, %v4691_v56  ;;  %v3579_v58 = vsel %vm208_vm0, %v4691_v56, 0.0 }
 0x4c5   : > { %3538 = vst.msk [vmem:[#allocation3 + $0x40] sm:$0xff] %vm208_vm0, %v3379_v27  ;;  %v3577_v39 = vsel %vm208_vm0, %v3379_v27, 0.0  ;;  %v3640_v28 = vmul.f32 %v3379_v27, %v3379_v27 }
 0x4c6   : > { %v3578_v20 = vadd.f32 %v3577_v39, %v3576_v32  ;;  %v3678_v37 = vadd.f32 %v3677_v60, %v3676_v57  ;;  %v3681_v54 = vsel %vm208_vm0, %v3641_v35, 0.0 }
 0x4c7   : > { %v3679_v47 = vsel %vm208_vm0, %v3640_v28, 0.0  ;;  %v4694_v14 = vpop.f32.mrb[10].mxu1 }
 0x4c8   : > { %v3680_v18 = vadd.f32 %v3679_v47, %v3678_v37  ;;  %3541 = vst.msk [vmem:[#allocation3 + $0x58] sm:$0xff] %vm208_vm0, %v4694_v14  ;;  %v3389_v36 = vpop.f32.mrb[11].mxu1  ;;  %v3580_v52 = vadd.f32 %v3579_v58, %v3578_v20  ;;  %v3643_v17 = vmul.f32 %v4694_v14, %v4694_v14  ;;  %v3583_v29 = vsel %vm208_vm0, %v4694_v14, 0.0 }
 0x4c9   : > { %3540 = vst.msk [vmem:[#allocation3 + $0x50] sm:$0xff] %vm208_vm0, %v3389_v36  ;;  %v3581_v41 = vsel %vm208_vm0, %v3389_v36, 0.0  ;;  %v3642_v30 = vmul.f32 %v3389_v36, %v3389_v36 }
 0x4ca   : > { %v3582_v55 = vadd.f32 %v3581_v41, %v3580_v52  ;;  %v3682_v23 = vadd.f32 %v3681_v54, %v3680_v18  ;;  %v3685_v22 = vsel %vm208_vm0, %v3643_v17, 0.0 }
 0x4cb   : > { %v3683_v3 = vsel %vm208_vm0, %v3642_v30, 0.0  ;;  %v4697_v40 = vpop.f32.mrb[12].mxu1 }
 0x4cc   : > { %v3684_v1 = vadd.f32 %v3683_v3, %v3682_v23  ;;  %3543 = vst.msk [vmem:[#allocation3 + $0x68] sm:$0xff] %vm208_vm0, %v4697_v40  ;;  %v3399_v13 = vpop.f32.mrb[13].mxu1  ;;  %v3584_v11 = vadd.f32 %v3583_v29, %v3582_v55  ;;  %v3645_v24 = vmul.f32 %v4697_v40, %v4697_v40  ;;  %v3587_v10 = vsel %vm208_vm0, %v4697_v40, 0.0 }
 0x4cd   : > { %3542 = vst.msk [vmem:[#allocation3 + $0x60] sm:$0xff] %vm208_vm0, %v3399_v13  ;;  %v3585_v26 = vsel %vm208_vm0, %v3399_v13, 0.0  ;;  %v3644_v25 = vmul.f32 %v3399_v13, %v3399_v13 }
 0x4ce   : > { %v3586_v46 = vadd.f32 %v3585_v26, %v3584_v11  ;;  %v3686_v51 = vadd.f32 %v3685_v22, %v3684_v1  ;;  %v3689_v50 = vsel %vm208_vm0, %v3645_v24, 0.0 }
 0x4cf   : > { %v3687_v59 = vsel %vm208_vm0, %v3644_v25, 0.0  ;;  %v4700_v63 = vpop.f32.mrb[14].mxu1 }
 0x4d0   : > { %v3688_v0 = vadd.f32 %v3687_v59, %v3686_v51  ;;  %3545 = vst.msk [vmem:[#allocation3 + $0x78] sm:$0xff] %vm208_vm0, %v4700_v63  ;;  %v3409_v33 = vpop.f32.mrb[15].mxu1  ;;  %v3588_v48 = vadd.f32 %v3587_v10, %v3586_v46  ;;  %v3647_v21 = vmul.f32 %v4700_v63, %v4700_v63  ;;  %v3591_v38 = vsel %vm208_vm0, %v4700_v63, 0.0 }
 0x4d1   : > { %3544 = vst.msk [vmem:[#allocation3 + $0x70] sm:$0xff] %vm208_vm0, %v3409_v33  ;;  %v3589_v34 = vsel %vm208_vm0, %v3409_v33, 0.0  ;;  %v3646_v7 = vmul.f32 %v3409_v33, %v3409_v33 }
 0x4d2   : > { %v3590_v6 = vadd.f32 %v3589_v34, %v3588_v48  ;;  %v3690_v15 = vadd.f32 %v3689_v50, %v3688_v0  ;;  %v3693_v62 = vsel %vm208_vm0, %v3647_v21, 0.0 }
 0x4d3   : > { %v3691_v31 = vsel %vm208_vm0, %v3646_v7, 0.0  ;;  %v4703_v4 = vpop.f32.mrb[16].mxu1 }
 0x4d4   : > { %v3692_v5 = vadd.f32 %v3691_v31, %v3690_v15  ;;  %3547 = vst.msk [vmem:[#allocation3 + $0x88] sm:$0xff] %vm208_vm0, %v4703_v4  ;;  %v3419_v53 = vpop.f32.mrb[17].mxu1  ;;  %v3592_v12 = vadd.f32 %v3591_v38, %v3590_v6  ;;  %v3649_v9 = vmul.f32 %v4703_v4, %v4703_v4  ;;  %v3595_v49 = vsel %vm208_vm0, %v4703_v4, 0.0 }
 0x4d5   : > { %3546 = vst.msk [vmem:[#allocation3 + $0x80] sm:$0xff] %vm208_vm0, %v3419_v53  ;;  %v3593_v43 = vsel %vm208_vm0, %v3419_v53, 0.0  ;;  %v3648_v16 = vmul.f32 %v3419_v53, %v3419_v53 }
 0x4d6   : > { %v3594_v8 = vadd.f32 %v3593_v43, %v3592_v12  ;;  %v3694_v44 = vadd.f32 %v3693_v62, %v3692_v5  ;;  %v3697_v56 = vsel %vm208_vm0, %v3649_v9, 0.0 }
 0x4d7   : > { %v3695_v61 = vsel %vm208_vm0, %v3648_v16, 0.0  ;;  %v4706_v42 = vpop.f32.mrb[18].mxu1 }
 0x4d8   : > { %v3696_v45 = vadd.f32 %v3695_v61, %v3694_v44  ;;  %3549 = vst.msk [vmem:[#allocation3 + $0x98] sm:$0xff] %vm208_vm0, %v4706_v42  ;;  %v3429_v19 = vpop.f32.mrb[19].mxu1  ;;  %v3596_v2 = vadd.f32 %v3595_v49, %v3594_v8  ;;  %v3651_v57 = vmul.f32 %v4706_v42, %v4706_v42  ;;  %v3599_v39 = vsel %vm208_vm0, %v4706_v42, 0.0 }
 0x4d9   : > { %3548 = vst.msk [vmem:[#allocation3 + $0x90] sm:$0xff] %vm208_vm0, %v3429_v19  ;;  %v3597_v27 = vsel %vm208_vm0, %v3429_v19, 0.0  ;;  %v3650_v32 = vmul.f32 %v3429_v19, %v3429_v19 }
 0x4da   : > { %v3598_v60 = vadd.f32 %v3597_v27, %v3596_v2  ;;  %v3698_v35 = vadd.f32 %v3697_v56, %v3696_v45  ;;  %v3701_v14 = vsel %vm208_vm0, %v3651_v57, 0.0 }
 0x4db   : > { %v3699_v28 = vsel %vm208_vm0, %v3650_v32, 0.0  ;;  %v4709_v20 = vpop.f32.mrb[20].mxu1 }
 0x4dc   : > { %v3700_v37 = vadd.f32 %v3699_v28, %v3698_v35  ;;  %3551 = vst.msk [vmem:[#allocation3 + $0xa8] sm:$0xff] %vm208_vm0, %v4709_v20  ;;  %v3439_v58 = vpop.f32.mrb[21].mxu1  ;;  %v3600_v47 = vadd.f32 %v3599_v39, %v3598_v60  ;;  %v3653_v18 = vmul.f32 %v4709_v20, %v4709_v20  ;;  %v3603_v41 = vsel %vm208_vm0, %v4709_v20, 0.0 }
 0x4dd   : > { %3550 = vst.msk [vmem:[#allocation3 + $0xa0] sm:$0xff] %vm208_vm0, %v3439_v58  ;;  %v3601_v36 = vsel %vm208_vm0, %v3439_v58, 0.0  ;;  %v3652_v52 = vmul.f32 %v3439_v58, %v3439_v58 }
 0x4de   : > { %v3602_v54 = vadd.f32 %v3601_v36, %v3600_v47  ;;  %v3702_v17 = vadd.f32 %v3701_v14, %v3700_v37  ;;  %v3705_v40 = vsel %vm208_vm0, %v3653_v18, 0.0 }
 0x4df   : > { %v3703_v30 = vsel %vm208_vm0, %v3652_v52, 0.0  ;;  %v4712_v55 = vpop.f32.mrb[22].mxu1 }
 0x4e0   : > { %v3704_v23 = vadd.f32 %v3703_v30, %v3702_v17  ;;  %3553 = vst.msk [vmem:[#allocation3 + $0xb8] sm:$0xff] %vm208_vm0, %v4712_v55  ;;  %v3449_v29 = vpop.f32.mrb[23].mxu1  ;;  %v3604_v3 = vadd.f32 %v3603_v41, %v3602_v54  ;;  %v3655_v1 = vmul.f32 %v4712_v55, %v4712_v55  ;;  %v3607_v26 = vsel %vm208_vm0, %v4712_v55, 0.0 }
 0x4e1   : > { %3552 = vst.msk [vmem:[#allocation3 + $0xb0] sm:$0xff] %vm208_vm0, %v3449_v29  ;;  %v3605_v13 = vsel %vm208_vm0, %v3449_v29, 0.0  ;;  %v3654_v11 = vmul.f32 %v3449_v29, %v3449_v29 }
 0x4e2   : > { %v3606_v22 = vadd.f32 %v3605_v13, %v3604_v3  ;;  %v3706_v24 = vadd.f32 %v3705_v40, %v3704_v23  ;;  %v3709_v63 = vsel %vm208_vm0, %v3655_v1, 0.0 }
 0x4e3   : > { %v3707_v25 = vsel %vm208_vm0, %v3654_v11, 0.0  ;;  %v4715_v46 = vpop.f32.mrb[24].mxu1 }
 0x4e4   : > { %v3708_v51 = vadd.f32 %v3707_v25, %v3706_v24  ;;  %3555 = vst.msk [vmem:[#allocation3 + $0xc8] sm:$0xff] %vm208_vm0, %v4715_v46  ;;  %v3459_v10 = vpop.f32.mrb[25].mxu1  ;;  %v3608_v59 = vadd.f32 %v3607_v26, %v3606_v22  ;;  %v3657_v0 = vmul.f32 %v4715_v46, %v4715_v46  ;;  %v3611_v34 = vsel %vm208_vm0, %v4715_v46, 0.0 }
 0x4e5   : > { %3554 = vst.msk [vmem:[#allocation3 + $0xc0] sm:$0xff] %vm208_vm0, %v3459_v10  ;;  %v3609_v33 = vsel %vm208_vm0, %v3459_v10, 0.0  ;;  %v3656_v48 = vmul.f32 %v3459_v10, %v3459_v10 }
 0x4e6   : > { %v3610_v50 = vadd.f32 %v3609_v33, %v3608_v59  ;;  %v3710_v21 = vadd.f32 %v3709_v63, %v3708_v51  ;;  %v3713_v4 = vsel %vm208_vm0, %v3657_v0, 0.0  ;;  %v6878_v33 = vld [vmem:[#allocation3 + $0x8] sm:$0xff] }
 0x4e7   : > { %v3711_v7 = vsel %vm208_vm0, %v3656_v48, 0.0  ;;  %v4718_v6 = vpop.f32.mrb[26].mxu1  ;;  %v6880_v48 = vld [vmem:[#allocation3] sm:$0xff] }
 0x4e8   : > { %v3712_v15 = vadd.f32 %v3711_v7, %v3710_v21  ;;  %3557 = vst.msk [vmem:[#allocation3 + $0xd8] sm:$0xff] %vm208_vm0, %v4718_v6  ;;  %v3469_v38 = vpop.f32.mrb[27].mxu1  ;;  %v3612_v31 = vadd.f32 %v3611_v34, %v3610_v50  ;;  %v3659_v5 = vmul.f32 %v4718_v6, %v4718_v6  ;;  %v3615_v43 = vsel %vm208_vm0, %v4718_v6, 0.0  ;;  %v6882_v50 = vld [vmem:[#allocation3 + $0x18] sm:$0xff]  ;;  %v6884_v21 = vld [vmem:[#allocation3 + $0x10] sm:$0xff]  ;;  %v6886_v34 = vld [vmem:[#allocation3 + $0x28] sm:$0xff] }
 0x4e9   : > { %3556 = vst.msk [vmem:[#allocation3 + $0xd0] sm:$0xff] %vm208_vm0, %v3469_v38  ;;  %v3613_v53 = vsel %vm208_vm0, %v3469_v38, 0.0  ;;  %v3658_v12 = vmul.f32 %v3469_v38, %v3469_v38  ;;  %v6888_v7 = vld [vmem:[#allocation3 + $0x20] sm:$0xff]  ;;  %v6890_v6 = vld [vmem:[#allocation3 + $0x38] sm:$0xff]  ;;  %v6894_v38 = vld [vmem:[#allocation3 + $0x48] sm:$0xff] }
 0x4ea   : > { %v3614_v62 = vadd.f32 %v3613_v53, %v3612_v31  ;;  %v3714_v9 = vadd.f32 %v3713_v4, %v3712_v15  ;;  %v3717_v42 = vsel %vm208_vm0, %v3659_v5, 0.0  ;;  %v6892_v15 = vld [vmem:[#allocation3 + $0x30] sm:$0xff]  ;;  %v6896_v31 = vld [vmem:[#allocation3 + $0x40] sm:$0xff]  ;;  %v6898_v4 = vld [vmem:[#allocation3 + $0x58] sm:$0xff] }
 0x4eb   : > { %v3715_v16 = vsel %vm208_vm0, %v3658_v12, 0.0  ;;  %v4721_v8 = vpop.f32.mrb[28].mxu1  ;;  %v6900_v5 = vld [vmem:[#allocation3 + $0x50] sm:$0xff]  ;;  %v6902_v53 = vld [vmem:[#allocation3 + $0x68] sm:$0xff]  ;;  %v6904_v12 = vld [vmem:[#allocation3 + $0x60] sm:$0xff] }
 0x4ec   : > { %v3716_v44 = vadd.f32 %v3715_v16, %v3714_v9  ;;  %3559 = vst.msk [vmem:[#allocation3 + $0xe8] sm:$0xff] %vm208_vm0, %v4721_v8  ;;  %v3479_v49 = vpop.f32.mrb[29].mxu1  ;;  %v3616_v61 = vadd.f32 %v3615_v43, %v3614_v62  ;;  %v3661_v45 = vmul.f32 %v4721_v8, %v4721_v8  ;;  %v3619_v27 = vsel %vm208_vm0, %v4721_v8, 0.0  ;;  %v6914_v8 = vld [vmem:[#allocation3 + $0x78] sm:$0xff] }
 0x4ed   : > { %3558 = vst.msk [vmem:[#allocation3 + $0xe0] sm:$0xff] %vm208_vm0, %v3479_v49  ;;  %v3617_v19 = vsel %vm208_vm0, %v3479_v49, 0.0  ;;  %v3660_v2 = vmul.f32 %v3479_v49, %v3479_v49  ;;  %v6916_v49 = vld [vmem:[#allocation3 + $0x88] sm:$0xff] }
 0x4ee   : > { %v3618_v56 = vadd.f32 %v3617_v19, %v3616_v61  ;;  %v3718_v57 = vadd.f32 %v3717_v42, %v3716_v44  ;;  %v3721_v20 = vsel %vm208_vm0, %v3661_v45, 0.0  ;;  %v3755_v44 = vld [vmem:[#allocation3 + $0x70] sm:$0xff] }
 0x4ef   : > { %v3719_v32 = vsel %vm208_vm0, %v3660_v2, 0.0  ;;  %v4724_v60 = vpop.f32.mrb[30].mxu1  ;;  %v3757_v2 = vld [vmem:[#allocation3 + $0x80] sm:$0xff] }
 0x4f0   : > { %v3720_v35 = vadd.f32 %v3719_v32, %v3718_v57  ;;  %3561 = vst.msk [vmem:[#allocation3 + $0xf8] sm:$0xff] %vm208_vm0, %v4724_v60  ;;  %v3489_v39 = vpop.f32.mrb[31].mxu1  ;;  %v3620_v28 = vadd.f32 %v3619_v27, %v3618_v56  ;;  %v3663_v37 = vmul.f32 %v4724_v60, %v4724_v60  ;;  %v3623_v36 = vsel %vm208_vm0, %v4724_v60, 0.0  ;;  %v6926_v56 = vld [vmem:[#allocation3 + $0x98] sm:$0xff]  ;;  %v3759_v57 = vld [vmem:[#allocation3 + $0x90] sm:$0xff] }
 0x4f1   : > { %3560 = vst.msk [vmem:[#allocation3 + $0xf0] sm:$0xff] %vm208_vm0, %v3489_v39  ;;  %v3621_v58 = vsel %vm208_vm0, %v3489_v39, 0.0  ;;  %v3662_v47 = vmul.f32 %v3489_v39, %v3489_v39  ;;  %v6936_v39 = vld [vmem:[#allocation3 + $0xa8] sm:$0xff] }
 0x4f2   : > { %v3622_v14 = vadd.f32 %v3621_v58, %v3620_v28  ;;  %v3722_v18 = vadd.f32 %v3721_v20, %v3720_v35  ;;  %v3725_v41 = vsel %vm208_vm0, %v3663_v37, 0.0  ;;  %v3761_v28 = vld [vmem:[#allocation3 + $0xa0] sm:$0xff]  ;;  %v6938_v20 = vld [vmem:[#allocation3 + $0xb8] sm:$0xff] }
 0x4f3   : > { %v3723_v52 = vsel %vm208_vm0, %v3662_v47, 0.0 }
 0x4f4   : > { %v3624_v54 = vadd.f32 %v3623_v36, %v3622_v14  ;;  %v3724_v17 = vadd.f32 %v3723_v52, %v3722_v18  ;;  %v3763_v18 = vld [vmem:[#allocation3 + $0xb0] sm:$0xff]  ;;  %v3766_v36 = vld [vmem:[#allocation3 + $0xc8] sm:$0xff]  ;;  %v3765_v52 = vld [vmem:[#allocation3 + $0xc0] sm:$0xff] }
 0x4f6   : > { %v3625_v30 = vrot.slane %v3624_v54, 4  ;;  %v3726_v55 = vadd.f32 %v3725_v41, %v3724_v17 }
 0x4f8   : > { %v3626_v23 = vadd.f32 %v3625_v30, %v3624_v54  ;;  %v3727_v29 = vrot.slane %v3726_v55, 4 }
 0x4fa   : > { %v3627_v3 = vrot.slane %v3626_v23, 2  ;;  %v3728_v40 = vadd.f32 %v3727_v29, %v3726_v55  ;;  %v3768_v55 = vld [vmem:[#allocation3 + $0xd8] sm:$0xff]  ;;  %v3770_v29 = vld [vmem:[#allocation3 + $0xe8] sm:$0xff] }
 0x4fc   : > { %v3628_v1 = vadd.f32 %v3627_v3, %v3626_v23  ;;  %v3729_v13 = vrot.slane %v3728_v40, 2  ;;  %v3767_v23 = vld [vmem:[#allocation3 + $0xd0] sm:$0xff] }
 0x4fe   : > { %v3629_v11 = vrot.slane %v3628_v1, 1  ;;  %v3730_v22 = vadd.f32 %v3729_v13, %v3728_v40 }
 0x500   : > { %v3630_v24 = vadd.f32 %v3629_v11, %v3628_v1  ;;  %v3731_v26 = vrot.slane %v3730_v22, 1  ;;  %v3769_v11 = vld [vmem:[#allocation3 + $0xe0] sm:$0xff] }
 0x502   : > { %v3732_v25 = vadd.f32 %v3731_v26, %v3730_v22  ;;  %v6874_v46 = vmul.f32 0.00390625, %v3630_v24  ;;  %v3772_v22 = vld [vmem:[#allocation3 + $0xf8] sm:$0xff]  ;;  %v3771_v24 = vld [vmem:[#allocation3 + $0xf0] sm:$0xff] }
 0x504   : > { %v3735_v51 = vmul.f32 0.00390625, %v3732_v25  ;;  %v3736_v10 = vmul.f32 %v6874_v46, %v6874_v46  ;;  %v3773_v62 = vsub.f32 %v6880_v48, %v6874_v46  ;;  %v3774_v9 = vsub.f32 %v6878_v33, %v6874_v46 }
 0x505   : > { %v3775_v43 = vsub.f32 %v6884_v21, %v6874_v46  ;;  %v3776_v16 = vsub.f32 %v6882_v50, %v6874_v46  ;;  %v3777_v61 = vsub.f32 %v6888_v7, %v6874_v46  ;;  %v3778_v42 = vsub.f32 %v6886_v34, %v6874_v46 }
 0x506   : > { %v3737_v59 = vsub.f32 %v3735_v51, %v3736_v10  ;;  %v3779_v45 = vsub.f32 %v6892_v15, %v6874_v46  ;;  %v3780_v19 = vsub.f32 %v6890_v6, %v6874_v46  ;;  %v3781_v27 = vsub.f32 %v6896_v31, %v6874_v46 }
 0x507   : > { %v3782_v32 = vsub.f32 %v6894_v38, %v6874_v46  ;;  %v3783_v60 = vsub.f32 %v6900_v5, %v6874_v46  ;;  %v3784_v35 = vsub.f32 %v6898_v4, %v6874_v46  ;;  %v3785_v37 = vsub.f32 %v6904_v12, %v6874_v46 }
 0x508   : > { %v3738_v63 = vmax.f32 %v3737_v59, 0.0  ;;  %v3786_v58 = vsub.f32 %v6902_v53, %v6874_v46  ;;  %v3787_v47 = vsub.f32 %v3755_v44, %v6874_v46  ;;  %v3788_v14 = vsub.f32 %v6914_v8, %v6874_v46  ;;  %v3838_v8 = vld [vmem:[%s4951_s17 + $0x8] sm:$0xff]  ;;  %v3839_v44 = vld [vmem:[%s4951_s17 + $0x10] sm:$0xff] }
 0x509   : > { %v3789_v54 = vsub.f32 %v3757_v2, %v6874_v46  ;;  %v3790_v17 = vsub.f32 %v6916_v49, %v6874_v46  ;;  %v3791_v41 = vsub.f32 %v3759_v57, %v6874_v46  ;;  %v3792_v30 = vsub.f32 %v6926_v56, %v6874_v46  ;;  %v3840_v49 = vld [vmem:[%s4951_s17 + $0x18] sm:$0xff]  ;;  %v3841_v2 = vld [vmem:[%s4951_s17 + $0x20] sm:$0xff]  ;;  %v3842_v56 = vld [vmem:[%s4951_s17 + $0x28] sm:$0xff] }
 0x50a   : > { %v3739_v0 = vadd.f32 1e-05, %v3738_v63  ;;  %v3793_v3 = vsub.f32 %v3761_v28, %v6874_v46  ;;  %v3794_v40 = vsub.f32 %v6936_v39, %v6874_v46  ;;  %v3795_v1 = vsub.f32 %v3763_v18, %v6874_v46  ;;  %v3843_v57 = vld [vmem:[%s4951_s17 + $0x30] sm:$0xff]  ;;  %v3845_v28 = vld [vmem:[%s4951_s17 + $0x40] sm:$0xff] }
 0x50b   : > { %v3796_v13 = vsub.f32 %v6938_v20, %v6874_v46  ;;  %v3797_v26 = vsub.f32 %v3765_v52, %v6874_v46  ;;  %v3798_v25 = vsub.f32 %v3766_v36, %v6874_v46  ;;  %v3799_v51 = vsub.f32 %v3767_v23, %v6874_v46  ;;  %v3846_v20 = vld [vmem:[%s4951_s17 + $0x48] sm:$0xff]  ;;  %v3848_v36 = vld [vmem:[%s4951_s17 + $0x58] sm:$0xff]  ;;  %v3849_v52 = vld [vmem:[%s4951_s17 + $0x60] sm:$0xff] }
 0x50c   : > { %4902 = vrsqrt.f32 %v3739_v0  ;;  %v3800_v10 = vsub.f32 %v3768_v55, %v6874_v46  ;;  %v3801_v63 = vsub.f32 %v3769_v11, %v6874_v46  ;;  %v3802_v0 = vsub.f32 %v3770_v29, %v6874_v46  ;;  %v3851_v23 = vld [vmem:[%s4951_s17 + $0x70] sm:$0xff]  ;;  %v3852_v29 = vld [vmem:[%s4951_s17 + $0x78] sm:$0xff] }
 0x50d   : > { %v3803_v33 = vsub.f32 %v3771_v24, %v6874_v46  ;;  %v3804_v48 = vsub.f32 %v3772_v22, %v6874_v46 }
 0x516   : > { %v4903_v59 = vpop.eup %4902 }
 0x517   : > { %v3805_v50 = vmul.f32 %v4903_v59, %v3773_v62  ;;  %v3806_v21 = vmul.f32 %v4903_v59, %v3774_v9  ;;  %v3807_v34 = vmul.f32 %v4903_v59, %v3775_v43  ;;  %v3808_v7 = vmul.f32 %v4903_v59, %v3776_v16  ;;  %v3837_v16 = vld [vmem:[%s4951_s17] sm:$0xff] }
 0x518   : > { %v3809_v6 = vmul.f32 %v4903_v59, %v3777_v61  ;;  %v3810_v15 = vmul.f32 %v4903_v59, %v3778_v42  ;;  %v3811_v38 = vmul.f32 %v4903_v59, %v3779_v45  ;;  %v3812_v31 = vmul.f32 %v4903_v59, %v3780_v19 }
 0x519   : > { %v3813_v4 = vmul.f32 %v4903_v59, %v3781_v27  ;;  %v3814_v5 = vmul.f32 %v4903_v59, %v3782_v32  ;;  %v3815_v53 = vmul.f32 %v4903_v59, %v3783_v60  ;;  %v3816_v12 = vmul.f32 %v4903_v59, %v3784_v35  ;;  %v3844_v27 = vld [vmem:[%s4951_s17 + $0x38] sm:$0xff] }
 0x51a   : > { %v6967_v46 = vmul.f32 %v4903_v59, %v3785_v37  ;;  %v6969_v62 = vmul.f32 %v4903_v59, %v3786_v58  ;;  %v6971_v9 = vmul.f32 %v4903_v59, %v3787_v47  ;;  %v6973_v43 = vmul.f32 %v4903_v59, %v3788_v14  ;;  %v3847_v37 = vld [vmem:[%s4951_s17 + $0x50] sm:$0xff] }
 0x51b   : > { %v6979_v61 = vmul.f32 %v4903_v59, %v3789_v54  ;;  %v6981_v42 = vmul.f32 %v4903_v59, %v3790_v17  ;;  %v6983_v45 = vmul.f32 %v4903_v59, %v3791_v41  ;;  %v6985_v19 = vmul.f32 %v4903_v59, %v3792_v30  ;;  %v3850_v54 = vld [vmem:[%s4951_s17 + $0x68] sm:$0xff] }
 0x51c   : > { %v6991_v32 = vmul.f32 %v4903_v59, %v3793_v3  ;;  %v6993_v60 = vmul.f32 %v4903_v59, %v3794_v40  ;;  %v6995_v35 = vmul.f32 %v4903_v59, %v3795_v1  ;;  %v6997_v39 = vmul.f32 %v4903_v59, %v3796_v13  ;;  %v3853_v3 = vld [vmem:[%s4951_s17 + $0x80] sm:$0xff]  ;;  %v3854_v40 = vld [vmem:[%s4951_s17 + $0x88] sm:$0xff]  ;;  %v3855_v1 = vld [vmem:[%s4951_s17 + $0x90] sm:$0xff] }
 0x51d   : > { %v7002_v58 = vmul.f32 %v4903_v59, %v3797_v26  ;;  %v7004_v47 = vmul.f32 %v4903_v59, %v3798_v25  ;;  %v7006_v14 = vmul.f32 %v4903_v59, %v3799_v51  ;;  %v7008_v18 = vmul.f32 %v4903_v59, %v3800_v10  ;;  %v3856_v13 = vld [vmem:[%s4951_s17 + $0x98] sm:$0xff]  ;;  %v3857_v25 = vld [vmem:[%s4951_s17 + $0xa0] sm:$0xff]  ;;  %v3858_v51 = vld [vmem:[%s4951_s17 + $0xa8] sm:$0xff] }
 0x51e   : > { %v7020_v17 = vmul.f32 %v4903_v59, %v3801_v63  ;;  %v7022_v41 = vmul.f32 %v4903_v59, %v3802_v0  ;;  %v7024_v30 = vmul.f32 %v4903_v59, %v3803_v33  ;;  %v7026_v55 = vmul.f32 %v4903_v59, %v3804_v48  ;;  %v3859_v10 = vld [vmem:[%s4951_s17 + $0xb0] sm:$0xff]  ;;  %v3860_v48 = vld [vmem:[%s4951_s17 + $0xb8] sm:$0xff] }
 0x51f   : > { %v3869_v11 = vadd.f32 %v3837_v16, %v3805_v50  ;;  %v3870_v22 = vadd.f32 %v3838_v8, %v3806_v21  ;;  %v3871_v24 = vadd.f32 %v3839_v44, %v3807_v34  ;;  %v3872_v26 = vadd.f32 %v3840_v49, %v3808_v7  ;;  %v3862_v50 = vld [vmem:[%s4951_s17 + $0xc8] sm:$0xff] }
 0x520   : > { %7139 = vst [vmem:[#allocation4_spill] sm:$0xff] %v7026_v55  ;;  %v3873_v59 = vadd.f32 %v3841_v2, %v3809_v6  ;;  %v3874_v63 = vadd.f32 %v3842_v56, %v3810_v15  ;;  %v3875_v0 = vadd.f32 %v3843_v57, %v3811_v38  ;;  %v3876_v33 = vadd.f32 %v3844_v27, %v3812_v31  ;;  %v3861_v55 = vld [vmem:[%s4951_s17 + $0xc0] sm:$0xff]  ;;  %v3863_v6 = vld [vmem:[%s4951_s17 + $0xd0] sm:$0xff]  ;;  %v3864_v15 = vld [vmem:[%s4951_s17 + $0xd8] sm:$0xff] }
 0x521   : > { %v3877_v21 = vadd.f32 %v3845_v28, %v3813_v4  ;;  %v3878_v34 = vadd.f32 %v3846_v20, %v3814_v5  ;;  %v3879_v7 = vadd.f32 %v3847_v37, %v3815_v53  ;;  %v3880_v16 = vadd.f32 %v3848_v36, %v3816_v12  ;;  %3902 = vst.msk [vmem:[%s7018_s23] sm:$0xff] %vm208_vm0, %v3869_v11  ;;  %v3865_v38 = vld [vmem:[%s4951_s17 + $0xe0] sm:$0xff]  ;;  %v3866_v12 = vld [vmem:[%s4951_s17 + $0xe8] sm:$0xff] }
 0x522   : > { %3903 = vst.msk [vmem:[%s7018_s23 + $0x8] sm:$0xff] %vm208_vm0, %v3870_v22  ;;  %3904 = vst.msk [vmem:[%s7018_s23 + $0x10] sm:$0xff] %vm208_vm0, %v3871_v24  ;;  %v3881_v31 = vadd.f32 %v3849_v52, %v6967_v46  ;;  %v3882_v4 = vadd.f32 %v3850_v54, %v6969_v62  ;;  %v3883_v5 = vadd.f32 %v3851_v23, %v6971_v9  ;;  %v3867_v46 = vld [vmem:[%s4951_s17 + $0xf0] sm:$0xff]  ;;  %v3868_v62 = vld [vmem:[%s4951_s17 + $0xf8] sm:$0xff] }
 0x523   : > { %3905 = vst.msk [vmem:[%s7018_s23 + $0x18] sm:$0xff] %vm208_vm0, %v3872_v26  ;;  %v3884_v53 = vadd.f32 %v3852_v29, %v6973_v43  ;;  %3906 = vst.msk [vmem:[%s7018_s23 + $0x20] sm:$0xff] %vm208_vm0, %v3873_v59  ;;  %v3885_v9 = vadd.f32 %v3853_v3, %v6979_v61  ;;  %v3886_v8 = vadd.f32 %v3854_v40, %v6981_v42 }
 0x524   : > { %3907 = vst.msk [vmem:[%s7018_s23 + $0x28] sm:$0xff] %vm208_vm0, %v3874_v63  ;;  %3908 = vst.msk [vmem:[%s7018_s23 + $0x30] sm:$0xff] %vm208_vm0, %v3875_v0  ;;  %v3887_v43 = vadd.f32 %v3855_v1, %v6983_v45  ;;  %v3888_v44 = vadd.f32 %v3856_v13, %v6985_v19  ;;  %v3889_v49 = vadd.f32 %v3857_v25, %v6991_v32 }
 0x525   : > { %3909 = vst.msk [vmem:[%s7018_s23 + $0x38] sm:$0xff] %vm208_vm0, %v3876_v33  ;;  %3910 = vst.msk [vmem:[%s7018_s23 + $0x40] sm:$0xff] %vm208_vm0, %v3877_v21  ;;  %v3890_v61 = vadd.f32 %v3858_v51, %v6993_v60  ;;  %v3891_v42 = vadd.f32 %v3859_v10, %v6995_v35  ;;  %v3892_v45 = vadd.f32 %v3860_v48, %v6997_v39 }
 0x526   : > { %3911 = vst.msk [vmem:[%s7018_s23 + $0x48] sm:$0xff] %vm208_vm0, %v3878_v34  ;;  %3912 = vst.msk [vmem:[%s7018_s23 + $0x50] sm:$0xff] %vm208_vm0, %v3879_v7  ;;  %v3893_v19 = vadd.f32 %v3861_v55, %v7002_v58  ;;  %v3894_v2 = vadd.f32 %v3862_v50, %v7004_v47  ;;  %v3895_v56 = vadd.f32 %v3863_v6, %v7006_v14 }
 0x527   : > { %3913 = vst.msk [vmem:[%s7018_s23 + $0x58] sm:$0xff] %vm208_vm0, %v3880_v16  ;;  %3914 = vst.msk [vmem:[%s7018_s23 + $0x60] sm:$0xff] %vm208_vm0, %v3881_v31  ;;  %v3896_v57 = vadd.f32 %v3864_v15, %v7008_v18  ;;  %v3897_v27 = vadd.f32 %v3865_v38, %v7020_v17  ;;  %v3898_v32 = vadd.f32 %v3866_v12, %v7022_v41  ;;  %v7140_v35 = vld [vmem:[#allocation4_spill] sm:$0xff] }
 0x528   : > { %3915 = vst.msk [vmem:[%s7018_s23 + $0x68] sm:$0xff] %vm208_vm0, %v3882_v4  ;;  %3916 = vst.msk [vmem:[%s7018_s23 + $0x70] sm:$0xff] %vm208_vm0, %v3883_v5  ;;  %v3899_v60 = vadd.f32 %v3867_v46, %v7024_v30  ;;  %v3900_v39 = vadd.f32 %v3868_v62, %v7140_v35 }
 0x529   : > { %3917 = vst.msk [vmem:[%s7018_s23 + $0x78] sm:$0xff] %vm208_vm0, %v3884_v53  ;;  %3918 = vst.msk [vmem:[%s7018_s23 + $0x80] sm:$0xff] %vm208_vm0, %v3885_v9 }
 0x52a   : > { %3919 = vst.msk [vmem:[%s7018_s23 + $0x88] sm:$0xff] %vm208_vm0, %v3886_v8  ;;  %3920 = vst.msk [vmem:[%s7018_s23 + $0x90] sm:$0xff] %vm208_vm0, %v3887_v43 }
 0x52b   : > { %3921 = vst.msk [vmem:[%s7018_s23 + $0x98] sm:$0xff] %vm208_vm0, %v3888_v44  ;;  %3922 = vst.msk [vmem:[%s7018_s23 + $0xa0] sm:$0xff] %vm208_vm0, %v3889_v49 }
 0x52c   : > { %3923 = vst.msk [vmem:[%s7018_s23 + $0xa8] sm:$0xff] %vm208_vm0, %v3890_v61  ;;  %3924 = vst.msk [vmem:[%s7018_s23 + $0xb0] sm:$0xff] %vm208_vm0, %v3891_v42 }
 0x52d   : > { %3925 = vst.msk [vmem:[%s7018_s23 + $0xb8] sm:$0xff] %vm208_vm0, %v3892_v45  ;;  %3926 = vst.msk [vmem:[%s7018_s23 + $0xc0] sm:$0xff] %vm208_vm0, %v3893_v19 }
 0x52e   : > { %3927 = vst.msk [vmem:[%s7018_s23 + $0xc8] sm:$0xff] %vm208_vm0, %v3894_v2  ;;  %3928 = vst.msk [vmem:[%s7018_s23 + $0xd0] sm:$0xff] %vm208_vm0, %v3895_v56 }
 0x52f   : > { %3929 = vst.msk [vmem:[%s7018_s23 + $0xd8] sm:$0xff] %vm208_vm0, %v3896_v57  ;;  %3930 = vst.msk [vmem:[%s7018_s23 + $0xe0] sm:$0xff] %vm208_vm0, %v3897_v27 }
 0x530   : > { %3931 = vst.msk [vmem:[%s7018_s23 + $0xe8] sm:$0xff] %vm208_vm0, %v3898_v32  ;;  %3932 = vst.msk [vmem:[%s7018_s23 + $0xf0] sm:$0xff] %vm208_vm0, %v3899_v60 }
 0x531   : > { %3933 = vst.msk [vmem:[%s7018_s23 + $0xf8] sm:$0xff] %vm208_vm0, %v3900_v39 }
 0x532 PF: > { %s13_s12 = sadd.s32 1, %s4910_s12  }
 0x533   : > { %p10_p4 = scmp.ge.s32.totalorder %s13_s12, 4  }
 0x535   :  { %12 = sbr.rel (!%p10_p4) target bundleno = 1 (0x1), region = 74 }

</bundles_post_ra>
